<compile_context>
chip_gen: v7x
topology: tpu7x:2x2x1
jax: 0.10.0
libtpu: 0.0.40
codegen_flags: <defaults>
</compile_context>

<pallas_src>
import jax
import jax.numpy as jnp
from jax.experimental import pallas as pl
from jax.experimental.pallas import tpu as pltpu

_MAX_BB = 128          # max images per grid step
_FC2_PAD = 128         # lane-padded fc2 / output width


def _round_up(n, m):
    return ((n + m - 1) // m) * m


def _pick_block(batch):
    """Batch block: multiple of 16, <=128, prefer >=2 grid steps (v7x 2 TCs)."""
    bb = min(_MAX_BB, _round_up(batch, 16))
    if bb >= 32 and _round_up(batch, bb) // bb < 2:
        bb = _round_up(bb // 2, 16)
    return bb


# ----------------------------------------------------------------------------
# Fused forward kernel (one batch block of BB images per grid step)
# ----------------------------------------------------------------------------
def _net_kernel(x_ref, t1_ref, bt1_ref, t2_ref, bt2_ref,
                tf1_ref, bf1_ref, wf2_ref, bf2_ref, o_ref):
    f32 = jnp.float32
    bf16 = jnp.bfloat16
    bb = x_ref.shape[1]                               # batch block (static)

    # Cast the input ONCE; the 5 conv-row slices reuse the bf16 tensor.
    xb = x_ref[...].astype(bf16)                      # [28, BB, 28] (H, B, W)

    # ---- conv1 (5x5, 1->10): 5 banded matmuls, one per kernel row.
    #      rows = io*BB + b, cols = jo*10 + co
    acc1 = jnp.dot(xb[0:24].reshape(24 * bb, 28), t1_ref[0],
                   preferred_element_type=f32) + bt1_ref[...]
    for di in range(1, 5):
        acc1 = acc1 + jnp.dot(xb[di:di + 24].reshape(24 * bb, 28), t1_ref[di],
                              preferred_element_type=f32)

    # ---- maxpool 2x2 + relu.  Row pairs via free leading reshape; column
    #      pairs via a 10-lane offset max (odd-jo lanes become dead and are
    #      zero-weighted inside t2).
    c1 = acc1.reshape(12, 2, bb, 240)
    m1 = jnp.maximum(c1[:, 0], c1[:, 1])              # [12, BB, 240]
    m1 = jnp.maximum(m1[..., :230], m1[..., 10:])     # [12, BB, 230]
    a1 = jnp.maximum(m1, 0.0).astype(bf16)            # single bf16 cast

    # ---- conv2 (5x5, 10->20): same banded-matmul trick; the band matrix also
    #      performs the post-pool lane compaction.
    #      rows = i3*BB + b, cols = j3*20 + co
    acc2 = jnp.dot(a1[0:8].reshape(8 * bb, 230), t2_ref[0],
                   preferred_element_type=f32) + bt2_ref[...]
    for di in range(1, 5):
        acc2 = acc2 + jnp.dot(a1[di:di + 8].reshape(8 * bb, 230), t2_ref[di],
                              preferred_element_type=f32)
    # conv2_drop (Dropout2d): identity in eval mode.

    # ---- maxpool 2x2 + relu
    c2 = acc2.reshape(4, 2, bb, 160)
    m2 = jnp.maximum(c2[:, 0], c2[:, 1])              # [4, BB, 160]
    m2 = jnp.maximum(m2[..., :140], m2[..., 20:])     # [4, BB, 140]
    a2 = jnp.maximum(m2, 0.0).astype(bf16)            # [4(H), BB(B), 140]

    # ---- fc1 + relu: one matmul per pooled spatial row; tf1 is pre-permuted
    #      to match this layout and the PyTorch view(-1, 320) feature order.
    h = jnp.dot(a2[0], tf1_ref[0], preferred_element_type=f32) + bf1_ref[...]
    for i4 in range(1, 4):
        h = h + jnp.dot(a2[i4], tf1_ref[i4], preferred_element_type=f32)
    h = jnp.maximum(h, 0.0)                           # [BB, 50]
    # F.dropout: identity in eval mode.

    # ---- fc2 (lane-padded to 128: zero weights, -1e30 bias in pad lanes)
    #      + log_softmax.  The pad lanes contribute exp(-huge) = 0.
    logits = jnp.dot(h.astype(bf16), wf2_ref[...],
                     preferred_element_type=f32) + bf2_ref[...]   # [BB, 128]
    m = jnp.max(logits, axis=-1, keepdims=True)
    s = logits - m
    lse = jnp.log(jnp.sum(jnp.exp(s), axis=-1, keepdims=True))
    o_ref[...] = s - lse                              # full 128-lane store


# ----------------------------------------------------------------------------
# One-time weight preprocessing (PyTorch layout -> kernel band matrices)
# ----------------------------------------------------------------------------
def prepare_params(params):
    bf16, f32 = jnp.bfloat16, jnp.float32
    w1, b1 = params["conv1_w"], params["conv1_b"]     # [10,1,5,5], [10]
    w2, b2 = params["conv2_w"], params["conv2_b"]     # [20,10,5,5], [20]
    wf1, bfc1 = params["fc1_w"], params["fc1_b"]      # [50,320], [50]
    wf2, bfc2 = params["fc2_w"], params["fc2_b"]      # [10,50], [10]

    # conv1 band: t1[di, w, jo*10+co] = w1[co,0,di,w-jo] for 0 <= w-jo <= 4
    w_idx = jnp.arange(28)[:, None]
    jo = jnp.arange(24)[None, :]
    dj = w_idx - jo
    mk1 = (dj >= 0) & (dj <= 4)
    w1p = jnp.transpose(w1[:, 0, :, :], (1, 2, 0))    # [di, dj, co]
    t1 = w1p[:, jnp.clip(dj, 0, 4), :]                # [5, 28, 24, 10]
    t1 = jnp.where(mk1[None, :, :, None], t1, 0.0).reshape(5, 28, 240)
    bt1 = jnp.tile(b1, 24).reshape(1, 240).astype(f32)

    # conv2 band over pooled/interleaved lanes: input lane l = 20*j2 + ci
    # (valid only for ci < 10); output column = j3*20 + co.
    l2 = jnp.arange(230)[:, None]
    j3 = jnp.arange(8)[None, :]
    q = l2 - 20 * j3
    dj2, ci2 = q // 20, q % 20
    mk2 = (q >= 0) & (dj2 <= 4) & (ci2 <= 9)
    w2p = jnp.transpose(w2, (2, 3, 1, 0))             # [di, dj, ci, co]
    t2 = w2p[:, jnp.clip(dj2, 0, 4), jnp.clip(ci2, 0, 9), :]   # [5, 230, 8, 20]
    t2 = jnp.where(mk2[None, :, :, None], t2, 0.0).reshape(5, 230, 160)
    bt2 = jnp.tile(b2, 8).reshape(1, 160).astype(f32)

    # fc1: input lane l = 40*j4 + co (valid co < 20); PyTorch flatten order is
    # f = co*16 + i4*4 + j4.
    lf = jnp.arange(140)
    j4, cof = lf // 40, lf % 40
    mkf = cof <= 19
    wf1t = jnp.transpose(wf1.reshape(50, 20, 4, 4), (2, 3, 1, 0))  # [i4,j4,co,n]
    tf1 = wf1t[:, j4, jnp.clip(cof, 0, 19), :]                     # [4, 140, 50]
    tf1 = jnp.where(mkf[None, :, None], tf1, 0.0)

    # fc2 lane-padded to 128 outputs: zero weight columns, -1e30 pad bias so
    # log_softmax's max / exp-sum are unaffected.
    wf2_pad = jnp.zeros((50, _FC2_PAD), f32).at[:, :10].set(wf2.T)
    bf2_pad = jnp.full((1, _FC2_PAD), -1e30, f32).at[0, :10].set(bfc2)

    return {
        "t1": t1.astype(bf16), "bt1": bt1,
        "t2": t2.astype(bf16), "bt2": bt2,
        "tf1": tf1.astype(bf16), "bf1": bfc1.reshape(1, 50).astype(f32),
        "wf2": wf2_pad.astype(bf16), "bf2": bf2_pad,
    }


def _full_block_spec(w):
    nd = w.ndim
    return pl.BlockSpec(w.shape, lambda i, _nd=nd: (0,) * _nd)


# ----------------------------------------------------------------------------
# Forward pass (matches Net.forward, eval-mode dropout)
# ----------------------------------------------------------------------------
@jax.jit
def net_forward(prep, x):
    # x: [B, 1, 28, 28] NCHW f32
    B = x.shape[0]
    bb = _pick_block(B)
    b_pad = _round_up(B, bb)
    n_blk = b_pad // bb

    xi = x[:, 0, :, :]                                # [B, 28, 28]
    if b_pad != B:
        xi = jnp.pad(xi, ((0, b_pad - B), (0, 0), (0, 0)))
    # [n_blk, 28(H), bb(B), 28(W)]: each grid step's input block is one dense
    # leading-axis slab -> a single contiguous DMA.
    xk = jnp.transpose(xi.reshape(n_blk, bb, 28, 28), (0, 2, 1, 3))

    names = ("t1", "bt1", "t2", "bt2", "tf1", "bf1", "wf2", "bf2")
    weights = [prep[k] for k in names]
    w_specs = [_full_block_spec(w) for w in weights]

    out = pl.pallas_call(
        _net_kernel,
        out_shape=jax.ShapeDtypeStruct((b_pad, _FC2_PAD), jnp.float32),
        grid_spec=pltpu.PrefetchScalarGridSpec(
            num_scalar_prefetch=0,
            grid=(n_blk,),
            in_specs=[pl.BlockSpec((None, 28, bb, 28),
                                   lambda i: (i, 0, 0, 0))] + w_specs,
            out_specs=pl.BlockSpec((bb, _FC2_PAD), lambda i: (i, 0)),
        ),
        compiler_params=pltpu.CompilerParams(
            dimension_semantics=("parallel",),
            vmem_limit_bytes=32 * 1024 * 1024),
    )(xk, *weights)
    return out[:B, :10]


# ----------------------------------------------------------------------------
# Reference (plain JAX / XLA) forward, for a numerical cross-check
# ----------------------------------------------------------------------------
def _reference_forward(params, x):
    y = jax.lax.conv(x, params["conv1_w"], (1, 1), "VALID")
    y = y + params["conv1_b"].reshape(1, -1, 1, 1)
    y = jax.lax.reduce_window(y, -jnp.inf, jax.lax.max,
                              (1, 1, 2, 2), (1, 1, 2, 2), "VALID")
    y = jnp.maximum(y, 0.0)
    y = jax.lax.conv(y, params["conv2_w"], (1, 1), "VALID")
    y = y + params["conv2_b"].reshape(1, -1, 1, 1)
    y = jax.lax.reduce_window(y, -jnp.inf, jax.lax.max,
                              (1, 1, 2, 2), (1, 1, 2, 2), "VALID")
    y = jnp.maximum(y, 0.0)
    y = y.reshape(y.shape[0], 320)
    y = jnp.maximum(y @ params["fc1_w"].T + params["fc1_b"], 0.0)
    y = y @ params["fc2_w"].T + params["fc2_b"]
    return jax.nn.log_softmax(y, axis=-1)


# ----------------------------------------------------------------------------
# Parameter init (deterministic, PyTorch-default-style uniform)
# ----------------------------------------------------------------------------
def _init_params(key):
    def uniform(key, shape, fan_in):
        bound = 1.0 / jnp.sqrt(jnp.float32(fan_in))
        return jax.random.uniform(key, shape, jnp.float32, -bound, bound)

    ks = jax.random.split(key, 8)
    return {
        "conv1_w": uniform(ks[0], (10, 1, 5, 5), 1 * 5 * 5),
        "conv1_b": uniform(ks[1], (10,), 1 * 5 * 5),
        "conv2_w": uniform(ks[2], (20, 10, 5, 5), 10 * 5 * 5),
        "conv2_b": uniform(ks[3], (20,), 10 * 5 * 5),
        "fc1_w": uniform(ks[4], (50, 320), 320),
        "fc1_b": uniform(ks[5], (50,), 320),
        "fc2_w": uniform(ks[6], (10, 50), 50),
        "fc2_b": uniform(ks[7], (10,), 50),
    }


if __name__ == "__main__":
    key = jax.random.PRNGKey(0)
    k_params, k_x = jax.random.split(key)
    params = _init_params(k_params)
    prep = prepare_params(params)

    # MNIST-sized input: fc1's 320 = 20*4*4 features imply 28x28 spatial.
    x = jax.random.normal(k_x, (2, 1, 28, 28), dtype=jnp.float32)
    out = jax.block_until_ready(net_forward(prep, x))

    assert out.shape == (2, 10)
    # log_softmax rows sum to 1 in probability space.
    assert jnp.allclose(jnp.sum(jnp.exp(out), axis=-1), 1.0, atol=1e-4)
    ref = _reference_forward(params, x)
    assert jnp.allclose(out, ref, atol=0.1), float(jnp.max(jnp.abs(out - ref)))
    assert jnp.array_equal(jnp.argmax(out, -1), jnp.argmax(ref, -1))

    # Second check: batch spanning multiple grid steps + padding tail.
    x2 = jax.random.normal(jax.random.PRNGKey(1), (34, 1, 28, 28),
                           dtype=jnp.float32)
    out2 = jax.block_until_ready(net_forward(prep, x2))
    ref2 = _reference_forward(params, x2)
    assert out2.shape == (34, 10)
    assert jnp.allclose(jnp.sum(jnp.exp(out2), axis=-1), 1.0, atol=1e-4)
    assert jnp.allclose(out2, ref2, atol=0.1), float(jnp.max(jnp.abs(out2 - ref2)))
    assert jnp.array_equal(jnp.argmax(out2, -1), jnp.argmax(ref2, -1))

    print("KERNEL_OK")
</pallas_src>

<mosaic_0001>
module attributes {stable_mosaic.version = 11 : i64} {
  func.func @_net_kernel(%arg0: i32, %arg1: memref<1x28x16x28xf32, #tpu.memory_space<vmem>>, %arg2: memref<5x28x240xbf16, #tpu.memory_space<vmem>>, %arg3: memref<1x240xf32, #tpu.memory_space<vmem>>, %arg4: memref<5x230x160xbf16, #tpu.memory_space<vmem>>, %arg5: memref<1x160xf32, #tpu.memory_space<vmem>>, %arg6: memref<4x140x50xbf16, #tpu.memory_space<vmem>>, %arg7: memref<1x50xf32, #tpu.memory_space<vmem>>, %arg8: memref<50x128xbf16, #tpu.memory_space<vmem>>, %arg9: memref<1x128xf32, #tpu.memory_space<vmem>>, %arg10: memref<16x128xf32, #tpu.memory_space<vmem>>) attributes {dimension_semantics = [#tpu.dimension_semantics<parallel>], iteration_bounds = array<i64: 1>, scalar_prefetch = 0 : i64, scratch_operands = 0 : i64, tpu.core_type = #tpu.core_type<tc>, window_params = [{transform_indices = @transform_0, window_bounds = array<i64: 1, 28, 16, 28>}, {pipeline_mode = #tpu.pipeline_mode<synchronous>, transform_indices = @transform_1, window_bounds = array<i64: 5, 28, 240>}, {pipeline_mode = #tpu.pipeline_mode<synchronous>, transform_indices = @transform_2, window_bounds = array<i64: 1, 240>}, {pipeline_mode = #tpu.pipeline_mode<synchronous>, transform_indices = @transform_3, window_bounds = array<i64: 5, 230, 160>}, {pipeline_mode = #tpu.pipeline_mode<synchronous>, transform_indices = @transform_4, window_bounds = array<i64: 1, 160>}, {pipeline_mode = #tpu.pipeline_mode<synchronous>, transform_indices = @transform_5, window_bounds = array<i64: 4, 140, 50>}, {pipeline_mode = #tpu.pipeline_mode<synchronous>, transform_indices = @transform_6, window_bounds = array<i64: 1, 50>}, {pipeline_mode = #tpu.pipeline_mode<synchronous>, transform_indices = @transform_7, window_bounds = array<i64: 50, 128>}, {pipeline_mode = #tpu.pipeline_mode<synchronous>, transform_indices = @transform_8, window_bounds = array<i64: 1, 128>}, {transform_indices = @transform_9, window_bounds = array<i64: 16, 128>}]} {
    %c0 = arith.constant 0 : index
    %c0_0 = arith.constant 0 : index
    %c0_1 = arith.constant 0 : index
    %c0_2 = arith.constant 0 : index
    %0 = vector.load %arg1[%c0, %c0_0, %c0_1, %c0_2] : memref<1x28x16x28xf32, #tpu.memory_space<vmem>>, vector<1x28x16x28xf32>
    %1 = vector.shape_cast %0 : vector<1x28x16x28xf32> to vector<28x16x28xf32>
    %2 = arith.truncf %1 : vector<28x16x28xf32> to vector<28x16x28xbf16>
    %3 = vector.extract_strided_slice %2 {offsets = [0, 0, 0], sizes = [24, 16, 28], strides = [1, 1, 1]} : vector<28x16x28xbf16> to vector<24x16x28xbf16>
    %4 = vector.shape_cast %3 : vector<24x16x28xbf16> to vector<384x28xbf16>
    %c0_3 = arith.constant 0 : index
    %c0_4 = arith.constant 0 : index
    %c0_5 = arith.constant 0 : index
    %5 = vector.load %arg2[%c0_3, %c0_4, %c0_5] : memref<5x28x240xbf16, #tpu.memory_space<vmem>>, vector<1x28x240xbf16>
    %6 = vector.shape_cast %5 : vector<1x28x240xbf16> to vector<28x240xbf16>
    %cst = arith.constant dense<0.000000e+00> : vector<384x240xf32>
    %7 = tpu.matmul %4, %6, %cst {dimension_numbers = #tpu.dot_dimension_numbers<[1], [0], [0], [1], [0, 0, 1, 1], [], []>} : vector<384x28xbf16>, vector<28x240xbf16>, vector<384x240xf32> -> vector<384x240xf32>
    %c0_6 = arith.constant 0 : index
    %c0_7 = arith.constant 0 : index
    %8 = vector.load %arg3[%c0_6, %c0_7] : memref<1x240xf32, #tpu.memory_space<vmem>>, vector<1x240xf32>
    %9 = vector.broadcast %8 : vector<1x240xf32> to vector<384x240xf32>
    %10 = arith.addf %7, %9 : vector<384x240xf32>
    %11 = vector.extract_strided_slice %2 {offsets = [1, 0, 0], sizes = [24, 16, 28], strides = [1, 1, 1]} : vector<28x16x28xbf16> to vector<24x16x28xbf16>
    %12 = vector.shape_cast %11 : vector<24x16x28xbf16> to vector<384x28xbf16>
    %c1 = arith.constant 1 : index
    %c0_8 = arith.constant 0 : index
    %c0_9 = arith.constant 0 : index
    %13 = vector.load %arg2[%c1, %c0_8, %c0_9] : memref<5x28x240xbf16, #tpu.memory_space<vmem>>, vector<1x28x240xbf16>
    %14 = vector.shape_cast %13 : vector<1x28x240xbf16> to vector<28x240xbf16>
    %cst_10 = arith.constant dense<0.000000e+00> : vector<384x240xf32>
    %15 = tpu.matmul %12, %14, %cst_10 {dimension_numbers = #tpu.dot_dimension_numbers<[1], [0], [0], [1], [0, 0, 1, 1], [], []>} : vector<384x28xbf16>, vector<28x240xbf16>, vector<384x240xf32> -> vector<384x240xf32>
    %16 = arith.addf %10, %15 : vector<384x240xf32>
    %17 = vector.extract_strided_slice %2 {offsets = [2, 0, 0], sizes = [24, 16, 28], strides = [1, 1, 1]} : vector<28x16x28xbf16> to vector<24x16x28xbf16>
    %18 = vector.shape_cast %17 : vector<24x16x28xbf16> to vector<384x28xbf16>
    %c2 = arith.constant 2 : index
    %c0_11 = arith.constant 0 : index
    %c0_12 = arith.constant 0 : index
    %19 = vector.load %arg2[%c2, %c0_11, %c0_12] : memref<5x28x240xbf16, #tpu.memory_space<vmem>>, vector<1x28x240xbf16>
    %20 = vector.shape_cast %19 : vector<1x28x240xbf16> to vector<28x240xbf16>
    %cst_13 = arith.constant dense<0.000000e+00> : vector<384x240xf32>
    %21 = tpu.matmul %18, %20, %cst_13 {dimension_numbers = #tpu.dot_dimension_numbers<[1], [0], [0], [1], [0, 0, 1, 1], [], []>} : vector<384x28xbf16>, vector<28x240xbf16>, vector<384x240xf32> -> vector<384x240xf32>
    %22 = arith.addf %16, %21 : vector<384x240xf32>
    %23 = vector.extract_strided_slice %2 {offsets = [3, 0, 0], sizes = [24, 16, 28], strides = [1, 1, 1]} : vector<28x16x28xbf16> to vector<24x16x28xbf16>
    %24 = vector.shape_cast %23 : vector<24x16x28xbf16> to vector<384x28xbf16>
    %c3 = arith.constant 3 : index
    %c0_14 = arith.constant 0 : index
    %c0_15 = arith.constant 0 : index
    %25 = vector.load %arg2[%c3, %c0_14, %c0_15] : memref<5x28x240xbf16, #tpu.memory_space<vmem>>, vector<1x28x240xbf16>
    %26 = vector.shape_cast %25 : vector<1x28x240xbf16> to vector<28x240xbf16>
    %cst_16 = arith.constant dense<0.000000e+00> : vector<384x240xf32>
    %27 = tpu.matmul %24, %26, %cst_16 {dimension_numbers = #tpu.dot_dimension_numbers<[1], [0], [0], [1], [0, 0, 1, 1], [], []>} : vector<384x28xbf16>, vector<28x240xbf16>, vector<384x240xf32> -> vector<384x240xf32>
    %28 = arith.addf %22, %27 : vector<384x240xf32>
    %29 = vector.extract_strided_slice %2 {offsets = [4, 0, 0], sizes = [24, 16, 28], strides = [1, 1, 1]} : vector<28x16x28xbf16> to vector<24x16x28xbf16>
    %30 = vector.shape_cast %29 : vector<24x16x28xbf16> to vector<384x28xbf16>
    %c4 = arith.constant 4 : index
    %c0_17 = arith.constant 0 : index
    %c0_18 = arith.constant 0 : index
    %31 = vector.load %arg2[%c4, %c0_17, %c0_18] : memref<5x28x240xbf16, #tpu.memory_space<vmem>>, vector<1x28x240xbf16>
    %32 = vector.shape_cast %31 : vector<1x28x240xbf16> to vector<28x240xbf16>
    %cst_19 = arith.constant dense<0.000000e+00> : vector<384x240xf32>
    %33 = tpu.matmul %30, %32, %cst_19 {dimension_numbers = #tpu.dot_dimension_numbers<[1], [0], [0], [1], [0, 0, 1, 1], [], []>} : vector<384x28xbf16>, vector<28x240xbf16>, vector<384x240xf32> -> vector<384x240xf32>
    %34 = arith.addf %28, %33 : vector<384x240xf32>
    %35 = vector.shape_cast %34 : vector<384x240xf32> to vector<12x2x16x240xf32>
    %36 = vector.extract_strided_slice %35 {offsets = [0, 0, 0, 0], sizes = [12, 1, 16, 240], strides = [1, 1, 1, 1]} : vector<12x2x16x240xf32> to vector<12x1x16x240xf32>
    %37 = vector.shape_cast %36 : vector<12x1x16x240xf32> to vector<12x16x240xf32>
    %38 = vector.extract_strided_slice %35 {offsets = [0, 1, 0, 0], sizes = [12, 1, 16, 240], strides = [1, 1, 1, 1]} : vector<12x2x16x240xf32> to vector<12x1x16x240xf32>
    %39 = vector.shape_cast %38 : vector<12x1x16x240xf32> to vector<12x16x240xf32>
    %40 = arith.maximumf %37, %39 : vector<12x16x240xf32>
    %41 = vector.extract_strided_slice %40 {offsets = [0, 0, 0], sizes = [12, 16, 230], strides = [1, 1, 1]} : vector<12x16x240xf32> to vector<12x16x230xf32>
    %42 = vector.extract_strided_slice %40 {offsets = [0, 0, 10], sizes = [12, 16, 230], strides = [1, 1, 1]} : vector<12x16x240xf32> to vector<12x16x230xf32>
    %43 = arith.maximumf %41, %42 : vector<12x16x230xf32>
    %cst_20 = arith.constant 0.000000e+00 : f32
    %44 = vector.broadcast %cst_20 : f32 to vector<12x16x230xf32>
    %45 = arith.maximumf %43, %44 : vector<12x16x230xf32>
    %46 = arith.truncf %45 : vector<12x16x230xf32> to vector<12x16x230xbf16>
    %47 = vector.extract_strided_slice %46 {offsets = [0, 0, 0], sizes = [8, 16, 230], strides = [1, 1, 1]} : vector<12x16x230xbf16> to vector<8x16x230xbf16>
    %48 = vector.shape_cast %47 : vector<8x16x230xbf16> to vector<128x230xbf16>
    %c0_21 = arith.constant 0 : index
    %c0_22 = arith.constant 0 : index
    %c0_23 = arith.constant 0 : index
    %49 = vector.load %arg4[%c0_21, %c0_22, %c0_23] : memref<5x230x160xbf16, #tpu.memory_space<vmem>>, vector<1x230x160xbf16>
    %50 = vector.shape_cast %49 : vector<1x230x160xbf16> to vector<230x160xbf16>
    %cst_24 = arith.constant dense<0.000000e+00> : vector<128x160xf32>
    %51 = tpu.matmul %48, %50, %cst_24 {dimension_numbers = #tpu.dot_dimension_numbers<[1], [0], [0], [1], [0, 0, 1, 1], [], []>} : vector<128x230xbf16>, vector<230x160xbf16>, vector<128x160xf32> -> vector<128x160xf32>
    %c0_25 = arith.constant 0 : index
    %c0_26 = arith.constant 0 : index
    %52 = vector.load %arg5[%c0_25, %c0_26] : memref<1x160xf32, #tpu.memory_space<vmem>>, vector<1x160xf32>
    %53 = vector.broadcast %52 : vector<1x160xf32> to vector<128x160xf32>
    %54 = arith.addf %51, %53 : vector<128x160xf32>
    %55 = vector.extract_strided_slice %46 {offsets = [1, 0, 0], sizes = [8, 16, 230], strides = [1, 1, 1]} : vector<12x16x230xbf16> to vector<8x16x230xbf16>
    %56 = vector.shape_cast %55 : vector<8x16x230xbf16> to vector<128x230xbf16>
    %c1_27 = arith.constant 1 : index
    %c0_28 = arith.constant 0 : index
    %c0_29 = arith.constant 0 : index
    %57 = vector.load %arg4[%c1_27, %c0_28, %c0_29] : memref<5x230x160xbf16, #tpu.memory_space<vmem>>, vector<1x230x160xbf16>
    %58 = vector.shape_cast %57 : vector<1x230x160xbf16> to vector<230x160xbf16>
    %cst_30 = arith.constant dense<0.000000e+00> : vector<128x160xf32>
    %59 = tpu.matmul %56, %58, %cst_30 {dimension_numbers = #tpu.dot_dimension_numbers<[1], [0], [0], [1], [0, 0, 1, 1], [], []>} : vector<128x230xbf16>, vector<230x160xbf16>, vector<128x160xf32> -> vector<128x160xf32>
    %60 = arith.addf %54, %59 : vector<128x160xf32>
    %61 = vector.extract_strided_slice %46 {offsets = [2, 0, 0], sizes = [8, 16, 230], strides = [1, 1, 1]} : vector<12x16x230xbf16> to vector<8x16x230xbf16>
    %62 = vector.shape_cast %61 : vector<8x16x230xbf16> to vector<128x230xbf16>
    %c2_31 = arith.constant 2 : index
    %c0_32 = arith.constant 0 : index
    %c0_33 = arith.constant 0 : index
    %63 = vector.load %arg4[%c2_31, %c0_32, %c0_33] : memref<5x230x160xbf16, #tpu.memory_space<vmem>>, vector<1x230x160xbf16>
    %64 = vector.shape_cast %63 : vector<1x230x160xbf16> to vector<230x160xbf16>
    %cst_34 = arith.constant dense<0.000000e+00> : vector<128x160xf32>
    %65 = tpu.matmul %62, %64, %cst_34 {dimension_numbers = #tpu.dot_dimension_numbers<[1], [0], [0], [1], [0, 0, 1, 1], [], []>} : vector<128x230xbf16>, vector<230x160xbf16>, vector<128x160xf32> -> vector<128x160xf32>
    %66 = arith.addf %60, %65 : vector<128x160xf32>
    %67 = vector.extract_strided_slice %46 {offsets = [3, 0, 0], sizes = [8, 16, 230], strides = [1, 1, 1]} : vector<12x16x230xbf16> to vector<8x16x230xbf16>
    %68 = vector.shape_cast %67 : vector<8x16x230xbf16> to vector<128x230xbf16>
    %c3_35 = arith.constant 3 : index
    %c0_36 = arith.constant 0 : index
    %c0_37 = arith.constant 0 : index
    %69 = vector.load %arg4[%c3_35, %c0_36, %c0_37] : memref<5x230x160xbf16, #tpu.memory_space<vmem>>, vector<1x230x160xbf16>
    %70 = vector.shape_cast %69 : vector<1x230x160xbf16> to vector<230x160xbf16>
    %cst_38 = arith.constant dense<0.000000e+00> : vector<128x160xf32>
    %71 = tpu.matmul %68, %70, %cst_38 {dimension_numbers = #tpu.dot_dimension_numbers<[1], [0], [0], [1], [0, 0, 1, 1], [], []>} : vector<128x230xbf16>, vector<230x160xbf16>, vector<128x160xf32> -> vector<128x160xf32>
    %72 = arith.addf %66, %71 : vector<128x160xf32>
    %73 = vector.extract_strided_slice %46 {offsets = [4, 0, 0], sizes = [8, 16, 230], strides = [1, 1, 1]} : vector<12x16x230xbf16> to vector<8x16x230xbf16>
    %74 = vector.shape_cast %73 : vector<8x16x230xbf16> to vector<128x230xbf16>
    %c4_39 = arith.constant 4 : index
    %c0_40 = arith.constant 0 : index
    %c0_41 = arith.constant 0 : index
    %75 = vector.load %arg4[%c4_39, %c0_40, %c0_41] : memref<5x230x160xbf16, #tpu.memory_space<vmem>>, vector<1x230x160xbf16>
    %76 = vector.shape_cast %75 : vector<1x230x160xbf16> to vector<230x160xbf16>
    %cst_42 = arith.constant dense<0.000000e+00> : vector<128x160xf32>
    %77 = tpu.matmul %74, %76, %cst_42 {dimension_numbers = #tpu.dot_dimension_numbers<[1], [0], [0], [1], [0, 0, 1, 1], [], []>} : vector<128x230xbf16>, vector<230x160xbf16>, vector<128x160xf32> -> vector<128x160xf32>
    %78 = arith.addf %72, %77 : vector<128x160xf32>
    %79 = vector.shape_cast %78 : vector<128x160xf32> to vector<4x2x16x160xf32>
    %80 = vector.extract_strided_slice %79 {offsets = [0, 0, 0, 0], sizes = [4, 1, 16, 160], strides = [1, 1, 1, 1]} : vector<4x2x16x160xf32> to vector<4x1x16x160xf32>
    %81 = vector.shape_cast %80 : vector<4x1x16x160xf32> to vector<4x16x160xf32>
    %82 = vector.extract_strided_slice %79 {offsets = [0, 1, 0, 0], sizes = [4, 1, 16, 160], strides = [1, 1, 1, 1]} : vector<4x2x16x160xf32> to vector<4x1x16x160xf32>
    %83 = vector.shape_cast %82 : vector<4x1x16x160xf32> to vector<4x16x160xf32>
    %84 = arith.maximumf %81, %83 : vector<4x16x160xf32>
    %85 = vector.extract_strided_slice %84 {offsets = [0, 0, 0], sizes = [4, 16, 140], strides = [1, 1, 1]} : vector<4x16x160xf32> to vector<4x16x140xf32>
    %86 = vector.extract_strided_slice %84 {offsets = [0, 0, 20], sizes = [4, 16, 140], strides = [1, 1, 1]} : vector<4x16x160xf32> to vector<4x16x140xf32>
    %87 = arith.maximumf %85, %86 : vector<4x16x140xf32>
    %cst_43 = arith.constant 0.000000e+00 : f32
    %88 = vector.broadcast %cst_43 : f32 to vector<4x16x140xf32>
    %89 = arith.maximumf %87, %88 : vector<4x16x140xf32>
    %90 = arith.truncf %89 : vector<4x16x140xf32> to vector<4x16x140xbf16>
    %91 = vector.extract_strided_slice %90 {offsets = [0, 0, 0], sizes = [1, 16, 140], strides = [1, 1, 1]} : vector<4x16x140xbf16> to vector<1x16x140xbf16>
    %92 = vector.shape_cast %91 : vector<1x16x140xbf16> to vector<16x140xbf16>
    %c0_44 = arith.constant 0 : index
    %c0_45 = arith.constant 0 : index
    %c0_46 = arith.constant 0 : index
    %93 = vector.load %arg6[%c0_44, %c0_45, %c0_46] : memref<4x140x50xbf16, #tpu.memory_space<vmem>>, vector<1x140x50xbf16>
    %94 = vector.shape_cast %93 : vector<1x140x50xbf16> to vector<140x50xbf16>
    %cst_47 = arith.constant dense<0.000000e+00> : vector<16x50xf32>
    %95 = tpu.matmul %92, %94, %cst_47 {dimension_numbers = #tpu.dot_dimension_numbers<[1], [0], [0], [1], [0, 0, 1, 1], [], []>} : vector<16x140xbf16>, vector<140x50xbf16>, vector<16x50xf32> -> vector<16x50xf32>
    %c0_48 = arith.constant 0 : index
    %c0_49 = arith.constant 0 : index
    %96 = vector.load %arg7[%c0_48, %c0_49] : memref<1x50xf32, #tpu.memory_space<vmem>>, vector<1x50xf32>
    %97 = vector.broadcast %96 : vector<1x50xf32> to vector<16x50xf32>
    %98 = arith.addf %95, %97 : vector<16x50xf32>
    %99 = vector.extract_strided_slice %90 {offsets = [1, 0, 0], sizes = [1, 16, 140], strides = [1, 1, 1]} : vector<4x16x140xbf16> to vector<1x16x140xbf16>
    %100 = vector.shape_cast %99 : vector<1x16x140xbf16> to vector<16x140xbf16>
    %c1_50 = arith.constant 1 : index
    %c0_51 = arith.constant 0 : index
    %c0_52 = arith.constant 0 : index
    %101 = vector.load %arg6[%c1_50, %c0_51, %c0_52] : memref<4x140x50xbf16, #tpu.memory_space<vmem>>, vector<1x140x50xbf16>
    %102 = vector.shape_cast %101 : vector<1x140x50xbf16> to vector<140x50xbf16>
    %cst_53 = arith.constant dense<0.000000e+00> : vector<16x50xf32>
    %103 = tpu.matmul %100, %102, %cst_53 {dimension_numbers = #tpu.dot_dimension_numbers<[1], [0], [0], [1], [0, 0, 1, 1], [], []>} : vector<16x140xbf16>, vector<140x50xbf16>, vector<16x50xf32> -> vector<16x50xf32>
    %104 = arith.addf %98, %103 : vector<16x50xf32>
    %105 = vector.extract_strided_slice %90 {offsets = [2, 0, 0], sizes = [1, 16, 140], strides = [1, 1, 1]} : vector<4x16x140xbf16> to vector<1x16x140xbf16>
    %106 = vector.shape_cast %105 : vector<1x16x140xbf16> to vector<16x140xbf16>
    %c2_54 = arith.constant 2 : index
    %c0_55 = arith.constant 0 : index
    %c0_56 = arith.constant 0 : index
    %107 = vector.load %arg6[%c2_54, %c0_55, %c0_56] : memref<4x140x50xbf16, #tpu.memory_space<vmem>>, vector<1x140x50xbf16>
    %108 = vector.shape_cast %107 : vector<1x140x50xbf16> to vector<140x50xbf16>
    %cst_57 = arith.constant dense<0.000000e+00> : vector<16x50xf32>
    %109 = tpu.matmul %106, %108, %cst_57 {dimension_numbers = #tpu.dot_dimension_numbers<[1], [0], [0], [1], [0, 0, 1, 1], [], []>} : vector<16x140xbf16>, vector<140x50xbf16>, vector<16x50xf32> -> vector<16x50xf32>
    %110 = arith.addf %104, %109 : vector<16x50xf32>
    %111 = vector.extract_strided_slice %90 {offsets = [3, 0, 0], sizes = [1, 16, 140], strides = [1, 1, 1]} : vector<4x16x140xbf16> to vector<1x16x140xbf16>
    %112 = vector.shape_cast %111 : vector<1x16x140xbf16> to vector<16x140xbf16>
    %c3_58 = arith.constant 3 : index
    %c0_59 = arith.constant 0 : index
    %c0_60 = arith.constant 0 : index
    %113 = vector.load %arg6[%c3_58, %c0_59, %c0_60] : memref<4x140x50xbf16, #tpu.memory_space<vmem>>, vector<1x140x50xbf16>
    %114 = vector.shape_cast %113 : vector<1x140x50xbf16> to vector<140x50xbf16>
    %cst_61 = arith.constant dense<0.000000e+00> : vector<16x50xf32>
    %115 = tpu.matmul %112, %114, %cst_61 {dimension_numbers = #tpu.dot_dimension_numbers<[1], [0], [0], [1], [0, 0, 1, 1], [], []>} : vector<16x140xbf16>, vector<140x50xbf16>, vector<16x50xf32> -> vector<16x50xf32>
    %116 = arith.addf %110, %115 : vector<16x50xf32>
    %cst_62 = arith.constant 0.000000e+00 : f32
    %117 = vector.broadcast %cst_62 : f32 to vector<16x50xf32>
    %118 = arith.maximumf %116, %117 : vector<16x50xf32>
    %119 = arith.truncf %118 : vector<16x50xf32> to vector<16x50xbf16>
    %c0_63 = arith.constant 0 : index
    %c0_64 = arith.constant 0 : index
    %120 = vector.load %arg8[%c0_63, %c0_64] : memref<50x128xbf16, #tpu.memory_space<vmem>>, vector<50x128xbf16>
    %cst_65 = arith.constant dense<0.000000e+00> : vector<16x128xf32>
    %121 = tpu.matmul %119, %120, %cst_65 {dimension_numbers = #tpu.dot_dimension_numbers<[1], [0], [0], [1], [0, 0, 1, 1], [], []>} : vector<16x50xbf16>, vector<50x128xbf16>, vector<16x128xf32> -> vector<16x128xf32>
    %c0_66 = arith.constant 0 : index
    %c0_67 = arith.constant 0 : index
    %122 = vector.load %arg9[%c0_66, %c0_67] : memref<1x128xf32, #tpu.memory_space<vmem>>, vector<1x128xf32>
    %123 = vector.broadcast %122 : vector<1x128xf32> to vector<16x128xf32>
    %124 = arith.addf %121, %123 : vector<16x128xf32>
    %cst_68 = arith.constant dense<0xFF800000> : vector<16xf32>
    %125 = vector.multi_reduction <maximumf>, %124, %cst_68 [1] : vector<16x128xf32> to vector<16xf32>
    %126 = vector.shape_cast %125 : vector<16xf32> to vector<16x1xf32>
    %127 = vector.broadcast %126 : vector<16x1xf32> to vector<16x128xf32>
    %128 = arith.subf %124, %127 : vector<16x128xf32>
    %129 = math.exp %128 : vector<16x128xf32>
    %cst_69 = arith.constant dense<0.000000e+00> : vector<16xf32>
    %130 = vector.multi_reduction <add>, %129, %cst_69 [1] : vector<16x128xf32> to vector<16xf32>
    %131 = vector.shape_cast %130 : vector<16xf32> to vector<16x1xf32>
    %132 = math.log %131 : vector<16x1xf32>
    %133 = vector.broadcast %132 : vector<16x1xf32> to vector<16x128xf32>
    %134 = arith.subf %128, %133 : vector<16x128xf32>
    %c0_70 = arith.constant 0 : index
    %c0_71 = arith.constant 0 : index
    %135 = vector.load %arg10[%c0_70, %c0_71] : memref<16x128xf32, #tpu.memory_space<vmem>>, vector<16x128xf32>
    tpu.vector_store %arg10[%c0_70, %c0_71], %134 {strides = array<i32>} : memref<16x128xf32, #tpu.memory_space<vmem>>, vector<16x128xf32>,
    return
  }
  func.func @transform_0(%arg0: i32) -> (i32, i32, i32, i32) {
    %c0_i32 = arith.constant 0 : i32
    %c0_i32_0 = arith.constant 0 : i32
    %c0_i32_1 = arith.constant 0 : i32
    %c0_i32_2 = arith.constant 0 : i32
    return %arg0, %c0_i32, %c0_i32_0, %c0_i32_1 : i32, i32, i32, i32
  }
  func.func @transform_1(%arg0: i32) -> (i32, i32, i32) {
    %c0_i32 = arith.constant 0 : i32
    %c0_i32_0 = arith.constant 0 : i32
    %c0_i32_1 = arith.constant 0 : i32
    %c0_i32_2 = arith.constant 0 : i32
    return %c0_i32, %c0_i32_0, %c0_i32_1 : i32, i32, i32
  }
  func.func @transform_2(%arg0: i32) -> (i32, i32) {
    %c0_i32 = arith.constant 0 : i32
    %c0_i32_0 = arith.constant 0 : i32
    %c0_i32_1 = arith.constant 0 : i32
    return %c0_i32, %c0_i32_0 : i32, i32
  }
  func.func @transform_3(%arg0: i32) -> (i32, i32, i32) {
    %c0_i32 = arith.constant 0 : i32
    %c0_i32_0 = arith.constant 0 : i32
    %c0_i32_1 = arith.constant 0 : i32
    %c0_i32_2 = arith.constant 0 : i32
    return %c0_i32, %c0_i32_0, %c0_i32_1 : i32, i32, i32
  }
  func.func @transform_4(%arg0: i32) -> (i32, i32) {
    %c0_i32 = arith.constant 0 : i32
    %c0_i32_0 = arith.constant 0 : i32
    %c0_i32_1 = arith.constant 0 : i32
    return %c0_i32, %c0_i32_0 : i32, i32
  }
  func.func @transform_5(%arg0: i32) -> (i32, i32, i32) {
    %c0_i32 = arith.constant 0 : i32
    %c0_i32_0 = arith.constant 0 : i32
    %c0_i32_1 = arith.constant 0 : i32
    %c0_i32_2 = arith.constant 0 : i32
    return %c0_i32, %c0_i32_0, %c0_i32_1 : i32, i32, i32
  }
  func.func @transform_6(%arg0: i32) -> (i32, i32) {
    %c0_i32 = arith.constant 0 : i32
    %c0_i32_0 = arith.constant 0 : i32
    %c0_i32_1 = arith.constant 0 : i32
    return %c0_i32, %c0_i32_0 : i32, i32
  }
  func.func @transform_7(%arg0: i32) -> (i32, i32) {
    %c0_i32 = arith.constant 0 : i32
    %c0_i32_0 = arith.constant 0 : i32
    %c0_i32_1 = arith.constant 0 : i32
    return %c0_i32, %c0_i32_0 : i32, i32
  }
  func.func @transform_8(%arg0: i32) -> (i32, i32) {
    %c0_i32 = arith.constant 0 : i32
    %c0_i32_0 = arith.constant 0 : i32
    %c0_i32_1 = arith.constant 0 : i32
    return %c0_i32, %c0_i32_0 : i32, i32
  }
  func.func @transform_9(%arg0: i32) -> (i32, i32) {
    %c0_i32 = arith.constant 0 : i32
    %c0_i32_0 = arith.constant 0 : i32
    return %arg0, %c0_i32 : i32, i32
  }
}

</mosaic_0001>

<bundles_post_ra>
// kernel: net_forward.1
= control target key start
LH: loop header
LB: loop body
LE: loop exit
PB: predicated region body
PF: predicated region fallthrough
CT: control target
= control target key end

     0   :  { %v8843_v1 = vmov 0   ;;  %vm224_vm0 = vcmask 1045504   ;;  %vm151_vm1 = vcmask 228352   ;;  %vm2704_vm2 = vcmask 1042432   ;;  %s6583_s26 = smov 118   ;;  %s8833_s1 = inlined_call_operand.vmem [shape: bf16[5,28,240], index: 1, kind: input, shape index: {}]   ;;  %s8834_s0 = inlined_call_operand.vmem [shape: f32[1,28,16,28], index: 0, kind: input, shape index: {}]   ;;  %s8835_s3 = inlined_call_operand.vmem [shape: bf16[5,230,160], index: 3, kind: input, shape index: {}]   ;;  %s8836_s2 = inlined_call_operand.vmem [shape: f32[1,240], index: 2, kind: input, shape index: {}]   ;;  %s8837_s5 = inlined_call_operand.vmem [shape: bf16[4,140,50], index: 5, kind: input, shape index: {}]   ;;  %s8838_s4 = inlined_call_operand.vmem [shape: f32[1,160], index: 4, kind: input, shape index: {}]   ;;  %s8839_s7 = inlined_call_operand.vmem [shape: bf16[50,128], index: 7, kind: input, shape index: {}]   ;;  %s8840_s6 = inlined_call_operand.vmem [shape: f32[1,50], index: 6, kind: input, shape index: {}]   ;;  %s8841_s8 = inlined_call_operand.vmem [shape: f32[1,128], index: 8, kind: input, shape index: {}]   ;;  %s8842_s9 = inlined_call_operand.vmem [shape: f32[16,128], index: 9, kind: output, shape index: {}]  }
   0x1   :  { %v6640_v0 = vld [vmem:[%s8833_s1 + $0x24] ss:$8 sps:$4 sm:$0xff]   ;;  %568 = vmatprep.mubr.bf16.mxu0 %v8843_v1  ;;  %263 = vmatprep.mubr.bf16.mxu1 %v8843_v1  ;;  %v6647_v2 = vld [vmem:[%s8833_s1 + $0x20] ss:$8 sps:$4 sm:$0xff]   ;;  %v35_v5 = vld [vmem:[%s8834_s0 + $0x10] sm:$0xff]  ;;  %vm2300_vm3 = vcmask 965632  }
   0x2   :  { %536 = vmatprep.subr.bf16.mxu0 %v6640_v0  ;;  %v6653_v3 = vld [vmem:[%s8833_s1 + $0x34] ss:$8 sps:$4 sm:$0x3f]   ;;  %v6289_v4 = vld [vmem:[%s8833_s1 + $0x30] ss:$8 sps:$4 sm:$0x3f]  }
   0x3   :  { %537 = vmatpush1.bf16.msra.mxu0 %v6647_v2  ;;  %v36_v6 = vld [vmem:[%s8834_s0 + $0x18] sm:$0xff]  ;;  %v6668_v7 = vsel %vm224_vm0, %v6289_v4, 0  ;;  %v6292_v8 = vld [vmem:[%s8833_s1 + $0x44] ss:$8 sps:$4 sm:$0xff]   ;;  %v6290_v10 = vld [vmem:[%s8833_s1 + $0x40] ss:$8 sps:$4 sm:$0xff]  }
   0x4   :  { %4908 = vmatprep.subr.msk.bf16.mxu0 %vm224_vm0, %v6653_v3  ;;  %v6673_v9 = vpack.c.bf16 %v36_v6, %v35_v5  ;;  %v37_v11 = vld [vmem:[%s8834_s0 + $0x20] sm:$0xff]  ;;  %v38_v12 = vld [vmem:[%s8834_s0 + $0x28] sm:$0xff]  ;;  %v6293_v13 = vld [vmem:[%s8833_s1 + $0x54] ss:$8 sps:$4 sm:$0x3f]   ;;  %vm2679_vm4 = vcmask 834560  }
   0x5   :  { %v6295_v14 = vld [vmem:[%s8833_s1 + $0x50] ss:$8 sps:$4 sm:$0x3f]   ;;  %v6696_v16 = vpack.c.bf16 %v38_v12, %v37_v11  ;;  %v6298_v19 = vld [vmem:[%s8833_s1 + $0x64] ss:$8 sps:$4 sm:$0xff]   ;;  %vm4204_vm5 = vcmask 883712  }
   0x6   :  { %v932_v15 = vsel %vm224_vm0, %v6295_v14, 0  ;;  %v39_v17 = vld [vmem:[%s8834_s0 + $0x30] sm:$0xff]  ;;  %v40_v18 = vld [vmem:[%s8834_s0 + $0x38] sm:$0xff]  ;;  %v41_v21 = vld [vmem:[%s8834_s0 + $0x40] sm:$0xff]  ;;  %vm4347_vm6 = vcmask 97280   ;;  %vm4800_vm7 = vcmask 1040384  }
   0x7   :  { %539 = vmatpush1.bf16.msra.mxu0 %v6668_v7  ;;  %v6710_v20 = vpack.c.bf16 %v40_v18, %v39_v17  ;;  %v42_v22 = vld [vmem:[%s8834_s0 + $0x48] sm:$0xff]  ;;  %v43_v24 = vld [vmem:[%s8834_s0 + $0x50] sm:$0xff]  ;;  %v44_v25 = vld [vmem:[%s8834_s0 + $0x58] sm:$0xff]  ;;  %vm6586_vm8 = vmmov 0   ;;  %vm4796_vm9 = vcmask 408576  }
   0x8   :  { %937 = vmatprep.subr.bf16.mxu0 %v6292_v8  ;;  %v6721_v23 = vpack.c.bf16 %v42_v22, %v41_v21  ;;  %v6732_v26 = vpack.c.bf16 %v44_v25, %v43_v24  ;;  %v45_v27 = vld [vmem:[%s8834_s0 + $0x60] sm:$0xff]  ;;  %v46_v28 = vld [vmem:[%s8834_s0 + $0x68] sm:$0xff]  ;;  %v47_v30 = vld [vmem:[%s8834_s0 + $0x70] sm:$0xff] }
   0x9   :  { %v6743_v29 = vpack.c.bf16 %v46_v28, %v45_v27  ;;  %v48_v31 = vld [vmem:[%s8834_s0 + $0x78] sm:$0xff]  ;;  %v49_v33 = vld [vmem:[%s8834_s0 + $0x80] sm:$0xff]  ;;  %v50_v34 = vld [vmem:[%s8834_s0 + $0x88] sm:$0xff] }
   0xa   :  { %4909 = vmatmul.mubr.msk.bf16.vlgmr.msra.gmra.mrb[0].mxu0 %vm151_vm1, %v6673_v9  ;;  %v6754_v32 = vpack.c.bf16 %v48_v31, %v47_v30  ;;  %v6765_v35 = vpack.c.bf16 %v50_v34, %v49_v33  ;;  %v51_v36 = vld [vmem:[%s8834_s0 + $0x90] sm:$0xff]  ;;  %v52_v37 = vld [vmem:[%s8834_s0 + $0x98] sm:$0xff]  ;;  %v53_v39 = vld [vmem:[%s8834_s0 + $0xa0] sm:$0xff] }
   0xb   :  { %938 = vmatpush1.bf16.msra.mxu0 %v6290_v10  ;;  %578 = vmatprep.mubr.bf16.mxu0 %v8843_v1  ;;  %v6776_v38 = vpack.c.bf16 %v52_v37, %v51_v36  ;;  %v54_v40 = vld [vmem:[%s8834_s0 + $0xa8] sm:$0xff]  ;;  %v55_v42 = vld [vmem:[%s8834_s0 + $0xb0] sm:$0xff]  ;;  %v56_v43 = vld [vmem:[%s8834_s0 + $0xb8] sm:$0xff] }
   0xc   :  { %4941 = vmatprep.subr.msk.bf16.mxu0 %vm224_vm0, %v6293_v13  ;;  %v6787_v41 = vpack.c.bf16 %v54_v40, %v53_v39  ;;  %v6798_v44 = vpack.c.bf16 %v56_v43, %v55_v42  ;;  %v57_v45 = vld [vmem:[%s8834_s0 + $0xc0] sm:$0xff]  ;;  %v58_v46 = vld [vmem:[%s8834_s0 + $0xc8] sm:$0xff]  ;;  %v59_v48 = vld [vmem:[%s8834_s0 + $0xd0] sm:$0xff] }
   0xd   :  { %v6809_v47 = vpack.c.bf16 %v58_v46, %v57_v45  ;;  %v60_v49 = vld [vmem:[%s8834_s0 + $0xd8] sm:$0xff]  ;;  %v61_v51 = vld [vmem:[%s8834_s0 + $0xe0] sm:$0xff]  ;;  %v62_v52 = vld [vmem:[%s8834_s0 + $0xe8] sm:$0xff] }
   0xe   :  { %v6820_v50 = vpack.c.bf16 %v60_v49, %v59_v48  ;;  %v6831_v53 = vpack.c.bf16 %v62_v52, %v61_v51  ;;  %v63_v54 = vld [vmem:[%s8834_s0 + $0xf0] sm:$0xff]  ;;  %v64_v55 = vld [vmem:[%s8834_s0 + $0xf8] sm:$0xff]  ;;  %v65_v57 = vld [vmem:[%s8834_s0 + $0x100] sm:$0xff] }
   0xf   :  { %940 = vmatpush1.bf16.msra.mxu0 %v932_v15  ;;  %v6842_v56 = vpack.c.bf16 %v64_v55, %v63_v54  ;;  %v66_v58 = vld [vmem:[%s8834_s0 + $0x108] sm:$0xff]  ;;  %v67_v60 = vld [vmem:[%s8834_s0 + $0x110] sm:$0xff]  ;;  %v68_v61 = vld [vmem:[%s8834_s0 + $0x118] sm:$0xff] }
  0x10   :  { %1338 = vmatprep.subr.bf16.mxu0 %v6298_v19  ;;  %v6853_v59 = vpack.c.bf16 %v66_v58, %v65_v57  ;;  %v6864_v62 = vpack.c.bf16 %v68_v61, %v67_v60  ;;  %v6296_v63 = vld [vmem:[%s8833_s1 + $0x60] ss:$8 sps:$4 sm:$0xff]   ;;  %v6299_v4 = vld [vmem:[%s8833_s1 + $0x74] ss:$8 sps:$4 sm:$0x3f]  }
  0x11   :  { %v6301_v5 = vld [vmem:[%s8833_s1 + $0x70] ss:$8 sps:$4 sm:$0x3f]   ;;  %v6304_v8 = vld [vmem:[%s8833_s1 + $0x84] ss:$8 sps:$4 sm:$0xff]  }
  0x12   :  { %4910 = vmatmul.mubr.msk.bf16.gmra.mrb[4].mxu0 %vm151_vm1, %v6696_v16  ;;  %v1333_v6 = vsel %vm224_vm0, %v6301_v5, 0  ;;  %v69_v10 = vld [vmem:[%s8834_s0 + $0x120] sm:$0xff]  ;;  %v70_v11 = vld [vmem:[%s8834_s0 + $0x128] sm:$0xff]  ;;  %v71_v13 = vld [vmem:[%s8834_s0 + $0x130] sm:$0xff] }
  0x13   :  { %588 = vmatprep.mubr.bf16.mxu0 %v8843_v1  ;;  %v6937_v12 = vpack.c.bf16 %v70_v11, %v69_v10  ;;  %v72_v14 = vld [vmem:[%s8834_s0 + $0x138] sm:$0xff]  ;;  %v73_v17 = vld [vmem:[%s8834_s0 + $0x140] sm:$0xff]  ;;  %v74_v18 = vld [vmem:[%s8834_s0 + $0x148] sm:$0xff] }
  0x14   :  { %v6948_v15 = vpack.c.bf16 %v72_v14, %v71_v13  ;;  %v6959_v19 = vpack.c.bf16 %v74_v18, %v73_v17  ;;  %v75_v21 = vld [vmem:[%s8834_s0 + $0x150] sm:$0xff]  ;;  %v76_v22 = vld [vmem:[%s8834_s0 + $0x158] sm:$0xff]  ;;  %v77_v25 = vld [vmem:[%s8834_s0 + $0x160] sm:$0xff] }
  0x15   :  { %v6970_v24 = vpack.c.bf16 %v76_v22, %v75_v21  ;;  %v78_v27 = vld [vmem:[%s8834_s0 + $0x168] sm:$0xff]  ;;  %v79_v30 = vld [vmem:[%s8834_s0 + $0x170] sm:$0xff]  ;;  %v80_v31 = vld [vmem:[%s8834_s0 + $0x178] sm:$0xff] }
  0x16   :  { %v6981_v28 = vpack.c.bf16 %v78_v27, %v77_v25  ;;  %v6992_v33 = vpack.c.bf16 %v80_v31, %v79_v30  ;;  %v81_v34 = vld [vmem:[%s8834_s0 + $0x180] sm:$0xff]  ;;  %v82_v36 = vld [vmem:[%s8834_s0 + $0x188] sm:$0xff]  ;;  %v83_v42 = vld [vmem:[%s8834_s0 + $0x190] sm:$0xff] }
  0x17   :  { %v7003_v37 = vpack.c.bf16 %v82_v36, %v81_v34  ;;  %v6308_v39 = vld [vmem:[%s8833_s1 + $0x4] ss:$8 sps:$4 sm:$0xff]   ;;  %v6310_v40 = vld [vmem:[%s8833_s1] ss:$8 sps:$4 sm:$0xff]   ;;  %v84_v43 = vld [vmem:[%s8834_s0 + $0x198] sm:$0xff] }
  0x18   :  { %v6311_v45 = vld [vmem:[%s8833_s1 + $0x14] ss:$8 sps:$4 sm:$0x3f]   ;;  %231 = vmatprep.subr.bf16.mxu1 %v6308_v39  ;;  %v7023_v46 = vpack.c.bf16 %v84_v43, %v83_v42  ;;  %v6313_v48 = vld [vmem:[%s8833_s1 + $0x10] ss:$8 sps:$4 sm:$0x3f]  }
  0x19   :  { %232 = vmatpush1.bf16.msra.mxu1 %v6310_v40  ;;  %v226_v49 = vsel %vm224_vm0, %v6313_v48, 0  ;;  %v33_v51 = vld [vmem:[%s8834_s0] sm:$0xff]  ;;  %v34_v52 = vld [vmem:[%s8834_s0 + $0x8] sm:$0xff]  ;;  %v6305_v57 = vld [vmem:[%s8833_s1 + $0x94] ss:$8 sps:$4 sm:$0x3f]  }
  0x1a   :  { %4911 = vmatmul.mubr.msk.bf16.gmra.mrb[8].mxu0 %vm151_vm1, %v6710_v20  ;;  %4875 = vmatprep.subr.msk.bf16.mxu1 %vm224_vm0, %v6311_v45  ;;  %v89_v54 = vpack.c.bf16 %v34_v52, %v33_v51  ;;  %v6302_v55 = vld [vmem:[%s8833_s1 + $0x80] ss:$8 sps:$4 sm:$0xff]  }
  0x1b   :  { %598 = vmatprep.mubr.bf16.mxu0 %v8843_v1 }
  0x1d   :  { %234 = vmatpush1.bf16.msra.mxu1 %v226_v49  ;;  %v6314_v49 = vld [vmem:[%s8835_s3] ss:$8 sps:$4 sm:$0xff]  }
  0x1e   :  { %5461 = vmatprep.subr.bf16.mxu1 %v6640_v0  ;;  %v6307_v0 = vld [vmem:[%s8833_s1 + $0x90] ss:$8 sps:$4 sm:$0x3f]  }
  0x20   :  { %4876 = vmatmul.mubr.msk.bf16.vlgmr.msra.gmra.mrb[0].mxu1 %vm151_vm1, %v89_v54  ;;  %v6319_v54 = vld [vmem:[%s8835_s3 + $0x14] ss:$8 sps:$4 sm:$0xff]  }
  0x21   :  { %273 = vmatprep.mubr.bf16.mxu1 %v8843_v1  ;;  %5463 = vmatpush1.bf16.msra.mxu1 %v6647_v2  ;;  %v1734_v2 = vsel %vm224_vm0, %v6307_v0, 0  ;;  %v6320_v0 = vld [vmem:[%s8835_s3 + $0x20] ss:$8 sps:$4 sm:$0xff]  }
  0x22   :  { %4912 = vmatmul.mubr.msk.bf16.gmra.mrb[12].mxu0 %vm151_vm1, %v6721_v23  ;;  %5462 = vmatprep.subr.msk.bf16.mxu1 %vm224_vm0, %v6653_v3  ;;  %v85_v3 = vld [vmem:[%s8834_s0 + $0x1a0] sm:$0xff] }
  0x23   :  { %608 = vmatprep.mubr.bf16.mxu0 %v8843_v1 }
  0x25   :  { %5464 = vmatpush1.bf16.msra.mxu1 %v6668_v7  ;;  %v86_v7 = vld [vmem:[%s8834_s0 + $0x1a8] sm:$0xff] }
  0x28   :  { %4877 = vmatmul.mubr.msk.bf16.gmra.mrb[4].mxu1 %vm151_vm1, %v6673_v9  ;;  %v7200_v9 = vpack.c.bf16 %v86_v7, %v85_v3  ;;  %v88_v3 = vld [vmem:[%s8834_s0 + $0x1b8] sm:$0xff] }
  0x29   :  { %283 = vmatprep.mubr.bf16.mxu1 %v8843_v1 }
  0x2a   :  { %4913 = vmatmul.mubr.msk.bf16.gmra.mrb[16].mxu0 %vm151_vm1, %v6732_v26 }
  0x2b   :  { %618 = vmatprep.mubr.bf16.mxu0 %v8843_v1 }
  0x30   :  { %4878 = vmatmul.mubr.msk.bf16.gmra.mrb[8].mxu1 %vm151_vm1, %v6696_v16 }
  0x31   :  { %293 = vmatprep.mubr.bf16.mxu1 %v8843_v1 }
  0x32   :  { %4914 = vmatmul.mubr.msk.bf16.gmra.mrb[20].mxu0 %vm151_vm1, %v6743_v29 }
  0x33   :  { %628 = vmatprep.mubr.bf16.mxu0 %v8843_v1 }
  0x38   :  { %4879 = vmatmul.mubr.msk.bf16.gmra.mrb[12].mxu1 %vm151_vm1, %v6710_v20 }
  0x39   :  { %303 = vmatprep.mubr.bf16.mxu1 %v8843_v1 }
  0x3a   :  { %4915 = vmatmul.mubr.msk.bf16.gmra.mrb[24].mxu0 %vm151_vm1, %v6754_v32 }
  0x3b   :  { %638 = vmatprep.mubr.bf16.mxu0 %v8843_v1 }
  0x40   :  { %4880 = vmatmul.mubr.msk.bf16.gmra.mrb[16].mxu1 %vm151_vm1, %v6721_v23 }
  0x41   :  { %313 = vmatprep.mubr.bf16.mxu1 %v8843_v1 }
  0x42   :  { %4916 = vmatmul.mubr.msk.bf16.gmra.mrb[28].mxu0 %vm151_vm1, %v6765_v35 }
  0x43   :  { %648 = vmatprep.mubr.bf16.mxu0 %v8843_v1 }
  0x48   :  { %4881 = vmatmul.mubr.msk.bf16.gmra.mrb[20].mxu1 %vm151_vm1, %v6732_v26 }
  0x49   :  { %323 = vmatprep.mubr.bf16.mxu1 %v8843_v1 }
  0x4a   :  { %4917 = vmatmul.mubr.msk.bf16.gmra.mrb[32].mxu0 %vm151_vm1, %v6776_v38 }
  0x4b   :  { %658 = vmatprep.mubr.bf16.mxu0 %v8843_v1 }
  0x50   :  { %4882 = vmatmul.mubr.msk.bf16.gmra.mrb[24].mxu1 %vm151_vm1, %v6743_v29 }
  0x51   :  { %333 = vmatprep.mubr.bf16.mxu1 %v8843_v1 }
  0x52   :  { %4918 = vmatmul.mubr.msk.bf16.gmra.mrb[36].mxu0 %vm151_vm1, %v6787_v41 }
  0x53   :  { %668 = vmatprep.mubr.bf16.mxu0 %v8843_v1 }
  0x58   :  { %4883 = vmatmul.mubr.msk.bf16.gmra.mrb[28].mxu1 %vm151_vm1, %v6754_v32 }
  0x59   :  { %343 = vmatprep.mubr.bf16.mxu1 %v8843_v1 }
  0x5a   :  { %4919 = vmatmul.mubr.msk.bf16.gmra.mrb[40].mxu0 %vm151_vm1, %v6798_v44 }
  0x5b   :  { %678 = vmatprep.mubr.bf16.mxu0 %v8843_v1 }
  0x60   :  { %4884 = vmatmul.mubr.msk.bf16.gmra.mrb[32].mxu1 %vm151_vm1, %v6765_v35 }
  0x61   :  { %353 = vmatprep.mubr.bf16.mxu1 %v8843_v1 }
  0x62   :  { %4920 = vmatmul.mubr.msk.bf16.gmra.mrb[44].mxu0 %vm151_vm1, %v6809_v47 }
  0x63   :  { %688 = vmatprep.mubr.bf16.mxu0 %v8843_v1 }
  0x68   :  { %4885 = vmatmul.mubr.msk.bf16.gmra.mrb[36].mxu1 %vm151_vm1, %v6776_v38 }
  0x69   :  { %363 = vmatprep.mubr.bf16.mxu1 %v8843_v1 }
  0x6a   :  { %4921 = vmatmul.mubr.msk.bf16.gmra.mrb[48].mxu0 %vm151_vm1, %v6820_v50 }
  0x6b   :  { %698 = vmatprep.mubr.bf16.mxu0 %v8843_v1 }
  0x70   :  { %4886 = vmatmul.mubr.msk.bf16.gmra.mrb[40].mxu1 %vm151_vm1, %v6787_v41 }
  0x71   :  { %373 = vmatprep.mubr.bf16.mxu1 %v8843_v1 }
  0x72   :  { %4922 = vmatmul.mubr.msk.bf16.gmra.mrb[52].mxu0 %vm151_vm1, %v6831_v53 }
  0x73   :  { %708 = vmatprep.mubr.bf16.mxu0 %v8843_v1 }
  0x78   :  { %4887 = vmatmul.mubr.msk.bf16.gmra.mrb[44].mxu1 %vm151_vm1, %v6798_v44 }
  0x79   :  { %383 = vmatprep.mubr.bf16.mxu1 %v8843_v1 }
  0x7a   :  { %4923 = vmatmul.mubr.msk.bf16.gmra.mrb[56].mxu0 %vm151_vm1, %v6842_v56 }
  0x7b   :  { %718 = vmatprep.mubr.bf16.mxu0 %v8843_v1 }
  0x80   :  { %4888 = vmatmul.mubr.msk.bf16.gmra.mrb[48].mxu1 %vm151_vm1, %v6809_v47 }
  0x81   :  { %393 = vmatprep.mubr.bf16.mxu1 %v8843_v1 }
  0x82   :  { %4924 = vmatmul.mubr.msk.bf16.gmra.mrb[60].mxu0 %vm151_vm1, %v6853_v59 }
  0x83   :  { %728 = vmatprep.mubr.bf16.mxu0 %v8843_v1 }
  0x88   :  { %4889 = vmatmul.mubr.msk.bf16.gmra.mrb[52].mxu1 %vm151_vm1, %v6820_v50 }
  0x89   :  { %403 = vmatprep.mubr.bf16.mxu1 %v8843_v1 }
  0x8a   :  { %4925 = vmatmul.mubr.msk.bf16.gmra.mrb[64].mxu0 %vm151_vm1, %v6864_v62 }
  0x8b   :  { %969 = vmatprep.mubr.bf16.mxu0 %v8843_v1 }
  0x90   :  { %4890 = vmatmul.mubr.msk.bf16.gmra.mrb[56].mxu1 %vm151_vm1, %v6831_v53 }
  0x91   :  { %413 = vmatprep.mubr.bf16.mxu1 %v8843_v1 }
  0x92   :  { %4942 = vmatmul.mubr.msk.bf16.vlgmr.msra.gmra.mrb[0].mxu0 %vm151_vm1, %v6696_v16 }
  0x93   :  { %1339 = vmatpush1.bf16.msra.mxu0 %v6296_v63  ;;  %979 = vmatprep.mubr.bf16.mxu0 %v8843_v1 }
  0x94   :  { %4974 = vmatprep.subr.msk.bf16.mxu0 %vm224_vm0, %v6299_v4 }
  0x97   :  { %1341 = vmatpush1.bf16.msra.mxu0 %v1333_v6 }
  0x98   :  { %1739 = vmatprep.subr.bf16.mxu0 %v6304_v8  ;;  %4891 = vmatmul.mubr.msk.bf16.gmra.mrb[60].mxu1 %vm151_vm1, %v6842_v56 }
  0x99   :  { %423 = vmatprep.mubr.bf16.mxu1 %v8843_v1 }
  0x9a   :  { %4943 = vmatmul.mubr.msk.bf16.gmra.mrb[4].mxu0 %vm151_vm1, %v6710_v20 }
  0x9b   :  { %989 = vmatprep.mubr.bf16.mxu0 %v8843_v1 }
  0xa0   :  { %4892 = vmatmul.mubr.msk.bf16.gmra.mrb[64].mxu1 %vm151_vm1, %v6853_v59 }
  0xa1   :  { %433 = vmatprep.mubr.bf16.mxu1 %v8843_v1 }
  0xa2   :  { %4944 = vmatmul.mubr.msk.bf16.gmra.mrb[8].mxu0 %vm151_vm1, %v6721_v23 }
  0xa3   :  { %999 = vmatprep.mubr.bf16.mxu0 %v8843_v1 }
  0xa8   :  { %4893 = vmatmul.mubr.msk.bf16.gmra.mrb[68].mxu1 %vm151_vm1, %v6864_v62 }
  0xa9   :  { %443 = vmatprep.mubr.bf16.mxu1 %v8843_v1 }
  0xaa   :  { %4945 = vmatmul.mubr.msk.bf16.gmra.mrb[12].mxu0 %vm151_vm1, %v6732_v26 }
  0xab   :  { %1009 = vmatprep.mubr.bf16.mxu0 %v8843_v1 }
  0xb0   :  { %4894 = vmatmul.mubr.msk.bf16.gmra.mrb[72].mxu1 %vm151_vm1, %v6937_v12 }
  0xb1   :  { %453 = vmatprep.mubr.bf16.mxu1 %v8843_v1 }
  0xb2   :  { %4946 = vmatmul.mubr.msk.bf16.gmra.mrb[16].mxu0 %vm151_vm1, %v6743_v29 }
  0xb3   :  { %1019 = vmatprep.mubr.bf16.mxu0 %v8843_v1 }
  0xb8   :  { %4895 = vmatmul.mubr.msk.bf16.gmra.mrb[76].mxu1 %vm151_vm1, %v6948_v15 }
  0xb9   :  { %463 = vmatprep.mubr.bf16.mxu1 %v8843_v1 }
  0xba   :  { %4947 = vmatmul.mubr.msk.bf16.gmra.mrb[20].mxu0 %vm151_vm1, %v6754_v32 }
  0xbb   :  { %1029 = vmatprep.mubr.bf16.mxu0 %v8843_v1 }
  0xc0   :  { %4896 = vmatmul.mubr.msk.bf16.gmra.mrb[80].mxu1 %vm151_vm1, %v6959_v19 }
  0xc1   :  { %473 = vmatprep.mubr.bf16.mxu1 %v8843_v1 }
  0xc2   :  { %4948 = vmatmul.mubr.msk.bf16.gmra.mrb[24].mxu0 %vm151_vm1, %v6765_v35 }
  0xc3   :  { %1039 = vmatprep.mubr.bf16.mxu0 %v8843_v1 }
  0xc8   :  { %4897 = vmatmul.mubr.msk.bf16.gmra.mrb[84].mxu1 %vm151_vm1, %v6970_v24 }
  0xc9   :  { %483 = vmatprep.mubr.bf16.mxu1 %v8843_v1 }
  0xca   :  { %4949 = vmatmul.mubr.msk.bf16.gmra.mrb[28].mxu0 %vm151_vm1, %v6776_v38 }
  0xcb   :  { %1049 = vmatprep.mubr.bf16.mxu0 %v8843_v1 }
  0xd0   :  { %4898 = vmatmul.mubr.msk.bf16.gmra.mrb[88].mxu1 %vm151_vm1, %v6981_v28 }
  0xd1   :  { %493 = vmatprep.mubr.bf16.mxu1 %v8843_v1 }
  0xd2   :  { %4950 = vmatmul.mubr.msk.bf16.gmra.mrb[32].mxu0 %vm151_vm1, %v6787_v41 }
  0xd3   :  { %1059 = vmatprep.mubr.bf16.mxu0 %v8843_v1 }
  0xd8   :  { %4899 = vmatmul.mubr.msk.bf16.gmra.mrb[92].mxu1 %vm151_vm1, %v6992_v33 }
  0xd9   :  { %738 = vmatprep.mubr.bf16.mxu1 %v8843_v1 }
  0xda   :  { %4951 = vmatmul.mubr.msk.bf16.gmra.mrb[36].mxu0 %vm151_vm1, %v6798_v44 }
  0xdb   :  { %1069 = vmatprep.mubr.bf16.mxu0 %v8843_v1 }
  0xe0   :  { %4926 = vmatmul.mubr.msk.bf16.vlgmr.msra.gmra.mrb[68].mxu1 %vm151_vm1, %v6937_v12 }
  0xe1   :  { %748 = vmatprep.mubr.bf16.mxu1 %v8843_v1 }
  0xe2   :  { %4952 = vmatmul.mubr.msk.bf16.gmra.mrb[40].mxu0 %vm151_vm1, %v6809_v47 }
  0xe3   :  { %1079 = vmatprep.mubr.bf16.mxu0 %v8843_v1 }
  0xe8   :  { %4927 = vmatmul.mubr.msk.bf16.gmra.mrb[72].mxu1 %vm151_vm1, %v6948_v15 }
  0xe9   :  { %758 = vmatprep.mubr.bf16.mxu1 %v8843_v1 }
  0xea   :  { %4953 = vmatmul.mubr.msk.bf16.gmra.mrb[44].mxu0 %vm151_vm1, %v6820_v50 }
  0xeb   :  { %1089 = vmatprep.mubr.bf16.mxu0 %v8843_v1 }
  0xf0   :  { %4928 = vmatmul.mubr.msk.bf16.gmra.mrb[76].mxu1 %vm151_vm1, %v6959_v19 }
  0xf1   :  { %768 = vmatprep.mubr.bf16.mxu1 %v8843_v1 }
  0xf2   :  { %4954 = vmatmul.mubr.msk.bf16.gmra.mrb[48].mxu0 %vm151_vm1, %v6831_v53 }
  0xf3   :  { %1099 = vmatprep.mubr.bf16.mxu0 %v8843_v1  ;;  %v7249_v16 = vpop.f32.mrb[0].mxu1 }
  0xf8   :  { %4929 = vmatmul.mubr.msk.bf16.gmra.mrb[80].mxu1 %vm151_vm1, %v6970_v24 }
  0xf9   :  { %778 = vmatprep.mubr.bf16.mxu1 %v8843_v1 }
  0xfa   :  { %4955 = vmatmul.mubr.msk.bf16.gmra.mrb[52].mxu0 %vm151_vm1, %v6842_v56 }
  0xfb   :  { %1109 = vmatprep.mubr.bf16.mxu0 %v8843_v1 }
 0x100   :  { %4930 = vmatmul.mubr.msk.bf16.gmra.mrb[84].mxu1 %vm151_vm1, %v6981_v28 }
 0x101   :  { %788 = vmatprep.mubr.bf16.mxu1 %v8843_v1 }
 0x102   :  { %4956 = vmatmul.mubr.msk.bf16.gmra.mrb[56].mxu0 %vm151_vm1, %v6853_v59 }
 0x103   :  { %1119 = vmatprep.mubr.bf16.mxu0 %v8843_v1 }
 0x108   :  { %4931 = vmatmul.mubr.msk.bf16.gmra.mrb[88].mxu1 %vm151_vm1, %v6992_v33 }
 0x109   :  { %798 = vmatprep.mubr.bf16.mxu1 %v8843_v1 }
 0x10a   :  { %4957 = vmatmul.mubr.msk.bf16.gmra.mrb[60].mxu0 %vm151_vm1, %v6864_v62 }
 0x10b   :  { %1129 = vmatprep.mubr.bf16.mxu0 %v8843_v1 }
 0x110   :  { %4932 = vmatmul.mubr.msk.bf16.gmra.mrb[92].mxu1 %vm151_vm1, %v7003_v37 }
 0x112   :  { %4958 = vmatmul.mubr.msk.bf16.gmra.mrb[64].mxu0 %vm151_vm1, %v6937_v12 }
 0x113   :  { %1139 = vmatprep.mubr.bf16.mxu0 %v8843_v1 }
 0x11a   :  { %4959 = vmatmul.mubr.msk.bf16.gmra.mrb[68].mxu0 %vm151_vm1, %v6948_v15 }
 0x11b   :  { %1149 = vmatprep.mubr.bf16.mxu0 %v8843_v1 }
 0x122   :  { %4960 = vmatmul.mubr.msk.bf16.gmra.mrb[72].mxu0 %vm151_vm1, %v6959_v19 }
 0x123   :  { %1159 = vmatprep.mubr.bf16.mxu0 %v8843_v1 }
 0x12a   :  { %4961 = vmatmul.mubr.msk.bf16.gmra.mrb[76].mxu0 %vm151_vm1, %v6970_v24 }
 0x12b   :  { %1169 = vmatprep.mubr.bf16.mxu0 %v8843_v1 }
 0x132   :  { %4962 = vmatmul.mubr.msk.bf16.gmra.mrb[80].mxu0 %vm151_vm1, %v6981_v28 }
 0x133   :  { %1179 = vmatprep.mubr.bf16.mxu0 %v8843_v1 }
 0x13a   :  { %4963 = vmatmul.mubr.msk.bf16.gmra.mrb[84].mxu0 %vm151_vm1, %v6992_v33 }
 0x13b   :  { %1189 = vmatprep.mubr.bf16.mxu0 %v8843_v1 }
 0x142   :  { %4964 = vmatmul.mubr.msk.bf16.gmra.mrb[88].mxu0 %vm151_vm1, %v7003_v37 }
 0x143   :  { %1199 = vmatprep.mubr.bf16.mxu0 %v8843_v1 }
 0x14a   :  { %4965 = vmatmul.mubr.msk.bf16.gmra.mrb[92].mxu0 %vm151_vm1, %v7023_v46 }
 0x14b   :  { %1370 = vmatprep.mubr.bf16.mxu0 %v8843_v1 }
 0x152   :  { %4975 = vmatmul.mubr.msk.bf16.vlgmr.msra.gmra.mrb[0].mxu0 %vm151_vm1, %v6710_v20  ;;  %v7252_v20 = vpop.f32.mrb[1].mxu1 }
 0x153   :  { %1740 = vmatpush1.bf16.msra.mxu0 %v6302_v55  ;;  %1380 = vmatprep.mubr.bf16.mxu0 %v8843_v1  ;;  %v6317_v55 = vld [vmem:[%s8835_s3 + $0x10] ss:$8 sps:$4 sm:$0xff]  }
 0x154   :  { %5007 = vmatprep.subr.msk.bf16.mxu0 %vm224_vm0, %v6305_v57 }
 0x157   :  { %1742 = vmatpush1.bf16.msra.mxu0 %v1734_v2  ;;  %v87_v2 = vld [vmem:[%s8834_s0 + $0x1b0] sm:$0xff] }
 0x15a   :  { %4976 = vmatmul.mubr.msk.bf16.gmra.mrb[4].mxu0 %vm151_vm1, %v6721_v23 }
 0x15b   :  { %1390 = vmatprep.mubr.bf16.mxu0 %v8843_v1 }
 0x162   :  { %4977 = vmatmul.mubr.msk.bf16.gmra.mrb[8].mxu0 %vm151_vm1, %v6732_v26 }
 0x163   :  { %1400 = vmatprep.mubr.bf16.mxu0 %v8843_v1 }
 0x16a   :  { %4978 = vmatmul.mubr.msk.bf16.gmra.mrb[12].mxu0 %vm151_vm1, %v6743_v29 }
 0x16b   :  { %1410 = vmatprep.mubr.bf16.mxu0 %v8843_v1 }
 0x172   :  { %4979 = vmatmul.mubr.msk.bf16.gmra.mrb[16].mxu0 %vm151_vm1, %v6754_v32 }
 0x173   :  { %1420 = vmatprep.mubr.bf16.mxu0 %v8843_v1 }
 0x17a   :  { %4980 = vmatmul.mubr.msk.bf16.gmra.mrb[20].mxu0 %vm151_vm1, %v6765_v35 }
 0x17b   :  { %1430 = vmatprep.mubr.bf16.mxu0 %v8843_v1 }
 0x182   :  { %4981 = vmatmul.mubr.msk.bf16.gmra.mrb[24].mxu0 %vm151_vm1, %v6776_v38 }
 0x183   :  { %1440 = vmatprep.mubr.bf16.mxu0 %v8843_v1 }
 0x18a   :  { %4982 = vmatmul.mubr.msk.bf16.gmra.mrb[28].mxu0 %vm151_vm1, %v6787_v41 }
 0x18b   :  { %1450 = vmatprep.mubr.bf16.mxu0 %v8843_v1 }
 0x192   :  { %4983 = vmatmul.mubr.msk.bf16.gmra.mrb[32].mxu0 %vm151_vm1, %v6798_v44 }
 0x193   :  { %1460 = vmatprep.mubr.bf16.mxu0 %v8843_v1 }
 0x19a   :  { %4984 = vmatmul.mubr.msk.bf16.gmra.mrb[36].mxu0 %vm151_vm1, %v6809_v47 }
 0x19b   :  { %1470 = vmatprep.mubr.bf16.mxu0 %v8843_v1 }
 0x1a2   :  { %4985 = vmatmul.mubr.msk.bf16.gmra.mrb[40].mxu0 %vm151_vm1, %v6820_v50 }
 0x1a3   :  { %1480 = vmatprep.mubr.bf16.mxu0 %v8843_v1 }
 0x1aa   :  { %4986 = vmatmul.mubr.msk.bf16.gmra.mrb[44].mxu0 %vm151_vm1, %v6831_v53 }
 0x1ab   :  { %1490 = vmatprep.mubr.bf16.mxu0 %v8843_v1 }
 0x1b2   :  { %4987 = vmatmul.mubr.msk.bf16.gmra.mrb[48].mxu0 %vm151_vm1, %v6842_v56 }
 0x1b3   :  { %1500 = vmatprep.mubr.bf16.mxu0 %v8843_v1 }
 0x1ba   :  { %4988 = vmatmul.mubr.msk.bf16.gmra.mrb[52].mxu0 %vm151_vm1, %v6853_v59 }
 0x1bb   :  { %1510 = vmatprep.mubr.bf16.mxu0 %v8843_v1 }
 0x1c2   :  { %4989 = vmatmul.mubr.msk.bf16.gmra.mrb[56].mxu0 %vm151_vm1, %v6864_v62 }
 0x1c3   :  { %1520 = vmatprep.mubr.bf16.mxu0 %v8843_v1 }
 0x1ca   :  { %4990 = vmatmul.mubr.msk.bf16.gmra.mrb[60].mxu0 %vm151_vm1, %v6937_v12 }
 0x1cb   :  { %1530 = vmatprep.mubr.bf16.mxu0 %v8843_v1 }
 0x1d2   :  { %4991 = vmatmul.mubr.msk.bf16.gmra.mrb[64].mxu0 %vm151_vm1, %v6948_v15 }
 0x1d3   :  { %1540 = vmatprep.mubr.bf16.mxu0 %v8843_v1 }
 0x1da   :  { %4992 = vmatmul.mubr.msk.bf16.gmra.mrb[68].mxu0 %vm151_vm1, %v6959_v19 }
 0x1db   :  { %1550 = vmatprep.mubr.bf16.mxu0 %v8843_v1 }
 0x1e2   :  { %4993 = vmatmul.mubr.msk.bf16.gmra.mrb[72].mxu0 %vm151_vm1, %v6970_v24 }
 0x1e3   :  { %1560 = vmatprep.mubr.bf16.mxu0 %v8843_v1 }
 0x1ea   :  { %4994 = vmatmul.mubr.msk.bf16.gmra.mrb[76].mxu0 %vm151_vm1, %v6981_v28 }
 0x1eb   :  { %1570 = vmatprep.mubr.bf16.mxu0 %v8843_v1 }
 0x1f2   :  { %4995 = vmatmul.mubr.msk.bf16.gmra.mrb[80].mxu0 %vm151_vm1, %v6992_v33 }
 0x1f3   :  { %1580 = vmatprep.mubr.bf16.mxu0 %v8843_v1 }
 0x1fa   :  { %4996 = vmatmul.mubr.msk.bf16.gmra.mrb[84].mxu0 %vm151_vm1, %v7003_v37 }
 0x1fb   :  { %1590 = vmatprep.mubr.bf16.mxu0 %v8843_v1 }
 0x202   :  { %4997 = vmatmul.mubr.msk.bf16.gmra.mrb[88].mxu0 %vm151_vm1, %v7023_v46 }
 0x203   :  { %1600 = vmatprep.mubr.bf16.mxu0 %v8843_v1 }
 0x20a   :  { %4998 = vmatmul.mubr.msk.bf16.gmra.mrb[92].mxu0 %vm151_vm1, %v7200_v9 }
 0x20b   :  { %1771 = vmatprep.mubr.bf16.mxu0 %v8843_v1 }
 0x212   :  { %5008 = vmatmul.mubr.msk.bf16.vlgmr.msra.gmra.mrb[0].mxu0 %vm151_vm1, %v6721_v23  ;;  %v7254_v23 = vpop.f32.mrb[2].mxu1 }
 0x213   :  { %1781 = vmatprep.mubr.bf16.mxu0 %v8843_v1 }
 0x21a   :  { %5009 = vmatmul.mubr.msk.bf16.gmra.mrb[4].mxu0 %vm151_vm1, %v6732_v26  ;;  %v7256_v26 = vpop.f32.mrb[3].mxu1 }
 0x21b   :  { %1791 = vmatprep.mubr.bf16.mxu0 %v8843_v1 }
 0x222   :  { %5010 = vmatmul.mubr.msk.bf16.gmra.mrb[8].mxu0 %vm151_vm1, %v6743_v29  ;;  %v7258_v29 = vpop.f32.mrb[4].mxu1 }
 0x223   :  { %1801 = vmatprep.mubr.bf16.mxu0 %v8843_v1 }
 0x22a   :  { %5011 = vmatmul.mubr.msk.bf16.gmra.mrb[12].mxu0 %vm151_vm1, %v6754_v32  ;;  %v7260_v32 = vpop.f32.mrb[5].mxu1 }
 0x22b   :  { %1811 = vmatprep.mubr.bf16.mxu0 %v8843_v1 }
 0x232   :  { %5012 = vmatmul.mubr.msk.bf16.gmra.mrb[16].mxu0 %vm151_vm1, %v6765_v35  ;;  %v7262_v35 = vpop.f32.mrb[6].mxu1 }
 0x233   :  { %1821 = vmatprep.mubr.bf16.mxu0 %v8843_v1 }
 0x23a   :  { %5013 = vmatmul.mubr.msk.bf16.gmra.mrb[20].mxu0 %vm151_vm1, %v6776_v38  ;;  %v7264_v38 = vpop.f32.mrb[7].mxu1 }
 0x23b   :  { %1831 = vmatprep.mubr.bf16.mxu0 %v8843_v1 }
 0x242   :  { %5014 = vmatmul.mubr.msk.bf16.gmra.mrb[24].mxu0 %vm151_vm1, %v6787_v41  ;;  %v7275_v41 = vpop.f32.mrb[8].mxu1 }
 0x243   :  { %1841 = vmatprep.mubr.bf16.mxu0 %v8843_v1 }
 0x24a   :  { %5015 = vmatmul.mubr.msk.bf16.gmra.mrb[28].mxu0 %vm151_vm1, %v6798_v44  ;;  %v7277_v44 = vpop.f32.mrb[9].mxu1 }
 0x24b   :  { %1851 = vmatprep.mubr.bf16.mxu0 %v8843_v1 }
 0x252   :  { %5016 = vmatmul.mubr.msk.bf16.gmra.mrb[32].mxu0 %vm151_vm1, %v6809_v47  ;;  %v7281_v47 = vpop.f32.mrb[10].mxu1 }
 0x253   :  { %1861 = vmatprep.mubr.bf16.mxu0 %v8843_v1  ;;  %v7284_v58 = vpop.f32.mrb[11].mxu1 }
 0x25a   :  { %5017 = vmatmul.mubr.msk.bf16.gmra.mrb[36].mxu0 %vm151_vm1, %v6820_v50  ;;  %v7286_v50 = vpop.f32.mrb[12].mxu1 }
 0x25b   :  { %1871 = vmatprep.mubr.bf16.mxu0 %v8843_v1  ;;  %v7288_v60 = vpop.f32.mrb[13].mxu1 }
 0x262   :  { %5018 = vmatmul.mubr.msk.bf16.gmra.mrb[40].mxu0 %vm151_vm1, %v6831_v53  ;;  %v7292_v53 = vpop.f32.mrb[14].mxu1 }
 0x263   :  { %1881 = vmatprep.mubr.bf16.mxu0 %v8843_v1  ;;  %v7295_v61 = vpop.f32.mrb[15].mxu1 }
 0x26a   :  { %5019 = vmatmul.mubr.msk.bf16.gmra.mrb[44].mxu0 %vm151_vm1, %v6842_v56  ;;  %v7297_v56 = vpop.f32.mrb[16].mxu1 }
 0x26b   :  { %1891 = vmatprep.mubr.bf16.mxu0 %v8843_v1  ;;  %v7299_v63 = vpop.f32.mrb[17].mxu1 }
 0x26c   :  { %v7303_v4 = vpop.f32.mrb[18].mxu1 }
 0x26d   :  { %v7306_v5 = vpop.f32.mrb[19].mxu1 }
 0x272   :  { %5020 = vmatmul.mubr.msk.bf16.gmra.mrb[48].mxu0 %vm151_vm1, %v6853_v59  ;;  %v7308_v59 = vpop.f32.mrb[20].mxu1 }
 0x273   :  { %1901 = vmatprep.mubr.bf16.mxu0 %v8843_v1  ;;  %v7310_v6 = vpop.f32.mrb[21].mxu1 }
 0x274   :  { %v7314_v8 = vpop.f32.mrb[22].mxu1 }
 0x275   :  { %v7317_v10 = vpop.f32.mrb[23].mxu1 }
 0x27a   :  { %5021 = vmatmul.mubr.msk.bf16.gmra.mrb[52].mxu0 %vm151_vm1, %v6864_v62  ;;  %v7319_v62 = vpop.f32.mrb[24].mxu1 }
 0x27b   :  { %1911 = vmatprep.mubr.bf16.mxu0 %v8843_v1  ;;  %v7321_v11 = vpop.f32.mrb[25].mxu1 }
 0x27c   :  { %v7325_v13 = vpop.f32.mrb[26].mxu1 }
 0x27d   :  { %v7328_v14 = vpop.f32.mrb[27].mxu1 }
 0x282   :  { %5022 = vmatmul.mubr.msk.bf16.gmra.mrb[56].mxu0 %vm151_vm1, %v6937_v12  ;;  %v7330_v12 = vpop.f32.mrb[28].mxu1 }
 0x283   :  { %1921 = vmatprep.mubr.bf16.mxu0 %v8843_v1  ;;  %v7332_v17 = vpop.f32.mrb[29].mxu1 }
 0x284   :  { %v7336_v18 = vpop.f32.mrb[30].mxu1 }
 0x285   :  { %v7339_v21 = vpop.f32.mrb[31].mxu1 }
 0x28a   :  { %5023 = vmatmul.mubr.msk.bf16.gmra.mrb[60].mxu0 %vm151_vm1, %v6948_v15  ;;  %v7341_v15 = vpop.f32.mrb[32].mxu1 }
 0x28b   :  { %1931 = vmatprep.mubr.bf16.mxu0 %v8843_v1  ;;  %v7343_v22 = vpop.f32.mrb[33].mxu1 }
 0x28c   :  { %v7347_v25 = vpop.f32.mrb[34].mxu1 }
 0x28d   :  { %v7350_v27 = vpop.f32.mrb[35].mxu1 }
 0x292   :  { %5024 = vmatmul.mubr.msk.bf16.gmra.mrb[64].mxu0 %vm151_vm1, %v6959_v19  ;;  %v7352_v19 = vpop.f32.mrb[36].mxu1 }
 0x293   :  { %1941 = vmatprep.mubr.bf16.mxu0 %v8843_v1  ;;  %v7354_v30 = vpop.f32.mrb[37].mxu1 }
 0x294   :  { %v7358_v31 = vpop.f32.mrb[38].mxu1 }
 0x295   :  { %v7361_v34 = vpop.f32.mrb[39].mxu1 }
 0x29a   :  { %5025 = vmatmul.mubr.msk.bf16.gmra.mrb[68].mxu0 %vm151_vm1, %v6970_v24  ;;  %v7363_v24 = vpop.f32.mrb[40].mxu1 }
 0x29b   :  { %1951 = vmatprep.mubr.bf16.mxu0 %v8843_v1  ;;  %v7365_v36 = vpop.f32.mrb[41].mxu1 }
 0x29c   :  { %v7369_v39 = vpop.f32.mrb[42].mxu1 }
 0x29d   :  { %v7372_v40 = vpop.f32.mrb[43].mxu1 }
 0x2a2   :  { %5026 = vmatmul.mubr.msk.bf16.gmra.mrb[72].mxu0 %vm151_vm1, %v6981_v28  ;;  %v7374_v28 = vpop.f32.mrb[44].mxu1 }
 0x2a3   :  { %1961 = vmatprep.mubr.bf16.mxu0 %v8843_v1  ;;  %v7376_v42 = vpop.f32.mrb[45].mxu1 }
 0x2a4   :  { %v7380_v43 = vpop.f32.mrb[46].mxu1 }
 0x2a5   :  { %v7383_v45 = vpop.f32.mrb[47].mxu1 }
 0x2a6   :  { %8857 = vst [vmem:[#allocation2_spill] sm:$0xff] %v7383_v45  ;;  %v7388_v48 = vpop.f32.mrb[48].mxu1 }
 0x2a7   :  { %8858 = vst [vmem:[#allocation3_spill] sm:$0xff] %v7388_v48  ;;  %v7393_v51 = vpop.f32.mrb[49].mxu1 }
 0x2a8   :  { %8859 = vst [vmem:[#allocation4_spill] sm:$0xff] %v7393_v51 }
 0x2aa   :  { %5027 = vmatmul.mubr.msk.bf16.gmra.mrb[76].mxu0 %vm151_vm1, %v6992_v33  ;;  %v6316_v33 = vld [vmem:[%s8835_s3 + $0x4] ss:$8 sps:$4 sm:$0xff]  }
 0x2ab   :  { %1971 = vmatprep.mubr.bf16.mxu0 %v8843_v1  ;;  %2711 = vmatprep.subr.bf16.mxu1 %v6316_v33 }
 0x2ac   :  { %2712 = vmatpush1.bf16.msra.mxu1 %v6314_v49 }
 0x2ad   :  { %2713 = vmatprep.subr.bf16.mxu1 %v6319_v54  ;;  %v6325_v54 = vld [vmem:[%s8835_s3 + $0x34] ss:$8 sps:$4 sm:$0xff]  }
 0x2b0   :  { %2714 = vmatpush1.bf16.msra.mxu1 %v6317_v55  ;;  %v6323_v55 = vld [vmem:[%s8835_s3 + $0x30] ss:$8 sps:$4 sm:$0xff]  }
 0x2b2   :  { %5028 = vmatmul.mubr.msk.bf16.gmra.mrb[80].mxu0 %vm151_vm1, %v7003_v37  ;;  %v7397_v37 = vpop.f32.mrb[50].mxu1 }
 0x2b3   :  { %1981 = vmatprep.mubr.bf16.mxu0 %v8843_v1  ;;  %8860 = vst [vmem:[#allocation5_spill] sm:$0xff] %v7397_v37  ;;  %v7400_v52 = vpop.f32.mrb[51].mxu1 }
 0x2b4   :  { %8861 = vst [vmem:[#allocation6_spill] sm:$0xff] %v7400_v52  ;;  %v7411_v57 = vpop.f32.mrb[52].mxu1  ;;  %v6352_v52 = vld [vmem:[%s8835_s3 + $0xc4] ss:$8 sps:$4 sm:$0xff]  }
 0x2b5   :  { %8862 = vst [vmem:[#allocation7_spill] sm:$0xff] %v7411_v57  ;;  %v7422_v7 = vpop.f32.mrb[53].mxu1 }
 0x2b6   :  { %8863 = vst [vmem:[#allocation8_spill] sm:$0xff] %v7422_v7  ;;  %v7426_v33 = vpop.f32.mrb[54].mxu1 }
 0x2b7   :  { %8864 = vst [vmem:[#allocation9_spill] sm:$0xff] %v7426_v33  ;;  %v7429_v49 = vpop.f32.mrb[55].mxu1 }
 0x2b8   :  { %8865 = vst [vmem:[#allocation10_spill] sm:$0xff] %v7429_v49 }
 0x2ba   :  { %5029 = vmatmul.mubr.msk.bf16.gmra.mrb[84].mxu0 %vm151_vm1, %v7023_v46  ;;  %v6322_v46 = vld [vmem:[%s8835_s3 + $0x24] ss:$8 sps:$4 sm:$0xff]  }
 0x2bb   :  { %1991 = vmatprep.mubr.bf16.mxu0 %v8843_v1  ;;  %2715 = vmatprep.subr.bf16.mxu1 %v6322_v46  ;;  %v116_v46 = vpack.c.bf16 %v88_v3, %v87_v2  ;;  %v6331_v3 = vld [vmem:[%s8835_s3 + $0x54] ss:$8 sps:$4 sm:$0xff]  }
 0x2bc   :  { %2716 = vmatpush1.bf16.msra.mxu1 %v6320_v0  ;;  %v7440_v0 = vpop.f32.mrb[56].mxu1 }
 0x2bd   :  { %2717 = vmatprep.subr.bf16.mxu1 %v6325_v54  ;;  %8866 = vst [vmem:[#allocation11_spill] sm:$0xff] %v7440_v0  ;;  %v7445_v49 = vpop.f32.mrb[57].mxu1  ;;  %v6329_v54 = vld [vmem:[%s8835_s3 + $0x50] ss:$8 sps:$4 sm:$0xff]   ;;  %v6344_v0 = vld [vmem:[%s8835_s3 + $0xa0] ss:$8 sps:$4 sm:$0xff]  }
 0x2be   :  { %8867 = vst [vmem:[#allocation12_spill] sm:$0xff] %v7445_v49  ;;  %v7448_v33 = vpop.f32.mrb[58].mxu1 }
 0x2bf   :  { %8868 = vst [vmem:[#allocation13_spill] sm:$0xff] %v7448_v33  ;;  %v7450_v2 = vpop.f32.mrb[59].mxu1 }
 0x2c0   :  { %2718 = vmatpush1.bf16.msra.mxu1 %v6323_v55  ;;  %8869 = vst [vmem:[#allocation14_spill] sm:$0xff] %v7450_v2  ;;  %v6334_v55 = vld [vmem:[%s8835_s3 + $0x64] ss:$8 sps:$4 sm:$0xff]  }
 0x2c2   :  { %5030 = vmatmul.mubr.msk.bf16.gmra.mrb[88].mxu0 %vm151_vm1, %v7200_v9  ;;  %v6328_v9 = vld [vmem:[%s8835_s3 + $0x44] ss:$8 sps:$4 sm:$0xff]  }
 0x2c3   :  { %2001 = vmatprep.mubr.bf16.mxu0 %v8843_v1  ;;  %v6326_v1 = vld [vmem:[%s8835_s3 + $0x40] ss:$8 sps:$4 sm:$0xff]   ;;  %2719 = vmatprep.subr.bf16.mxu1 %v6328_v9 }
 0x2c4   :  { %2720 = vmatpush1.bf16.msra.mxu1 %v6326_v1  ;;  %v6332_v1 = vld [vmem:[%s8835_s3 + $0x60] ss:$8 sps:$4 sm:$0xff]  }
 0x2c5   :  { %2721 = vmatprep.subr.bf16.mxu1 %v6331_v3  ;;  %v6337_v3 = vld [vmem:[%s8835_s3 + $0x74] ss:$8 sps:$4 sm:$0xff]  }
 0x2c8   :  { %2722 = vmatpush1.bf16.msra.mxu1 %v6329_v54  ;;  %v123_v54 = vlaneseq }
 0x2c9   :  { %2723 = vmatprep.subr.bf16.mxu1 %v6334_v55  ;;  %v6340_v55 = vld [vmem:[%s8835_s3 + $0x84] ss:$8 sps:$4 sm:$0xff]  }
 0x2ca   :  { %5031 = vmatmul.mubr.msk.bf16.gmra.mrb[92].mxu0 %vm151_vm1, %v116_v46  ;;  %v7461_v46 = vpop.f32.mrb[60].mxu1 }
 0x2cb   :  { %8870 = vst [vmem:[#allocation15_spill] sm:$0xff] %v7461_v46  ;;  %v7466_v9 = vpop.f32.mrb[61].mxu1  ;;  %v6335_v46 = vld [vmem:[%s8835_s3 + $0x70] ss:$8 sps:$4 sm:$0xff]  }
 0x2cc   :  { %8871 = vst [vmem:[#allocation16_spill] sm:$0xff] %v7466_v9  ;;  %2724 = vmatpush1.bf16.msra.mxu1 %v6332_v1  ;;  %v7468_v2 = vpop.f32.mrb[62].mxu1  ;;  %v7481_v1 = vshrl.u32 %v123_v54, 7  ;;  %v6343_v54 = vld [vmem:[%s8835_s3 + $0x94] ss:$8 sps:$4 sm:$0xff]  }
 0x2cd   :  { %8872 = vst [vmem:[#allocation17_spill] sm:$0xff] %v7468_v2  ;;  %v7470_v33 = vpop.f32.mrb[63].mxu1  ;;  %2725 = vmatprep.subr.bf16.mxu1 %v6337_v3 }
 0x2ce   :  { %8873 = vst [vmem:[#allocation18_spill] sm:$0xff] %v7470_v33  ;;  %8874 = vst [vmem:[#allocation19_spill] sm:$0xff] %v7481_v1  ;;  %v7483_v2 = vpop.f32.mrb[64].mxu1  ;;  %v6338_v33 = vld [vmem:[%s8835_s3 + $0x80] ss:$8 sps:$4 sm:$0xff]  }
 0x2cf   :  { %8875 = vst [vmem:[#allocation20_spill] sm:$0xff] %v7483_v2  ;;  %v7488_v9 = vpop.f32.mrb[65].mxu1  ;;  %v8845_v2 = vsub.s32 0, %v7481_v1 }
 0x2d0   :  { %2726 = vmatpush1.bf16.msra.mxu1 %v6335_v46  ;;  %8876 = vst [vmem:[#allocation21_spill] sm:$0xff] %v7488_v9  ;;  %v7490_v49 = vpop.f32.mrb[66].mxu1  ;;  %v121_v46 = vld [vmem:[%s8836_s2] sm:$0x3] }
 0x2d1   :  { %2727 = vmatprep.subr.bf16.mxu1 %v6340_v55  ;;  %8877 = vst [vmem:[#allocation22_spill] sm:$0xff] %v7490_v49  ;;  %v7495_v3 = vpop.f32.mrb[67].mxu1  ;;  %v6341_v55 = vld [vmem:[%s8835_s3 + $0x90] ss:$8 sps:$4 sm:$0xff]   ;;  %v6346_v49 = vld [vmem:[%s8835_s3 + $0xa4] ss:$8 sps:$4 sm:$0xff]  }
 0x2d2   :  { %8878 = vst [vmem:[#allocation23_spill] sm:$0xff] %v7495_v3  ;;  %v7510_v3 = vrot.slane %v121_v46, %v8845_v2  ;;  %v7512_v9 = vpop.f32.mrb[68].mxu1  ;;  %v6349_v2 = vld [vmem:[%s8835_s3 + $0xb4] ss:$8 sps:$4 sm:$0xff]  }
 0x2d3   :  { %8879 = vst [vmem:[#allocation24_spill] sm:$0xff] %v7512_v9 }
 0x2d4   :  { %2728 = vmatpush1.bf16.msra.mxu1 %v6338_v33  ;;  %v8846_v33 = vsub.s32 1, %v7481_v1  ;;  %v266_v9 = vadd.f32 %v7249_v16, %v7510_v3 }
 0x2d5   :  { %2729 = vmatprep.subr.bf16.mxu1 %v6343_v54  ;;  %v7521_v54 = vpop.f32.mrb[69].mxu1 }
 0x2d6   :  { %v7519_v7 = vrot.slane %v121_v46, %v8846_v33  ;;  %8880 = vst [vmem:[#allocation25_spill] sm:$0xff] %v7521_v54  ;;  %v6347_v46 = vld [vmem:[%s8835_s3 + $0xb0] ss:$8 sps:$4 sm:$0xff]  }
 0x2d8   :  { %2730 = vmatpush1.bf16.msra.mxu1 %v6341_v55  ;;  %v7523_v55 = vpop.f32.mrb[70].mxu1 }
 0x2d9   :  { %2731 = vmatprep.subr.bf16.mxu1 %v6346_v49  ;;  %8881 = vst [vmem:[#allocation26_spill] sm:$0xff] %v7523_v55  ;;  %v7525_v57 = vpop.f32.mrb[71].mxu1  ;;  %v268_v49 = vadd.f32 %v7252_v20, %v7519_v7  ;;  %v272_v55 = vadd.f32 %v7256_v26, %v7519_v7 }
 0x2da   :  { %8882 = vst [vmem:[#allocation27_spill] sm:$0xff] %v7525_v57  ;;  %v7544_v20 = vpop.f32.mrb[72].mxu1 }
 0x2db   :  { %8883 = vst [vmem:[#allocation28_spill] sm:$0xff] %v7544_v20 }
 0x2dc   :  { %2732 = vmatpush1.bf16.msra.mxu1 %v6344_v0  ;;  %v270_v0 = vadd.f32 %v7254_v23, %v7510_v3  ;;  %v6350_v23 = vld [vmem:[%s8835_s3 + $0xc0] ss:$8 sps:$4 sm:$0xff]  }
 0x2dd   :  { %2733 = vmatprep.subr.bf16.mxu1 %v6349_v2 }
 0x2e0   :  { %2734 = vmatpush1.bf16.msra.mxu1 %v6347_v46  ;;  %v276_v46 = vadd.f32 %v7258_v29, %v7510_v3  ;;  %v282_v29 = vadd.f32 %v7264_v38, %v7519_v7 }
 0x2e1   :  { %2735 = vmatprep.subr.bf16.mxu1 %v6352_v52 }
 0x2e4   :  { %2736 = vmatpush1.bf16.msra.mxu1 %v6350_v23  ;;  %v2521_v23 = vld [vmem:[%s8835_s3 + $0xe0] sm:$0x77] }
 0x2e5   :  { %v1773_v33 = vpop.f32.mrb[0].mxu0  ;;  %v5060_v20 = vcombine.low %v2521_v23, %v2521_v23 }
 0x2e6   :  { %v5466_v1 = vadd.f32 %v1773_v33, %v266_v9  ;;  %v1775_v57 = vpop.f32.mrb[1].mxu0  ;;  %v7549_v9 = vpop.f32.mrb[73].mxu1  ;;  %v6355_v33 = vld [vmem:[%s8835_s3 + $0xd4] ss:$8 sps:$4 sm:$0xff]  }
 0x2e7   :  { %v5468_v54 = vadd.f32 %v1775_v57, %v268_v49  ;;  %v1777_v16 = vpop.f32.mrb[2].mxu0  ;;  %8884 = vst [vmem:[#allocation29_spill] sm:$0xff] %v7549_v9  ;;  %v7551_v26 = vpop.f32.mrb[74].mxu1  ;;  %v6353_v49 = vld [vmem:[%s8835_s3 + $0xd0] ss:$8 sps:$4 sm:$0xff]   ;;  %2737 = vmatprep.subr.bf16.mxu1 %v6355_v33  ;;  %v5061_v9 = vcombine.high %v2521_v23, %v2521_v23  ;;  %v2706_v38 = vsel %vm2704_vm2, %v5060_v20, 0 }
 0x2e8   :  { %v5470_v37 = vadd.f32 %v1777_v16, %v270_v0  ;;  %v1779_v51 = vpop.f32.mrb[3].mxu0  ;;  %8885 = vst [vmem:[#allocation30_spill] sm:$0xff] %v7551_v26  ;;  %v7553_v57 = vpop.f32.mrb[75].mxu1  ;;  %2738 = vmatpush1.bf16.msra.mxu1 %v6353_v49 }
 0x2e9   :  { %v5472_v2 = vadd.f32 %v1779_v51, %v272_v55  ;;  %8886 = vst [vmem:[#allocation31_spill] sm:$0xff] %v7553_v57  ;;  %v278_v51 = vadd.f32 %v7260_v32, %v7519_v7  ;;  %v280_v55 = vadd.f32 %v7262_v35, %v7510_v3  ;;  %v7574_v45 = vpop.f32.mrb[76].mxu1  ;;  %5062 = vmatprep.subr.msk.bf16.mxu1 %vm2704_vm2, %v5061_v9 }
 0x2ea   :  { %v7579_v49 = vpop.f32.mrb[77].mxu1 }
 0x2ec   :  { %2740 = vmatpush1.bf16.msra.mxu1 %v2706_v38 }
 0x2ed   :  { %v1783_v52 = vpop.f32.mrb[4].mxu0 }
 0x2ee   :  { %v5474_v0 = vadd.f32 %v1783_v52, %v276_v46  ;;  %v1785_v16 = vpop.f32.mrb[5].mxu0  ;;  %v7584_v52 = vpop.f32.mrb[78].mxu1 }
 0x2ef   :  { %v5476_v57 = vadd.f32 %v1785_v16, %v278_v51  ;;  %v1787_v26 = vpop.f32.mrb[6].mxu0 }
 0x2f0   :  { %v7572_v32 = vmax.f32 %v5466_v1, %v5474_v0  ;;  %v5478_v33 = vadd.f32 %v1787_v26, %v280_v55  ;;  %v1789_v48 = vpop.f32.mrb[7].mxu0  ;;  %v7590_v55 = vpop.f32.mrb[79].mxu1 }
 0x2f1   :  { %v7576_v35 = vmax.f32 %v5468_v54, %v5476_v57  ;;  %v5480_v46 = vadd.f32 %v1789_v48, %v282_v29  ;;  %v286_v48 = vadd.f32 %v7275_v41, %v7510_v3  ;;  %v288_v54 = vadd.f32 %v7277_v44, %v7519_v7  ;;  %v7603_v44 = vpop.f32.mrb[80].mxu1 }
 0x2f2   :  { %v7582_v51 = vmax.f32 %v5470_v37, %v5478_v33  ;;  %v290_v37 = vadd.f32 %v7281_v47, %v7510_v3  ;;  %v292_v57 = vadd.f32 %v7284_v58, %v7519_v7  ;;  %8887 = vst [vmem:[#allocation32_spill] sm:$0xff] %v7603_v44  ;;  %v296_v58 = vadd.f32 %v7286_v50, %v7510_v3 }
 0x2f3   :  { %v7586_v1 = vmax.f32 %v5472_v2, %v5480_v46  ;;  %v6124_v26 = vpack.i.bf16 %v7576_v35, %v7572_v32  ;;  %v7606_v46 = vpop.f32.mrb[81].mxu1 }
 0x2f4   :  { %8888 = vst [vmem:[#allocation33_spill] sm:$0xff] %v7606_v46  ;;  %v7608_v47 = vpop.f32.mrb[82].mxu1 }
 0x2f5   :  { %v1793_v9 = vpop.f32.mrb[8].mxu0  ;;  %6125 = vrot.lane.b32.xlu0 %v6124_v26, %s6583_s26  ;;  %v6129_v41 = vpack.i.bf16 %v7586_v1, %v7582_v51  ;;  %8889 = vst [vmem:[#allocation34_spill] sm:$0xff] %v7608_v47  ;;  %v7610_v38 = vpop.f32.mrb[83].mxu1  ;;  %v298_v26 = vadd.f32 %v7288_v60, %v7519_v7 }
 0x2f6   :  { %v5482_v20 = vadd.f32 %v1793_v9, %v286_v48  ;;  %v1795_v2 = vpop.f32.mrb[9].mxu0  ;;  %8890 = vst [vmem:[#allocation35_spill] sm:$0xff] %v7610_v38  ;;  %v7622_v47 = vpop.f32.mrb[84].mxu1 }
 0x2f7   :  { %v5484_v0 = vadd.f32 %v1795_v2, %v288_v54  ;;  %v1797_v16 = vpop.f32.mrb[10].mxu0  ;;  %v300_v54 = vadd.f32 %v7292_v53, %v7510_v3  ;;  %v302_v2 = vadd.f32 %v7295_v61, %v7519_v7  ;;  %v7626_v46 = vpop.f32.mrb[85].mxu1 }
 0x2f8   :  { %v5486_v23 = vadd.f32 %v1797_v16, %v290_v37  ;;  %v1799_v29 = vpop.f32.mrb[11].mxu0  ;;  %v7630_v53 = vpop.f32.mrb[86].mxu1 }
 0x2f9   :  { %v5488_v33 = vadd.f32 %v1799_v29, %v292_v57  ;;  %6130 = vrot.lane.b32.xlu0 %v6129_v41, %s6583_s26 }
 0x2fd   :  { %v1803_v48 = vpop.f32.mrb[12].mxu0 }
 0x2fe   :  { %v5490_v9 = vadd.f32 %v1803_v48, %v296_v58  ;;  %v1805_v37 = vpop.f32.mrb[13].mxu0 }
 0x2ff   :  { %v5492_v57 = vadd.f32 %v1805_v37, %v298_v26  ;;  %v1807_v16 = vpop.f32.mrb[14].mxu0  ;;  %v306_v26 = vadd.f32 %v7297_v56, %v7510_v3 }
 0x300   :  { %v7620_v41 = vmax.f32 %v5482_v20, %v5490_v9  ;;  %v5494_v29 = vadd.f32 %v1807_v16, %v300_v54  ;;  %v1809_v38 = vpop.f32.mrb[15].mxu0  ;;  %v7636_v20 = vpop.f32.mrb[87].mxu1  ;;  %v312_v54 = vadd.f32 %v7306_v5, %v7519_v7  ;;  %v316_v5 = vadd.f32 %v7308_v59, %v7510_v3 }
 0x301   :  { %v7624_v50 = vmax.f32 %v5484_v0, %v5492_v57  ;;  %v5496_v60 = vadd.f32 %v1809_v38, %v302_v2  ;;  %v308_v0 = vadd.f32 %v7299_v63, %v7519_v7  ;;  %v7649_v16 = vpop.f32.mrb[88].mxu1 }
 0x302   :  { %v7628_v44 = vmax.f32 %v5486_v23, %v5494_v29  ;;  %v310_v23 = vadd.f32 %v7303_v4, %v7510_v3  ;;  %8891 = vst [vmem:[#allocation36_spill] sm:$0xff] %v7649_v16  ;;  %v7652_v29 = vpop.f32.mrb[89].mxu1 }
 0x303   :  { %v7632_v58 = vmax.f32 %v5488_v33, %v5496_v60  ;;  %v6134_v61 = vpack.i.bf16 %v7624_v50, %v7620_v41  ;;  %8892 = vst [vmem:[#allocation37_spill] sm:$0xff] %v7652_v29  ;;  %v7654_v4 = vpop.f32.mrb[90].mxu1 }
 0x304   :  { %8893 = vst [vmem:[#allocation38_spill] sm:$0xff] %v7654_v4  ;;  %v7656_v60 = vpop.f32.mrb[91].mxu1 }
 0x305   :  { %v1813_v38 = vpop.f32.mrb[16].mxu0  ;;  %6135 = vrot.lane.b32.xlu1 %v6134_v61, %s6583_s26  ;;  %v6139_v2 = vpack.i.bf16 %v7632_v58, %v7628_v44  ;;  %8894 = vst [vmem:[#allocation39_spill] sm:$0xff] %v7656_v60  ;;  %v318_v61 = vadd.f32 %v7310_v6, %v7519_v7  ;;  %v7668_v4 = vpop.f32.mrb[92].mxu1 }
 0x306   :  { %v5498_v48 = vadd.f32 %v1813_v38, %v306_v26  ;;  %v1815_v33 = vpop.f32.mrb[17].mxu0  ;;  %v7672_v29 = vpop.f32.mrb[93].mxu1 }
 0x307   :  { %v5500_v9 = vadd.f32 %v1815_v33, %v308_v0  ;;  %v1817_v37 = vpop.f32.mrb[18].mxu0  ;;  %v320_v0 = vadd.f32 %v7314_v8, %v7510_v3  ;;  %v322_v33 = vadd.f32 %v7317_v10, %v7519_v7  ;;  %v7676_v8 = vpop.f32.mrb[94].mxu1 }
 0x308   :  { %v5502_v56 = vadd.f32 %v1817_v37, %v310_v23  ;;  %v1819_v57 = vpop.f32.mrb[19].mxu0 }
 0x309   :  { %v5504_v63 = vadd.f32 %v1819_v57, %v312_v54  ;;  %6140 = vrot.lane.b32.xlu1 %v6139_v2, %s6583_s26 }
 0x30d   :  { %v1823_v26 = vpop.f32.mrb[20].mxu0 }
 0x30e   :  { %v5506_v38 = vadd.f32 %v1823_v26, %v316_v5  ;;  %v1825_v23 = vpop.f32.mrb[21].mxu0 }
 0x30f   :  { %v5508_v54 = vadd.f32 %v1825_v23, %v318_v61  ;;  %v1827_v37 = vpop.f32.mrb[22].mxu0  ;;  %v326_v61 = vadd.f32 %v7319_v62, %v7510_v3 }
 0x310   :  { %v7666_v2 = vmax.f32 %v5498_v48, %v5506_v38  ;;  %v5510_v57 = vadd.f32 %v1827_v37, %v320_v0  ;;  %v1829_v60 = vpop.f32.mrb[23].mxu0  ;;  %v7682_v48 = vpop.f32.mrb[95].mxu1  ;;  %v332_v38 = vadd.f32 %v7328_v14, %v7519_v7  ;;  %v336_v37 = vadd.f32 %v7330_v12, %v7510_v3 }
 0x311   :  { %v7670_v59 = vmax.f32 %v5500_v9, %v5508_v54  ;;  %v5512_v6 = vadd.f32 %v1829_v60, %v322_v33  ;;  %v328_v9 = vadd.f32 %v7321_v11, %v7519_v7  ;;  %v342_v14 = vadd.f32 %v7339_v21, %v7519_v7 }
 0x312   :  { %v7674_v16 = vmax.f32 %v5502_v56, %v5510_v57  ;;  %v338_v57 = vadd.f32 %v7332_v17, %v7519_v7  ;;  %v348_v21 = vadd.f32 %v7343_v22, %v7519_v7 }
 0x313   :  { %v7678_v5 = vmax.f32 %v5504_v63, %v5512_v6  ;;  %v6144_v10 = vpack.i.bf16 %v7670_v59, %v7666_v2  ;;  %v330_v63 = vadd.f32 %v7325_v13, %v7510_v3  ;;  %v340_v13 = vadd.f32 %v7336_v18, %v7510_v3 }
 0x315   :  { %v1833_v60 = vpop.f32.mrb[24].mxu0  ;;  %6145 = vrot.lane.b32.xlu0 %v6144_v10, %s6583_s26  ;;  %v6149_v56 = vpack.i.bf16 %v7678_v5, %v7674_v16 }
 0x316   :  { %v5514_v26 = vadd.f32 %v1833_v60, %v326_v61  ;;  %v1835_v0 = vpop.f32.mrb[25].mxu0 }
 0x317   :  { %v5516_v23 = vadd.f32 %v1835_v0, %v328_v9  ;;  %v1837_v33 = vpop.f32.mrb[26].mxu0  ;;  %6150 = vrot.lane.b32.xlu1 %v6149_v56, %s6583_s26 }
 0x318   :  { %v5518_v62 = vadd.f32 %v1837_v33, %v330_v63  ;;  %v1839_v11 = vpop.f32.mrb[27].mxu0 }
 0x319   :  { %v5520_v54 = vadd.f32 %v1839_v11, %v332_v38  ;;  %v346_v11 = vadd.f32 %v7341_v15, %v7510_v3 }
 0x31d   :  { %v1843_v6 = vpop.f32.mrb[28].mxu0 }
 0x31e   :  { %v5522_v10 = vadd.f32 %v1843_v6, %v336_v37  ;;  %v1845_v61 = vpop.f32.mrb[29].mxu0 }
 0x31f   :  { %v5524_v9 = vadd.f32 %v1845_v61, %v338_v57  ;;  %v1847_v60 = vpop.f32.mrb[30].mxu0  ;;  %v352_v57 = vadd.f32 %v7350_v27, %v7519_v7  ;;  %v356_v61 = vadd.f32 %v7352_v19, %v7510_v3  ;;  %v360_v27 = vadd.f32 %v7358_v31, %v7510_v3 }
 0x320   :  { %v7704_v56 = vmax.f32 %v5514_v26, %v5522_v10  ;;  %v5526_v63 = vadd.f32 %v1847_v60, %v340_v13  ;;  %v1849_v0 = vpop.f32.mrb[31].mxu0 }
 0x321   :  { %v7706_v38 = vmax.f32 %v5516_v23, %v5524_v9  ;;  %v5528_v12 = vadd.f32 %v1849_v0, %v342_v14  ;;  %v358_v14 = vadd.f32 %v7354_v30, %v7519_v7  ;;  %v362_v0 = vadd.f32 %v7361_v34, %v7519_v7 }
 0x322   :  { %v7708_v33 = vmax.f32 %v5518_v62, %v5526_v63  ;;  %v350_v62 = vadd.f32 %v7347_v25, %v7510_v3  ;;  %v6360_v25 = vld [vmem:[%s8835_s3 + $0xec] ss:$8 sps:$4 sm:$0xff]   ;;  %v366_v34 = vadd.f32 %v7363_v24, %v7510_v3 }
 0x323   :  { %v7710_v17 = vmax.f32 %v5520_v54, %v5528_v12  ;;  %v6154_v18 = vpack.i.bf16 %v7706_v38, %v7704_v56  ;;  %3008 = vmatprep.subr.bf16.mxu1 %v6360_v25  ;;  %v378_v25 = vadd.f32 %v7376_v42, %v7519_v7 }
 0x325   :  { %v1853_v26 = vpop.f32.mrb[32].mxu0  ;;  %6155 = vrot.lane.b32.xlu0 %v6154_v18, %s6583_s26  ;;  %v6159_v23 = vpack.i.bf16 %v7710_v17, %v7708_v33 }
 0x326   :  { %v5530_v54 = vadd.f32 %v1853_v26, %v346_v11  ;;  %v1855_v37 = vpop.f32.mrb[33].mxu0 }
 0x327   :  { %v5532_v6 = vadd.f32 %v1855_v37, %v348_v21  ;;  %v1857_v13 = vpop.f32.mrb[34].mxu0  ;;  %6160 = vrot.lane.b32.xlu1 %v6159_v23, %s6583_s26  ;;  %v368_v37 = vadd.f32 %v7365_v36, %v7519_v7 }
 0x328   :  { %v5534_v15 = vadd.f32 %v1857_v13, %v350_v62  ;;  %v1859_v22 = vpop.f32.mrb[35].mxu0 }
 0x329   :  { %v5536_v10 = vadd.f32 %v1859_v22, %v352_v57  ;;  %v372_v22 = vadd.f32 %v7372_v40, %v7519_v7  ;;  %v8895_v40 = vld [vmem:[#allocation2_spill] sm:$0xff] }
 0x32d   :  { %v1863_v9 = vpop.f32.mrb[36].mxu0 }
 0x32e   :  { %v5538_v60 = vadd.f32 %v1863_v9, %v356_v61  ;;  %v1865_v63 = vpop.f32.mrb[37].mxu0  ;;  %v376_v9 = vadd.f32 %v7374_v28, %v7510_v3 }
 0x32f   :  { %v5540_v12 = vadd.f32 %v1865_v63, %v358_v14  ;;  %v1867_v18 = vpop.f32.mrb[38].mxu0 }
 0x330   :  { %v7737_v19 = vmax.f32 %v5530_v54, %v5538_v60  ;;  %v5542_v11 = vadd.f32 %v1867_v18, %v360_v27  ;;  %v1869_v30 = vpop.f32.mrb[39].mxu0 }
 0x331   :  { %v7739_v21 = vmax.f32 %v5532_v6, %v5540_v12  ;;  %v5544_v26 = vadd.f32 %v1869_v30, %v362_v0  ;;  %v370_v6 = vadd.f32 %v7369_v39, %v7510_v3  ;;  %v380_v39 = vadd.f32 %v7380_v43, %v7510_v3 }
 0x332   :  { %v7741_v23 = vmax.f32 %v5534_v15, %v5542_v11  ;;  %v382_v0 = vadd.f32 %v8895_v40, %v7519_v7 }
 0x333   :  { %v7743_v62 = vmax.f32 %v5536_v10, %v5544_v26  ;;  %v6164_v31 = vpack.i.bf16 %v7739_v21, %v7737_v19 }
 0x335   :  { %v1873_v54 = vpop.f32.mrb[40].mxu0  ;;  %6165 = vrot.lane.b32.xlu0 %v6164_v31, %s6583_s26  ;;  %v6169_v57 = vpack.i.bf16 %v7743_v62, %v7741_v23 }
 0x336   :  { %v5546_v13 = vadd.f32 %v1873_v54, %v366_v34  ;;  %v1875_v15 = vpop.f32.mrb[41].mxu0 }
 0x337   :  { %v5548_v10 = vadd.f32 %v1875_v15, %v368_v37  ;;  %v1877_v61 = vpop.f32.mrb[42].mxu0  ;;  %6170 = vrot.lane.b32.xlu1 %v6169_v57, %s6583_s26  ;;  %v8896_v37 = vld [vmem:[#allocation3_spill] sm:$0xff]  ;;  %v8897_v57 = vld [vmem:[#allocation4_spill] sm:$0xff] }
 0x338   :  { %v5550_v24 = vadd.f32 %v1877_v61, %v370_v6  ;;  %v1879_v36 = vpop.f32.mrb[43].mxu0  ;;  %v386_v54 = vadd.f32 %v8896_v37, %v7510_v3  ;;  %v388_v6 = vadd.f32 %v8897_v57, %v7519_v7  ;;  %v8903_v37 = vld [vmem:[#allocation10_spill] sm:$0xff] }
 0x339   :  { %v5552_v14 = vadd.f32 %v1879_v36, %v372_v22  ;;  %v8898_v22 = vld [vmem:[#allocation5_spill] sm:$0xff]  ;;  %v8899_v36 = vld [vmem:[#allocation6_spill] sm:$0xff] }
 0x33d   :  { %v1883_v27 = vpop.f32.mrb[44].mxu0 }
 0x33e   :  { %v5554_v60 = vadd.f32 %v1883_v27, %v376_v9  ;;  %v1885_v63 = vpop.f32.mrb[45].mxu0 }
 0x33f   :  { %v5556_v12 = vadd.f32 %v1885_v63, %v378_v25  ;;  %v1887_v18 = vpop.f32.mrb[46].mxu0  ;;  %v8900_v63 = vld [vmem:[#allocation7_spill] sm:$0xff] }
 0x340   :  { %v7767_v11 = vmax.f32 %v5546_v13, %v5554_v60  ;;  %v5558_v30 = vadd.f32 %v1887_v18, %v380_v39  ;;  %v1889_v26 = vpop.f32.mrb[47].mxu0  ;;  %v396_v40 = vadd.f32 %v8900_v63, %v7510_v3 }
 0x341   :  { %v7769_v31 = vmax.f32 %v5548_v10, %v5556_v12  ;;  %v5560_v28 = vadd.f32 %v1889_v26, %v382_v0  ;;  %v390_v10 = vadd.f32 %v8898_v22, %v7510_v3  ;;  %v8901_v0 = vld [vmem:[#allocation8_spill] sm:$0xff] }
 0x342   :  { %v7771_v34 = vmax.f32 %v5550_v24, %v5558_v30  ;;  %v398_v12 = vadd.f32 %v8901_v0, %v7519_v7  ;;  %v8902_v30 = vld [vmem:[#allocation9_spill] sm:$0xff] }
 0x343   :  { %v7773_v42 = vmax.f32 %v5552_v14, %v5560_v28  ;;  %v6174_v43 = vpack.i.bf16 %v7769_v31, %v7767_v11  ;;  %v392_v14 = vadd.f32 %v8899_v36, %v7519_v7  ;;  %v400_v26 = vadd.f32 %v8902_v30, %v7510_v3  ;;  %v8911_v30 = vld [vmem:[#allocation14_spill] sm:$0xff] }
 0x345   :  { %v1893_v13 = vpop.f32.mrb[48].mxu0  ;;  %6175 = vrot.lane.b32.xlu0 %v6174_v43, %s6583_s26  ;;  %v6179_v15 = vpack.i.bf16 %v7773_v42, %v7771_v34 }
 0x346   :  { %v5562_v61 = vadd.f32 %v1893_v13, %v386_v54  ;;  %v1895_v24 = vpop.f32.mrb[49].mxu0  ;;  %v402_v54 = vadd.f32 %v8903_v37, %v7519_v7 }
 0x347   :  { %v5564_v9 = vadd.f32 %v1895_v24, %v388_v6  ;;  %v1897_v25 = vpop.f32.mrb[50].mxu0  ;;  %6180 = vrot.lane.b32.xlu1 %v6179_v15, %s6583_s26 }
 0x348   :  { %v5566_v27 = vadd.f32 %v1897_v25, %v390_v10  ;;  %v1899_v39 = vpop.f32.mrb[51].mxu0 }
 0x349   :  { %v5568_v60 = vadd.f32 %v1899_v39, %v392_v14  ;;  %v8908_v39 = vld [vmem:[#allocation11_spill] sm:$0xff] }
 0x34a   :  { %v406_v63 = vadd.f32 %v8908_v39, %v7510_v3  ;;  %v8914_v39 = vld [vmem:[#allocation17_spill] sm:$0xff] }
 0x34d   :  { %v1903_v18 = vpop.f32.mrb[52].mxu0 }
 0x34e   :  { %v5570_v28 = vadd.f32 %v1903_v18, %v396_v40  ;;  %v1905_v43 = vpop.f32.mrb[53].mxu0  ;;  %v8909_v40 = vld [vmem:[#allocation12_spill] sm:$0xff] }
 0x34f   :  { %v5572_v57 = vadd.f32 %v1905_v43, %v398_v12  ;;  %v1907_v6 = vpop.f32.mrb[54].mxu0  ;;  %v408_v0 = vadd.f32 %v8909_v40, %v7519_v7 }
 0x350   :  { %v7797_v13 = vmax.f32 %v5562_v61, %v5570_v28  ;;  %v5574_v15 = vadd.f32 %v1907_v6, %v400_v26  ;;  %v1909_v22 = vpop.f32.mrb[55].mxu0  ;;  %v412_v26 = vadd.f32 %v8911_v30, %v7519_v7  ;;  %v8912_v6 = vld [vmem:[#allocation15_spill] sm:$0xff] }
 0x351   :  { %v7799_v10 = vmax.f32 %v5564_v9, %v5572_v57  ;;  %v5576_v24 = vadd.f32 %v1909_v22, %v402_v54  ;;  %v8913_v22 = vld [vmem:[#allocation16_spill] sm:$0xff] }
 0x352   :  { %8904 = vst [vmem:[#allocation2_spill] sm:$0xff] %v7797_v13  ;;  %v7801_v36 = vmax.f32 %v5566_v27, %v5574_v15  ;;  %v8910_v27 = vld [vmem:[#allocation13_spill] sm:$0xff]  ;;  %v416_v15 = vadd.f32 %v8912_v6, %v7510_v3 }
 0x353   :  { %8905 = vst [vmem:[#allocation3_spill] sm:$0xff] %v7799_v10  ;;  %v7803_v14 = vmax.f32 %v5568_v60, %v5576_v24  ;;  %v6184_v25 = vpack.i.bf16 %v7799_v10, %v7797_v13  ;;  %v410_v12 = vadd.f32 %v8910_v27, %v7510_v3  ;;  %v418_v24 = vadd.f32 %v8913_v22, %v7519_v7 }
 0x354   :  { %8906 = vst [vmem:[#allocation4_spill] sm:$0xff] %v7801_v36 }
 0x355   :  { %8907 = vst [vmem:[#allocation5_spill] sm:$0xff] %v7803_v14  ;;  %v1913_v61 = vpop.f32.mrb[56].mxu0  ;;  %6185 = vrot.lane.b32.xlu0 %v6184_v25, %s6583_s26  ;;  %v6189_v9 = vpack.i.bf16 %v7803_v14, %v7801_v36 }
 0x356   :  { %v5578_v60 = vadd.f32 %v1913_v61, %v406_v63  ;;  %v1915_v18 = vpop.f32.mrb[57].mxu0  ;;  %v420_v63 = vadd.f32 %v8914_v39, %v7510_v3 }
 0x357   :  { %v5580_v28 = vadd.f32 %v1915_v18, %v408_v0  ;;  %v1917_v43 = vpop.f32.mrb[58].mxu0  ;;  %6190 = vrot.lane.b32.xlu1 %v6189_v9, %s6583_s26  ;;  %v8915_v0 = vld [vmem:[#allocation18_spill] sm:$0xff] }
 0x358   :  { %v5582_v37 = vadd.f32 %v1917_v43, %v410_v12  ;;  %v1919_v54 = vpop.f32.mrb[59].mxu0  ;;  %v422_v27 = vadd.f32 %v8915_v0, %v7519_v7  ;;  %v8923_v0 = vld [vmem:[#allocation23_spill] sm:$0xff] }
 0x359   :  { %v5584_v57 = vadd.f32 %v1919_v54, %v412_v26 }
 0x35d   :  { %v1923_v25 = vpop.f32.mrb[60].mxu0 }
 0x35e   :  { %v5586_v40 = vadd.f32 %v1923_v25, %v416_v15  ;;  %v1925_v61 = vpop.f32.mrb[61].mxu0  ;;  %v8920_v25 = vld [vmem:[#allocation20_spill] sm:$0xff] }
 0x35f   :  { %v5588_v18 = vadd.f32 %v1925_v61, %v418_v24  ;;  %v1927_v9 = vpop.f32.mrb[62].mxu0  ;;  %v426_v39 = vadd.f32 %v8920_v25, %v7510_v3  ;;  %v8921_v24 = vld [vmem:[#allocation21_spill] sm:$0xff] }
 0x360   :  { %v7827_v12 = vmax.f32 %v5578_v60, %v5586_v40  ;;  %v5590_v30 = vadd.f32 %v1927_v9, %v420_v63  ;;  %v1929_v26 = vpop.f32.mrb[63].mxu0  ;;  %v428_v61 = vadd.f32 %v8921_v24, %v7519_v7 }
 0x361   :  { %v7829_v43 = vmax.f32 %v5580_v28, %v5588_v18  ;;  %v5592_v54 = vadd.f32 %v1929_v26, %v422_v27  ;;  %v432_v27 = vadd.f32 %v8923_v0, %v7519_v7 }
 0x362   :  { %8916 = vst [vmem:[#allocation6_spill] sm:$0xff] %v7827_v12  ;;  %v7831_v6 = vmax.f32 %v5582_v37, %v5590_v30  ;;  %v8922_v37 = vld [vmem:[#allocation22_spill] sm:$0xff] }
 0x363   :  { %8917 = vst [vmem:[#allocation7_spill] sm:$0xff] %v7829_v43  ;;  %v7833_v22 = vmax.f32 %v5584_v57, %v5592_v54  ;;  %v6194_v15 = vpack.i.bf16 %v7829_v43, %v7827_v12  ;;  %v430_v63 = vadd.f32 %v8922_v37, %v7510_v3 }
 0x364   :  { %8918 = vst [vmem:[#allocation8_spill] sm:$0xff] %v7831_v6 }
 0x365   :  { %8919 = vst [vmem:[#allocation9_spill] sm:$0xff] %v7833_v22  ;;  %v1933_v60 = vpop.f32.mrb[64].mxu0  ;;  %6195 = vrot.lane.b32.xlu0 %v6194_v15, %s6583_s26  ;;  %v6199_v28 = vpack.i.bf16 %v7833_v22, %v7831_v6 }
 0x366   :  { %v5594_v57 = vadd.f32 %v1933_v60, %v426_v39  ;;  %v1935_v40 = vpop.f32.mrb[65].mxu0  ;;  %v8924_v39 = vld [vmem:[#allocation24_spill] sm:$0xff] }
 0x367   :  { %v5596_v18 = vadd.f32 %v1935_v40, %v428_v61  ;;  %v1937_v9 = vpop.f32.mrb[66].mxu0  ;;  %6200 = vrot.lane.b32.xlu1 %v6199_v28, %s6583_s26  ;;  %v6126_v30 = vpop.permute.xlu0 %6125  ;;  %v5601_v60 = vadd.f32 %v8924_v39, %v7510_v3  ;;  %v8925_v40 = vld [vmem:[#allocation25_spill] sm:$0xff]  ;;  %v8927_v39 = vld [vmem:[#allocation27_spill] sm:$0xff] }
 0x368   :  { %v5598_v26 = vadd.f32 %v1937_v9, %v430_v63  ;;  %v6128_v54 = vunpack.i.h.bf16 %v6126_v30  ;;  %v6127_v15 = vunpack.i.l.bf16 %v6126_v30  ;;  %v1939_v25 = vpop.f32.mrb[67].mxu0  ;;  %v5603_v28 = vadd.f32 %v8925_v40, %v7519_v7  ;;  %v8926_v9 = vld [vmem:[#allocation26_spill] sm:$0xff] }
 0x369   :  { %v5600_v24 = vadd.f32 %v1939_v25, %v432_v27  ;;  %v5605_v30 = vadd.f32 %v8926_v9, %v7510_v3 }
 0x36a   :  { %v2301_v6 = vsel %vm2300_vm3, %v6127_v15, %v6128_v54  ;;  %v2374_v37 = vmax.f32 %v7576_v35, %v6128_v54  ;;  %v5607_v35 = vadd.f32 %v8927_v39, %v7519_v7 }
 0x36b   :  { %v6131_v22 = vpop.permute.xlu0 %6130  ;;  %v2373_v12 = vmax.f32 %v7572_v32, %v2301_v6 }
 0x36c   :  { %v6133_v0 = vunpack.i.h.bf16 %v6131_v22  ;;  %v6132_v61 = vunpack.i.l.bf16 %v6131_v22  ;;  %v2422_v40 = vmax.f32 %v2374_v37, 0.0 }
 0x36d   :  { %v1943_v63 = vpop.f32.mrb[68].mxu0  ;;  %v2421_v13 = vmax.f32 %v2373_v12, 0.0  ;;  %v8928_v12 = vld [vmem:[#allocation28_spill] sm:$0xff] }
 0x36e   :  { %v2376_v27 = vmax.f32 %v7586_v1, %v6133_v0  ;;  %v2302_v15 = vsel %vm2300_vm3, %v6132_v61, %v6133_v0  ;;  %v5602_v25 = vadd.f32 %v5601_v60, %v1943_v63  ;;  %v1945_v43 = vpop.f32.mrb[69].mxu0 }
 0x36f   :  { %v2375_v22 = vmax.f32 %v7582_v51, %v2302_v15  ;;  %v5604_v54 = vadd.f32 %v5603_v28, %v1945_v43  ;;  %v1947_v36 = vpop.f32.mrb[70].mxu0  ;;  %v6358_v51 = vld [vmem:[%s8835_s3 + $0xe8] ss:$8 sps:$4 sm:$0xff]   ;;  %v6361_v15 = vld [vmem:[%s8835_s3 + $0xf8] ss:$8 sps:$4 sm:$0xff]  }
 0x370   :  { %v2424_v32 = vmax.f32 %v2376_v27, 0.0  ;;  %v7863_v6 = vmax.f32 %v5594_v57, %v5602_v25  ;;  %v5606_v14 = vadd.f32 %v5605_v30, %v1947_v36  ;;  %v1949_v9 = vpop.f32.mrb[71].mxu0  ;;  %v6363_v36 = vld [vmem:[%s8835_s3 + $0xfc] ss:$8 sps:$4 sm:$0xff]   ;;  %v8931_v25 = vld [vmem:[#allocation31_spill] sm:$0xff] }
 0x371   :  { %v2423_v1 = vmax.f32 %v2375_v22, 0.0  ;;  %v7865_v10 = vmax.f32 %v5596_v18, %v5604_v54  ;;  %v5608_v60 = vadd.f32 %v5607_v35, %v1949_v9  ;;  %v5609_v18 = vadd.f32 %v8928_v12, %v7510_v3 }
 0x372   :  { %v2470_v0 = vpack.c.bf16 %v2424_v32, %v2422_v40  ;;  %v7867_v61 = vmax.f32 %v5598_v26, %v5606_v14  ;;  %v8929_v14 = vld [vmem:[#allocation29_spill] sm:$0xff]  ;;  %v5615_v39 = vadd.f32 %v8931_v25, %v7519_v7  ;;  %v6366_v40 = vld [vmem:[%s8835_s3 + $0x10c] ss:$8 sps:$4 sm:$0xff]   ;;  %v5617_v12 = vadd.f32 %v7574_v45, %v7510_v3 }
 0x373   :  { %v2469_v43 = vpack.c.bf16 %v2423_v1, %v2421_v13  ;;  %v7872_v28 = vmax.f32 %v5600_v24, %v5608_v60  ;;  %v6204_v57 = vpack.i.bf16 %v7865_v10, %v7863_v6  ;;  %v5611_v26 = vadd.f32 %v8929_v14, %v7519_v7  ;;  %v8930_v24 = vld [vmem:[#allocation30_spill] sm:$0xff] }
 0x374   :  { %5063 = vmatprep.mubr.msk.bf16.mxu1 %vm2679_vm4, %v2470_v0  ;;  %v5613_v63 = vadd.f32 %v8930_v24, %v7510_v3  ;;  %v6367_v45 = vld [vmem:[%s8835_s3 + $0x118] ss:$8 sps:$4 sm:$0xff]  }
 0x375   :  { %v1953_v37 = vpop.f32.mrb[72].mxu0  ;;  %6205 = vrot.lane.b32.xlu0 %v6204_v57, %s6583_s26  ;;  %2744 = vmatmul.mubr.bf16.vlgmr.msra.gmra.mrb[96].mxu1 %v2469_v43  ;;  %v6209_v13 = vpack.i.bf16 %v7872_v28, %v7867_v61  ;;  %v6364_v43 = vld [vmem:[%s8835_s3 + $0x108] ss:$8 sps:$4 sm:$0xff]  }
 0x376   :  { %v5610_v30 = vadd.f32 %v5609_v18, %v1953_v37  ;;  %v1955_v27 = vpop.f32.mrb[73].mxu0  ;;  %3009 = vmatpush1.bf16.msra.mxu1 %v6358_v51  ;;  %v5619_v37 = vadd.f32 %v7579_v49, %v7519_v7  ;;  %v5623_v49 = vadd.f32 %v7590_v55, %v7519_v7 }
 0x377   :  { %v5612_v35 = vadd.f32 %v5611_v26, %v1955_v27  ;;  %v1957_v22 = vpop.f32.mrb[74].mxu0  ;;  %6210 = vrot.lane.b32.xlu1 %v6209_v13, %s6583_s26  ;;  %v6136_v54 = vpop.permute.xlu1 %6135  ;;  %3010 = vmatprep.subr.bf16.mxu1 %v6363_v36  ;;  %v6369_v36 = vld [vmem:[%s8835_s3 + $0x11c] ss:$8 sps:$4 sm:$0xff]  }
 0x378   :  { %v5614_v32 = vadd.f32 %v5613_v63, %v1957_v22  ;;  %v6138_v9 = vunpack.i.h.bf16 %v6136_v54  ;;  %v6137_v1 = vunpack.i.l.bf16 %v6136_v54  ;;  %v1959_v60 = vpop.f32.mrb[75].mxu0  ;;  %v5621_v63 = vadd.f32 %v7584_v52, %v7510_v3  ;;  %v6372_v52 = vld [vmem:[%s8835_s3 + $0x12c] ss:$8 sps:$4 sm:$0xff]  }
 0x379   :  { %v5616_v0 = vadd.f32 %v5615_v39, %v1959_v60 }
 0x37a   :  { %v2303_v51 = vsel %vm2300_vm3, %v6137_v1, %v6138_v9  ;;  %3011 = vmatpush1.bf16.msra.mxu1 %v6361_v15  ;;  %v2378_v18 = vmax.f32 %v7624_v50, %v6138_v9 }
 0x37b   :  { %v6141_v57 = vpop.permute.xlu1 %6140  ;;  %3012 = vmatprep.subr.bf16.mxu1 %v6366_v40  ;;  %v2377_v24 = vmax.f32 %v7620_v41, %v2303_v51 }
 0x37c   :  { %v6143_v14 = vunpack.i.h.bf16 %v6141_v57  ;;  %v6142_v26 = vunpack.i.l.bf16 %v6141_v57 }
 0x37d   :  { %v1963_v13 = vpop.f32.mrb[76].mxu0 }
 0x37e   :  { %v2380_v27 = vmax.f32 %v7632_v58, %v6143_v14  ;;  %v2304_v15 = vsel %vm2300_vm3, %v6142_v26, %v6143_v14  ;;  %v5618_v25 = vadd.f32 %v5617_v12, %v1963_v13  ;;  %v1965_v39 = vpop.f32.mrb[77].mxu0  ;;  %3013 = vmatpush1.bf16.msra.mxu1 %v6364_v43  ;;  %v2426_v58 = vmax.f32 %v2378_v18, 0.0  ;;  %v8933_v26 = vld [vmem:[#allocation33_spill] sm:$0xff] }
 0x37f   :  { %v5620_v50 = vadd.f32 %v5619_v37, %v1965_v39  ;;  %v1967_v22 = vpop.f32.mrb[78].mxu0  ;;  %v2379_v41 = vmax.f32 %v7628_v44, %v2304_v15  ;;  %3014 = vmatprep.subr.bf16.mxu1 %v6369_v36  ;;  %v2425_v43 = vmax.f32 %v2377_v24, 0.0  ;;  %v6370_v44 = vld [vmem:[%s8835_s3 + $0x128] ss:$8 sps:$4 sm:$0xff]   ;;  %v8934_v24 = vld [vmem:[#allocation34_spill] sm:$0xff] }
 0x380   :  { %v2428_v54 = vmax.f32 %v2380_v27, 0.0  ;;  %v7924_v40 = vmax.f32 %v5610_v30, %v5618_v25  ;;  %v5622_v9 = vadd.f32 %v5621_v63, %v1967_v22  ;;  %v1969_v1 = vpop.f32.mrb[79].mxu0  ;;  %v5629_v63 = vadd.f32 %v8934_v24, %v7510_v3  ;;  %v6373_v25 = vld [vmem:[%s8835_s3 + $0x138] ss:$8 sps:$4 sm:$0xff]   ;;  %v8935_v39 = vld [vmem:[#allocation35_spill] sm:$0xff] }
 0x381   :  { %v7926_v60 = vmax.f32 %v5612_v35, %v5620_v50  ;;  %v5624_v51 = vadd.f32 %v5623_v49, %v1969_v1  ;;  %v2427_v55 = vmax.f32 %v2379_v41, 0.0  ;;  %v6375_v35 = vld [vmem:[%s8835_s3 + $0x13c] ss:$8 sps:$4 sm:$0xff]   ;;  %v6378_v41 = vld [vmem:[%s8835_s3 + $0x14c] ss:$8 sps:$4 sm:$0xff]  }
 0x382   :  { %v7928_v57 = vpack.c.bf16 %v2428_v54, %v2426_v58  ;;  %v7930_v12 = vmax.f32 %v5614_v32, %v5622_v9  ;;  %3015 = vmatpush1.bf16.msra.mxu1 %v6367_v45  ;;  %v8932_v32 = vld [vmem:[#allocation32_spill] sm:$0xff]  ;;  %v5631_v45 = vadd.f32 %v8935_v39, %v7519_v7 }
 0x383   :  { %v7935_v36 = vmax.f32 %v5616_v0, %v5624_v51  ;;  %v6214_v30 = vpack.i.bf16 %v7926_v60, %v7924_v40  ;;  %v7939_v18 = vpack.c.bf16 %v2427_v55, %v2425_v43  ;;  %3016 = vmatprep.subr.bf16.mxu1 %v6372_v52  ;;  %v5625_v14 = vadd.f32 %v8932_v32, %v7510_v3 }
 0x384   :  { %5064 = vmatprep.mubr.msk.bf16.mxu1 %vm2679_vm4, %v7928_v57  ;;  %v5627_v0 = vadd.f32 %v8933_v26, %v7519_v7  ;;  %v5633_v26 = vadd.f32 %v7622_v47, %v7510_v3  ;;  %v6379_v47 = vld [vmem:[%s8835_s3 + $0x158] ss:$8 sps:$4 sm:$0xff]  }
 0x385   :  { %v1973_v37 = vpop.f32.mrb[80].mxu0  ;;  %6215 = vrot.lane.b32.xlu0 %v6214_v30, %s6583_s26  ;;  %2754 = vmatmul.mubr.bf16.gmra.mrb[100].mxu1 %v7939_v18  ;;  %v6219_v13 = vpack.i.bf16 %v7935_v36, %v7930_v12 }
 0x386   :  { %v5626_v27 = vadd.f32 %v5625_v14, %v1973_v37  ;;  %v1975_v15 = vpop.f32.mrb[81].mxu0  ;;  %3017 = vmatpush1.bf16.msra.mxu1 %v6370_v44  ;;  %v6381_v14 = vld [vmem:[%s8835_s3 + $0x15c] ss:$8 sps:$4 sm:$0xff]   ;;  %v5635_v37 = vadd.f32 %v7626_v46, %v7519_v7 }
 0x387   :  { %v5628_v49 = vadd.f32 %v5627_v0, %v1975_v15  ;;  %v1977_v50 = vpop.f32.mrb[82].mxu0  ;;  %6220 = vrot.lane.b32.xlu1 %v6219_v13, %s6583_s26  ;;  %v6146_v22 = vpop.permute.xlu0 %6145  ;;  %3018 = vmatprep.subr.bf16.mxu1 %v6375_v35  ;;  %v6376_v35 = vld [vmem:[%s8835_s3 + $0x148] ss:$8 sps:$4 sm:$0xff]  }
 0x388   :  { %v5630_v52 = vadd.f32 %v5629_v63, %v1977_v50  ;;  %v6148_v58 = vunpack.i.h.bf16 %v6146_v22  ;;  %v6147_v54 = vunpack.i.l.bf16 %v6146_v22  ;;  %v1979_v9 = vpop.f32.mrb[83].mxu0 }
 0x389   :  { %v5632_v1 = vadd.f32 %v5631_v45, %v1979_v9  ;;  %v6151_v51 = vpop.permute.xlu1 %6150 }
 0x38a   :  { %v2382_v43 = vmax.f32 %v7670_v59, %v6148_v58  ;;  %v2305_v55 = vsel %vm2300_vm3, %v6147_v54, %v6148_v58  ;;  %v6153_v44 = vunpack.i.h.bf16 %v6151_v51  ;;  %v6152_v30 = vunpack.i.l.bf16 %v6151_v51  ;;  %3019 = vmatpush1.bf16.msra.mxu1 %v6373_v25 }
 0x38b   :  { %v2381_v32 = vmax.f32 %v7666_v2, %v2305_v55  ;;  %3020 = vmatprep.subr.bf16.mxu1 %v6378_v41  ;;  %v5637_v2 = vadd.f32 %v7630_v53, %v7510_v3  ;;  %v6384_v53 = vld [vmem:[%s8835_s3 + $0x16c] ss:$8 sps:$4 sm:$0xff]   ;;  %v6382_v55 = vld [vmem:[%s8835_s3 + $0x168] ss:$8 sps:$4 sm:$0xff]  }
 0x38c   :  { %v2384_v59 = vmax.f32 %v7678_v5, %v6153_v44  ;;  %v2306_v0 = vsel %vm2300_vm3, %v6152_v30, %v6153_v44  ;;  %v2430_v63 = vmax.f32 %v2382_v43, 0.0  ;;  %v5639_v5 = vadd.f32 %v7636_v20, %v7519_v7 }
 0x38d   :  { %v1983_v13 = vpop.f32.mrb[84].mxu0  ;;  %v2383_v24 = vmax.f32 %v7674_v16, %v2306_v0  ;;  %v2429_v50 = vmax.f32 %v2381_v32, 0.0 }
 0x38e   :  { %v2432_v15 = vmax.f32 %v2384_v59, 0.0  ;;  %v5634_v25 = vadd.f32 %v5633_v26, %v1983_v13  ;;  %v1985_v39 = vpop.f32.mrb[85].mxu0  ;;  %3021 = vmatpush1.bf16.msra.mxu1 %v6376_v35  ;;  %v8937_v35 = vld [vmem:[#allocation37_spill] sm:$0xff]  ;;  %v8938_v26 = vld [vmem:[#allocation38_spill] sm:$0xff] }
 0x38f   :  { %v5636_v45 = vadd.f32 %v5635_v37, %v1985_v39  ;;  %v1987_v46 = vpop.f32.mrb[86].mxu0  ;;  %v2431_v22 = vmax.f32 %v2383_v24, 0.0  ;;  %3022 = vmatprep.subr.bf16.mxu1 %v6381_v14  ;;  %v5643_v32 = vadd.f32 %v8937_v35, %v7519_v7  ;;  %v5645_v59 = vadd.f32 %v8938_v26, %v7510_v3  ;;  %v6385_v13 = vld [vmem:[%s8835_s3 + $0x178] ss:$8 sps:$4 sm:$0xff]   ;;  %v8939_v24 = vld [vmem:[#allocation39_spill] sm:$0xff] }
 0x390   :  { %v7991_v16 = vpack.c.bf16 %v2432_v15, %v2430_v63  ;;  %v7993_v41 = vmax.f32 %v5626_v27, %v5634_v25  ;;  %v5638_v58 = vadd.f32 %v5637_v2, %v1987_v46  ;;  %v1989_v54 = vpop.f32.mrb[87].mxu0  ;;  %v5647_v2 = vadd.f32 %v8939_v24, %v7519_v7  ;;  %v6390_v39 = vld [vmem:[%s8835_s3 + $0x18c] ss:$8 sps:$4 sm:$0xff]  }
 0x391   :  { %v7995_v9 = vmax.f32 %v5628_v49, %v5636_v45  ;;  %v5640_v51 = vadd.f32 %v5639_v5, %v1989_v54  ;;  %v7997_v43 = vpack.c.bf16 %v2431_v22, %v2429_v50  ;;  %v6387_v49 = vld [vmem:[%s8835_s3 + $0x17c] ss:$8 sps:$4 sm:$0xff]   ;;  %v5651_v35 = vadd.f32 %v7672_v29, %v7519_v7 }
 0x392   :  { %v7999_v20 = vmax.f32 %v5630_v52, %v5638_v58  ;;  %5065 = vmatprep.mubr.msk.bf16.mxu1 %vm2679_vm4, %v7991_v16  ;;  %3023 = vmatpush1.bf16.msra.mxu1 %v6379_v47  ;;  %v8936_v52 = vld [vmem:[#allocation36_spill] sm:$0xff] }
 0x393   :  { %v8006_v44 = vmax.f32 %v5632_v1, %v5640_v51  ;;  %2764 = vmatmul.mubr.bf16.gmra.mrb[104].mxu1 %v7997_v43  ;;  %v6224_v27 = vpack.i.bf16 %v7995_v9, %v7993_v41  ;;  %3024 = vmatprep.subr.bf16.mxu1 %v6384_v53  ;;  %v5641_v30 = vadd.f32 %v8936_v52, %v7510_v3 }
 0x394   :  { %v5649_v52 = vadd.f32 %v7668_v4, %v7510_v3  ;;  %v6391_v4 = vld [vmem:[%s8835_s3 + $0x198] ss:$8 sps:$4 sm:$0xff]  }
 0x395   :  { %v1993_v14 = vpop.f32.mrb[88].mxu0  ;;  %6225 = vrot.lane.b32.xlu0 %v6224_v27, %s6583_s26  ;;  %v6229_v1 = vpack.i.bf16 %v8006_v44, %v7999_v20 }
 0x396   :  { %v5642_v0 = vadd.f32 %v5641_v30, %v1993_v14  ;;  %v1995_v37 = vpop.f32.mrb[89].mxu0  ;;  %3025 = vmatpush1.bf16.msra.mxu1 %v6382_v55  ;;  %v6388_v55 = vld [vmem:[%s8835_s3 + $0x188] ss:$8 sps:$4 sm:$0xff]  }
 0x397   :  { %v5644_v63 = vadd.f32 %v5643_v32, %v1995_v37  ;;  %v1997_v15 = vpop.f32.mrb[90].mxu0  ;;  %6230 = vrot.lane.b32.xlu1 %v6229_v1, %s6583_s26  ;;  %v6156_v25 = vpop.permute.xlu0 %6155  ;;  %3026 = vmatprep.subr.bf16.mxu1 %v6387_v49  ;;  %v6393_v49 = vld [vmem:[%s8835_s3 + $0x19c] ss:$8 sps:$4 sm:$0xff]  }
 0x398   :  { %v5646_v47 = vadd.f32 %v5645_v59, %v1997_v15  ;;  %v6158_v5 = vunpack.i.h.bf16 %v6156_v25  ;;  %v6157_v45 = vunpack.i.l.bf16 %v6156_v25  ;;  %v1999_v46 = vpop.f32.mrb[91].mxu0 }
 0x399   :  { %v5648_v50 = vadd.f32 %v5647_v2, %v1999_v46  ;;  %v6161_v22 = vpop.permute.xlu1 %6160 }
 0x39a   :  { %v2386_v53 = vmax.f32 %v7706_v38, %v6158_v5  ;;  %v2307_v58 = vsel %vm2300_vm3, %v6157_v45, %v6158_v5  ;;  %v6163_v54 = vunpack.i.h.bf16 %v6161_v22  ;;  %v6162_v51 = vunpack.i.l.bf16 %v6161_v22  ;;  %3027 = vmatpush1.bf16.msra.mxu1 %v6385_v13  ;;  %v6397_v22 = vld [vmem:[%s8835_s3 + $0x1b8] ss:$8 sps:$4 sm:$0xff]  }
 0x39b   :  { %v2385_v27 = vmax.f32 %v7704_v56, %v2307_v58  ;;  %3028 = vmatprep.subr.bf16.mxu1 %v6390_v39  ;;  %v5653_v56 = vadd.f32 %v7676_v8, %v7510_v3  ;;  %v6396_v3 = vld [vmem:[%s8835_s3 + $0x1ac] ss:$8 sps:$4 sm:$0xff]  }
 0x39c   :  { %v2388_v38 = vmax.f32 %v7710_v17, %v6163_v54  ;;  %v2308_v30 = vsel %vm2300_vm3, %v6162_v51, %v6163_v54  ;;  %v2434_v1 = vmax.f32 %v2386_v53, 0.0  ;;  %v5655_v17 = vadd.f32 %v7682_v48, %v7519_v7  ;;  %v6394_v48 = vld [vmem:[%s8835_s3 + $0x1a8] ss:$8 sps:$4 sm:$0xff]  }
 0x39d   :  { %v2387_v32 = vmax.f32 %v7708_v33, %v2308_v30  ;;  %v2003_v14 = vpop.f32.mrb[92].mxu0  ;;  %v2433_v13 = vmax.f32 %v2385_v27, 0.0 }
 0x39e   :  { %v2436_v26 = vmax.f32 %v2388_v38, 0.0  ;;  %v5650_v59 = vadd.f32 %v5649_v52, %v2003_v14  ;;  %v2005_v37 = vpop.f32.mrb[93].mxu0  ;;  %3029 = vmatpush1.bf16.msra.mxu1 %v6388_v55  ;;  %v6404_v14 = vld [vmem:[%s8835_s3 + $0x1d4] ss:$8 sps:$4 sm:$0xff]  }
 0x39f   :  { %v2435_v29 = vmax.f32 %v2387_v32, 0.0  ;;  %v5652_v24 = vadd.f32 %v5651_v35, %v2005_v37  ;;  %v2007_v33 = vpop.f32.mrb[94].mxu0  ;;  %3030 = vmatprep.subr.bf16.mxu1 %v6393_v49 }
 0x3a0   :  { %v8058_v8 = vpack.c.bf16 %v2436_v26, %v2434_v1  ;;  %v8060_v2 = vmax.f32 %v5642_v0, %v5650_v59  ;;  %v5654_v15 = vadd.f32 %v5653_v56, %v2007_v33  ;;  %v2009_v25 = vpop.f32.mrb[95].mxu0 }
 0x3a1   :  { %v8062_v39 = vmax.f32 %v5644_v63, %v5652_v24  ;;  %v5656_v5 = vadd.f32 %v5655_v17, %v2009_v25  ;;  %v8064_v45 = vpack.c.bf16 %v2435_v29, %v2433_v13  ;;  %v6399_v63 = vld [vmem:[%s8835_s3 + $0x1bc] ss:$8 sps:$4 sm:$0xff]  }
 0x3a2   :  { %v8066_v7 = vmax.f32 %v5646_v47, %v5654_v15  ;;  %5066 = vmatprep.mubr.msk.bf16.mxu1 %vm2679_vm4, %v8058_v8  ;;  %3031 = vmatpush1.bf16.msra.mxu1 %v6391_v4  ;;  %v5099_v47 = vld [vmem:[%s8835_s3 + $0x1c8] sm:$0x77] }
 0x3a3   :  { %v8073_v46 = vmax.f32 %v5648_v50, %v5656_v5  ;;  %2774 = vmatmul.mubr.bf16.gmra.mrb[108].mxu1 %v8064_v45  ;;  %v6234_v0 = vpack.i.bf16 %v8062_v39, %v8060_v2  ;;  %3032 = vmatprep.subr.bf16.mxu1 %v6396_v3  ;;  %v5129_v58 = vcombine.high %v5099_v47, %v5099_v47 }
 0x3a4   :  { %v5128_v54 = vcombine.low %v5099_v47, %v5099_v47 }
 0x3a5   :  { %6235 = vrot.lane.b32.xlu0 %v6234_v0, %s6583_s26  ;;  %v6239_v50 = vpack.i.bf16 %v8073_v46, %v8066_v7 }
 0x3a6   :  { %3033 = vmatpush1.bf16.msra.mxu1 %v6394_v48  ;;  %v3003_v32 = vsel %vm2704_vm2, %v5128_v54, 0 }
 0x3a7   :  { %6240 = vrot.lane.b32.xlu1 %v6239_v50, %s6583_s26  ;;  %v6166_v53 = vpop.permute.xlu0 %6165  ;;  %3034 = vmatprep.subr.bf16.mxu1 %v6399_v63 }
 0x3a8   :  { %v6168_v51 = vunpack.i.h.bf16 %v6166_v53  ;;  %v6167_v55 = vunpack.i.l.bf16 %v6166_v53 }
 0x3a9   :  { %v6171_v27 = vpop.permute.xlu1 %6170 }
 0x3aa   :  { %v2390_v49 = vmax.f32 %v7739_v21, %v6168_v51  ;;  %v2309_v52 = vsel %vm2300_vm3, %v6167_v55, %v6168_v51  ;;  %v6173_v38 = vunpack.i.h.bf16 %v6171_v27  ;;  %v6172_v30 = vunpack.i.l.bf16 %v6171_v27  ;;  %3035 = vmatpush1.bf16.msra.mxu1 %v6397_v22  ;;  %v8940_v51 = vld [vmem:[#allocation3_spill] sm:$0xff] }
 0x3ab   :  { %v2389_v35 = vmax.f32 %v7737_v19, %v2309_v52  ;;  %5130 = vmatprep.subr.msk.bf16.mxu1 %vm2704_vm2, %v5129_v58  ;;  %v8941_v52 = vld [vmem:[#allocation2_spill] sm:$0xff] }
 0x3ac   :  { %v2392_v56 = vmax.f32 %v7743_v62, %v6173_v38  ;;  %v2310_v1 = vsel %vm2300_vm3, %v6172_v30, %v6173_v38  ;;  %v2438_v26 = vmax.f32 %v2390_v49, 0.0  ;;  %v8942_v30 = vld [vmem:[#allocation5_spill] sm:$0xff] }
 0x3ad   :  { %v2391_v21 = vmax.f32 %v7741_v23, %v2310_v1  ;;  %v2437_v37 = vmax.f32 %v2389_v35, 0.0 }
 0x3ae   :  { %v2440_v59 = vmax.f32 %v2392_v56, 0.0  ;;  %3037 = vmatpush1.bf16.msra.mxu1 %v3003_v32 }
 0x3af   :  { %v2439_v4 = vmax.f32 %v2391_v21, 0.0  ;;  %3337 = vmatprep.subr.bf16.mxu1 %v6404_v14  ;;  %v8943_v14 = vld [vmem:[#allocation4_spill] sm:$0xff] }
 0x3b0   :  { %v8102_v19 = vpack.c.bf16 %v2440_v59, %v2438_v26 }
 0x3b1   :  { %v8104_v17 = vpack.c.bf16 %v2439_v4, %v2437_v37 }
 0x3b2   :  { %5067 = vmatprep.mubr.msk.bf16.mxu1 %vm2679_vm4, %v8102_v19 }
 0x3b3   :  { %2784 = vmatmul.mubr.bf16.gmra.mrb[112].mxu1 %v8104_v17 }
 0x3b7   :  { %v6176_v62 = vpop.permute.xlu0 %6175 }
 0x3b8   :  { %v6178_v13 = vunpack.i.h.bf16 %v6176_v62  ;;  %v6177_v29 = vunpack.i.l.bf16 %v6176_v62 }
 0x3b9   :  { %v6181_v24 = vpop.permute.xlu1 %6180 }
 0x3ba   :  { %v2394_v23 = vmax.f32 %v7769_v31, %v6178_v13  ;;  %v2311_v33 = vsel %vm2300_vm3, %v6177_v29, %v6178_v13  ;;  %v6183_v3 = vunpack.i.h.bf16 %v6181_v24  ;;  %v6182_v15 = vunpack.i.l.bf16 %v6181_v24 }
 0x3bb   :  { %v2393_v25 = vmax.f32 %v7767_v11, %v2311_v33 }
 0x3bc   :  { %v2396_v5 = vmax.f32 %v7773_v42, %v6183_v3  ;;  %v2312_v48 = vsel %vm2300_vm3, %v6182_v15, %v6183_v3  ;;  %v2442_v63 = vmax.f32 %v2394_v23, 0.0  ;;  %v8944_v23 = vld [vmem:[#allocation7_spill] sm:$0xff] }
 0x3bd   :  { %v2395_v0 = vmax.f32 %v7771_v34, %v2312_v48  ;;  %v2441_v50 = vmax.f32 %v2393_v25, 0.0 }
 0x3be   :  { %v2444_v47 = vmax.f32 %v2396_v5, 0.0  ;;  %v8945_v5 = vld [vmem:[#allocation6_spill] sm:$0xff] }
 0x3bf   :  { %v2443_v22 = vmax.f32 %v2395_v0, 0.0  ;;  %v8946_v0 = vld [vmem:[#allocation9_spill] sm:$0xff] }
 0x3c0   :  { %v8115_v53 = vpack.c.bf16 %v2444_v47, %v2442_v63 }
 0x3c1   :  { %v8117_v58 = vpack.c.bf16 %v2443_v22, %v2441_v50  ;;  %v8947_v50 = vld [vmem:[#allocation8_spill] sm:$0xff] }
 0x3c2   :  { %5068 = vmatprep.mubr.msk.bf16.mxu1 %vm2679_vm4, %v8115_v53 }
 0x3c3   :  { %2794 = vmatmul.mubr.bf16.gmra.mrb[116].mxu1 %v8117_v58 }
 0x3c7   :  { %v6186_v11 = vpop.permute.xlu0 %6185 }
 0x3c8   :  { %v6188_v31 = vunpack.i.h.bf16 %v6186_v11  ;;  %v6187_v42 = vunpack.i.l.bf16 %v6186_v11 }
 0x3c9   :  { %v6191_v54 = vpop.permute.xlu1 %6190 }
 0x3ca   :  { %v2398_v55 = vmax.f32 %v8940_v51, %v6188_v31  ;;  %v2313_v34 = vsel %vm2300_vm3, %v6187_v42, %v6188_v31  ;;  %v6193_v27 = vunpack.i.h.bf16 %v6191_v54  ;;  %v6192_v49 = vunpack.i.l.bf16 %v6191_v54 }
 0x3cb   :  { %v2397_v38 = vmax.f32 %v8941_v52, %v2313_v34  ;;  %v6402_v34 = vld [vmem:[%s8835_s3 + $0x1d0] ss:$8 sps:$4 sm:$0xff]  }
 0x3cc   :  { %v2400_v35 = vmax.f32 %v8942_v30, %v6193_v27  ;;  %v2314_v32 = vsel %vm2300_vm3, %v6192_v49, %v6193_v27  ;;  %v2446_v1 = vmax.f32 %v2398_v55, 0.0  ;;  %v6407_v27 = vld [vmem:[%s8835_s3 + $0x1e4] ss:$8 sps:$4 sm:$0xff]   ;;  %v6405_v49 = vld [vmem:[%s8835_s3 + $0x1e0] ss:$8 sps:$4 sm:$0xff]  }
 0x3cd   :  { %v2399_v56 = vmax.f32 %v8943_v14, %v2314_v32  ;;  %v2445_v26 = vmax.f32 %v2397_v38, 0.0  ;;  %v6408_v52 = vld [vmem:[%s8835_s3 + $0x1f0] ss:$8 sps:$4 sm:$0xff]   ;;  %v6411_v38 = vld [vmem:[%s8835_s3 + $0x200] ss:$8 sps:$4 sm:$0xff]  }
 0x3ce   :  { %v2448_v21 = vmax.f32 %v2400_v35, 0.0  ;;  %v6416_v30 = vld [vmem:[%s8835_s3 + $0x214] ss:$8 sps:$4 sm:$0xff]   ;;  %v6414_v35 = vld [vmem:[%s8835_s3 + $0x210] ss:$8 sps:$4 sm:$0xff]  }
 0x3cf   :  { %v2447_v59 = vmax.f32 %v2399_v56, 0.0  ;;  %v6419_v32 = vld [vmem:[%s8835_s3 + $0x224] ss:$8 sps:$4 sm:$0xff]   ;;  %v6417_v14 = vld [vmem:[%s8835_s3 + $0x220] ss:$8 sps:$4 sm:$0xff]  }
 0x3d0   :  { %v8128_v37 = vpack.c.bf16 %v2448_v21, %v2446_v1  ;;  %v6422_v56 = vld [vmem:[%s8835_s3 + $0x234] ss:$8 sps:$4 sm:$0xff]   ;;  %v6420_v1 = vld [vmem:[%s8835_s3 + $0x230] ss:$8 sps:$4 sm:$0xff]   ;;  %v6425_v21 = vld [vmem:[%s8835_s3 + $0x244] ss:$8 sps:$4 sm:$0xff]  }
 0x3d1   :  { %v8130_v4 = vpack.c.bf16 %v2447_v59, %v2445_v26  ;;  %v6423_v26 = vld [vmem:[%s8835_s3 + $0x240] ss:$8 sps:$4 sm:$0xff]   ;;  %v6428_v59 = vld [vmem:[%s8835_s3 + $0x254] ss:$8 sps:$4 sm:$0xff]  }
 0x3d2   :  { %5069 = vmatprep.mubr.msk.bf16.mxu1 %vm2679_vm4, %v8128_v37 }
 0x3d3   :  { %2804 = vmatmul.mubr.bf16.gmra.mrb[120].mxu1 %v8130_v4 }
 0x3d7   :  { %v6196_v62 = vpop.permute.xlu0 %6195 }
 0x3d8   :  { %v6198_v13 = vunpack.i.h.bf16 %v6196_v62  ;;  %v6197_v29 = vunpack.i.l.bf16 %v6196_v62  ;;  %v6426_v62 = vld [vmem:[%s8835_s3 + $0x250] ss:$8 sps:$4 sm:$0xff]  }
 0x3d9   :  { %v6201_v24 = vpop.permute.xlu1 %6200 }
 0x3da   :  { %v2402_v33 = vmax.f32 %v8944_v23, %v6198_v13  ;;  %v2315_v3 = vsel %vm2300_vm3, %v6197_v29, %v6198_v13  ;;  %v6203_v15 = vunpack.i.h.bf16 %v6201_v24  ;;  %v6202_v25 = vunpack.i.l.bf16 %v6201_v24  ;;  %v6431_v13 = vld [vmem:[%s8835_s3 + $0x264] ss:$8 sps:$4 sm:$0xff]   ;;  %v6429_v24 = vld [vmem:[%s8835_s3 + $0x260] ss:$8 sps:$4 sm:$0xff]  }
 0x3db   :  { %v2401_v48 = vmax.f32 %v8945_v5, %v2315_v3  ;;  %v6437_v5 = vld [vmem:[%s8835_s3 + $0x284] ss:$8 sps:$4 sm:$0xff]  }
 0x3dc   :  { %v2404_v63 = vmax.f32 %v8946_v0, %v6203_v15  ;;  %v2316_v47 = vsel %vm2300_vm3, %v6202_v25, %v6203_v15  ;;  %v2450_v11 = vmax.f32 %v2402_v33, 0.0  ;;  %v6434_v33 = vld [vmem:[%s8835_s3 + $0x274] ss:$8 sps:$4 sm:$0xff]   ;;  %v6432_v25 = vld [vmem:[%s8835_s3 + $0x270] ss:$8 sps:$4 sm:$0xff]  }
 0x3dd   :  { %v2403_v22 = vmax.f32 %v8947_v50, %v2316_v47  ;;  %v2449_v42 = vmax.f32 %v2401_v48, 0.0  ;;  %v6435_v50 = vld [vmem:[%s8835_s3 + $0x280] ss:$8 sps:$4 sm:$0xff]  }
 0x3de   :  { %v2452_v31 = vmax.f32 %v2404_v63, 0.0 }
 0x3df   :  { %v2451_v54 = vmax.f32 %v2403_v22, 0.0  ;;  %v6440_v22 = vld [vmem:[%s8835_s3 + $0x294] ss:$8 sps:$4 sm:$0xff]  }
 0x3e0   :  { %v8141_v51 = vpack.c.bf16 %v2452_v31, %v2450_v11 }
 0x3e1   :  { %v8143_v55 = vpack.c.bf16 %v2451_v54, %v2449_v42  ;;  %v6438_v42 = vld [vmem:[%s8835_s3 + $0x290] ss:$8 sps:$4 sm:$0xff]  }
 0x3e2   :  { %5070 = vmatprep.mubr.msk.bf16.mxu1 %vm2679_vm4, %v8141_v51 }
 0x3e3   :  { %2814 = vmatmul.mubr.bf16.gmra.mrb[124].mxu1 %v8143_v55 }
 0x3e4   :  { %5131 = vmatprep.mubr.msk.bf16.mxu1 %vm2679_vm4, %v7928_v57  ;;  %v6410_v57 = vld [vmem:[%s8835_s3 + $0x1f4] ss:$8 sps:$4 sm:$0xff]  }
 0x3e7   :  { %v6206_v23 = vpop.permute.xlu0 %6205 }
 0x3e8   :  { %v6208_v15 = vunpack.i.h.bf16 %v6206_v23  ;;  %v6207_v47 = vunpack.i.l.bf16 %v6206_v23  ;;  %v6464_v23 = vld [vmem:[%s8835_s3 + $0x318] ss:$8 sps:$4 sm:$0xff]  }
 0x3e9   :  { %v6211_v29 = vpop.permute.xlu1 %6210 }
 0x3ea   :  { %v6213_v3 = vunpack.i.h.bf16 %v6211_v29  ;;  %v6212_v0 = vunpack.i.l.bf16 %v6211_v29  ;;  %v2406_v63 = vmax.f32 %v7865_v10, %v6208_v15  ;;  %v2317_v10 = vsel %vm2300_vm3, %v6207_v47, %v6208_v15  ;;  %v6461_v29 = vld [vmem:[%s8835_s3 + $0x308] ss:$8 sps:$4 sm:$0xff]   ;;  %v6472_v15 = vld [vmem:[%s8835_s3 + $0x33c] ss:$8 sps:$4 sm:$0xff]  }
 0x3eb   :  { %3041 = vmatmul.mubr.bf16.vlgmr.msra.gmra.mrb[96].mxu1 %v7939_v18  ;;  %v6413_v18 = vld [vmem:[%s8835_s3 + $0x204] ss:$8 sps:$4 sm:$0xff]  }
 0x3ec   :  { %5132 = vmatprep.mubr.msk.bf16.mxu1 %vm2679_vm4, %v7991_v16  ;;  %3338 = vmatpush1.bf16.msra.mxu1 %v6402_v34  ;;  %v2408_v48 = vmax.f32 %v7872_v28, %v6213_v3  ;;  %v2318_v11 = vsel %vm2300_vm3, %v6212_v0, %v6213_v3  ;;  %v2454_v31 = vmax.f32 %v2406_v63, 0.0  ;;  %v6443_v34 = vld [vmem:[%s8835_s3 + $0x2a4] ss:$8 sps:$4 sm:$0xff]   ;;  %v6467_v3 = vld [vmem:[%s8835_s3 + $0x328] ss:$8 sps:$4 sm:$0xff]  }
 0x3ed   :  { %3339 = vmatprep.subr.bf16.mxu1 %v6407_v27  ;;  %v2407_v54 = vmax.f32 %v7867_v61, %v2318_v11  ;;  %v6441_v61 = vld [vmem:[%s8835_s3 + $0x2a0] ss:$8 sps:$4 sm:$0xff]   ;;  %v6478_v47 = vld [vmem:[%s8835_s3 + $0x35c] ss:$8 sps:$4 sm:$0xff]   ;;  %v6481_v11 = vld [vmem:[%s8835_s3 + $0x36c] ss:$8 sps:$4 sm:$0xff]  }
 0x3ee   :  { %v2456_v28 = vmax.f32 %v2408_v48, 0.0  ;;  %v6473_v0 = vld [vmem:[%s8835_s3 + $0x348] ss:$8 sps:$4 sm:$0xff]  }
 0x3f0   :  { %3340 = vmatpush1.bf16.msra.mxu1 %v6405_v49  ;;  %v8251_v27 = vpack.c.bf16 %v2456_v28, %v2454_v31  ;;  %v5167_v49 = vld [vmem:[%s8835_s3 + $0x2b0] sm:$0x77]  ;;  %v6476_v28 = vld [vmem:[%s8835_s3 + $0x358] ss:$8 sps:$4 sm:$0xff]  }
 0x3f1   :  { %3341 = vmatprep.subr.bf16.mxu1 %v6410_v57  ;;  %v2405_v57 = vmax.f32 %v7863_v6, %v2317_v10 }
 0x3f3   :  { %3051 = vmatmul.mubr.bf16.gmra.mrb[100].mxu1 %v7997_v43 }
 0x3f4   :  { %5133 = vmatprep.mubr.msk.bf16.mxu1 %vm2679_vm4, %v8058_v8  ;;  %3342 = vmatpush1.bf16.msra.mxu1 %v6408_v52  ;;  %v2455_v52 = vmax.f32 %v2407_v54, 0.0 }
 0x3f5   :  { %3343 = vmatprep.subr.bf16.mxu1 %v6413_v18  ;;  %v5197_v18 = vcombine.high %v5167_v49, %v5167_v49 }
 0x3f7   :  { %v6216_v63 = vpop.permute.xlu0 %6215 }
 0x3f8   :  { %3344 = vmatpush1.bf16.msra.mxu1 %v6411_v38  ;;  %v5196_v38 = vcombine.low %v5167_v49, %v5167_v49  ;;  %v6217_v54 = vunpack.i.l.bf16 %v6216_v63  ;;  %v6484_v49 = vld [vmem:[%s8835_s3 + $0x37c] ss:$8 sps:$4 sm:$0xff]  }
 0x3f9   :  { %3345 = vmatprep.subr.bf16.mxu1 %v6416_v30  ;;  %v2453_v30 = vmax.f32 %v2405_v57, 0.0  ;;  %v6221_v48 = vpop.permute.xlu1 %6220 }
 0x3fa   :  { %v3332_v6 = vsel %vm2704_vm2, %v5196_v38, 0  ;;  %v6222_v10 = vunpack.i.l.bf16 %v6221_v48  ;;  %v6487_v38 = vld [vmem:[%s8835_s3 + $0x38c] ss:$8 sps:$4 sm:$0xff]  }
 0x3fb   :  { %3061 = vmatmul.mubr.bf16.gmra.mrb[104].mxu1 %v8064_v45 }
 0x3fc   :  { %5134 = vmatprep.mubr.msk.bf16.mxu1 %vm2679_vm4, %v8102_v19  ;;  %3346 = vmatpush1.bf16.msra.mxu1 %v6414_v35  ;;  %v8263_v35 = vpack.c.bf16 %v2455_v52, %v2453_v30  ;;  %v6482_v52 = vld [vmem:[%s8835_s3 + $0x378] ss:$8 sps:$4 sm:$0xff]  }
 0x3fd   :  { %3347 = vmatprep.subr.bf16.mxu1 %v6419_v32  ;;  %v6448_v32 = vld [vmem:[%s8835_s3 + $0x2bc] ss:$8 sps:$4 sm:$0xff]  }
 0x400   :  { %3348 = vmatpush1.bf16.msra.mxu1 %v6417_v14  ;;  %v6446_v14 = vld [vmem:[%s8835_s3 + $0x2b8] ss:$8 sps:$4 sm:$0xff]  }
 0x401   :  { %3349 = vmatprep.subr.bf16.mxu1 %v6422_v56  ;;  %v6451_v56 = vld [vmem:[%s8835_s3 + $0x2cc] ss:$8 sps:$4 sm:$0xff]  }
 0x403   :  { %3071 = vmatmul.mubr.bf16.gmra.mrb[108].mxu1 %v8104_v17 }
 0x404   :  { %5135 = vmatprep.mubr.msk.bf16.mxu1 %vm2679_vm4, %v8115_v53  ;;  %3350 = vmatpush1.bf16.msra.mxu1 %v6420_v1  ;;  %v6454_v1 = vld [vmem:[%s8835_s3 + $0x2dc] ss:$8 sps:$4 sm:$0xff]  }
 0x405   :  { %3351 = vmatprep.subr.bf16.mxu1 %v6425_v21  ;;  %v6452_v21 = vld [vmem:[%s8835_s3 + $0x2d8] ss:$8 sps:$4 sm:$0xff]  }
 0x408   :  { %3352 = vmatpush1.bf16.msra.mxu1 %v6423_v26  ;;  %v6455_v26 = vld [vmem:[%s8835_s3 + $0x2e8] ss:$8 sps:$4 sm:$0xff]  }
 0x409   :  { %3353 = vmatprep.subr.bf16.mxu1 %v6428_v59  ;;  %v6460_v59 = vld [vmem:[%s8835_s3 + $0x2fc] ss:$8 sps:$4 sm:$0xff]  }
 0x40b   :  { %3081 = vmatmul.mubr.bf16.gmra.mrb[112].mxu1 %v8117_v58 }
 0x40c   :  { %5136 = vmatprep.mubr.msk.bf16.mxu1 %vm2679_vm4, %v8128_v37  ;;  %3354 = vmatpush1.bf16.msra.mxu1 %v6426_v62  ;;  %v6458_v62 = vld [vmem:[%s8835_s3 + $0x2f8] ss:$8 sps:$4 sm:$0xff]  }
 0x40d   :  { %3355 = vmatprep.subr.bf16.mxu1 %v6431_v13  ;;  %v6463_v13 = vld [vmem:[%s8835_s3 + $0x30c] ss:$8 sps:$4 sm:$0xff]  }
 0x410   :  { %3356 = vmatpush1.bf16.msra.mxu1 %v6429_v24  ;;  %v6466_v24 = vld [vmem:[%s8835_s3 + $0x31c] ss:$8 sps:$4 sm:$0xff]  }
 0x411   :  { %3357 = vmatprep.subr.bf16.mxu1 %v6434_v33  ;;  %v6469_v33 = vld [vmem:[%s8835_s3 + $0x32c] ss:$8 sps:$4 sm:$0xff]  }
 0x413   :  { %3091 = vmatmul.mubr.bf16.gmra.mrb[116].mxu1 %v8130_v4 }
 0x414   :  { %5137 = vmatprep.mubr.msk.bf16.mxu1 %vm2679_vm4, %v8141_v51  ;;  %3358 = vmatpush1.bf16.msra.mxu1 %v6432_v25  ;;  %v6470_v25 = vld [vmem:[%s8835_s3 + $0x338] ss:$8 sps:$4 sm:$0xff]  }
 0x415   :  { %3359 = vmatprep.subr.bf16.mxu1 %v6437_v5  ;;  %v6475_v5 = vld [vmem:[%s8835_s3 + $0x34c] ss:$8 sps:$4 sm:$0xff]  }
 0x418   :  { %3360 = vmatpush1.bf16.msra.mxu1 %v6435_v50  ;;  %v6223_v50 = vunpack.i.h.bf16 %v6221_v48  ;;  %v6511_v48 = vld [vmem:[%s8835_s3 + $0x410] ss:$8 sps:$4 sm:$0xff]  }
 0x419   :  { %3361 = vmatprep.subr.bf16.mxu1 %v6440_v22  ;;  %v6218_v22 = vunpack.i.h.bf16 %v6216_v63  ;;  %v6514_v63 = vld [vmem:[%s8835_s3 + $0x420] ss:$8 sps:$4 sm:$0xff]  }
 0x41a   :  { %v2412_v31 = vmax.f32 %v7935_v36, %v6223_v50  ;;  %v2320_v57 = vsel %vm2300_vm3, %v6222_v10, %v6223_v50  ;;  %v6231_v50 = vpop.permute.xlu1 %6230 }
 0x41b   :  { %3101 = vmatmul.mubr.bf16.gmra.mrb[120].mxu1 %v8143_v55 }
 0x41c   :  { %5138 = vmatprep.mubr.msk.bf16.mxu1 %vm2679_vm4, %v8251_v27  ;;  %3362 = vmatpush1.bf16.msra.mxu1 %v6438_v42  ;;  %v2410_v42 = vmax.f32 %v7926_v60, %v6218_v22  ;;  %v2460_v36 = vmax.f32 %v2412_v31, 0.0  ;;  %v2319_v60 = vsel %vm2300_vm3, %v6217_v54, %v6218_v22  ;;  %v6517_v22 = vld [vmem:[%s8835_s3 + $0x430] ss:$8 sps:$4 sm:$0xff]   ;;  %v6233_v31 = vunpack.i.h.bf16 %v6231_v50  ;;  %v6525_v54 = vld [vmem:[%s8835_s3 + $0x454] ss:$8 sps:$4 sm:$0xff]  }
 0x41d   :  { %3363 = vmatprep.subr.bf16.mxu1 %v6443_v34  ;;  %v6479_v34 = vld [vmem:[%s8835_s3 + $0x368] ss:$8 sps:$4 sm:$0xff]  }
 0x420   :  { %3364 = vmatpush1.bf16.msra.mxu1 %v6441_v61  ;;  %v2458_v61 = vmax.f32 %v2410_v42, 0.0  ;;  %v6520_v42 = vld [vmem:[%s8835_s3 + $0x440] ss:$8 sps:$4 sm:$0xff]  }
 0x421   :  { %5198 = vmatprep.subr.msk.bf16.mxu1 %vm2704_vm2, %v5197_v18  ;;  %v2411_v18 = vmax.f32 %v7930_v12, %v2320_v57  ;;  %v6485_v12 = vld [vmem:[%s8835_s3 + $0x388] ss:$8 sps:$4 sm:$0xff]  }
 0x422   :  { %v8374_v30 = vpack.c.bf16 %v2460_v36, %v2458_v61  ;;  %v6523_v61 = vld [vmem:[%s8835_s3 + $0x450] ss:$8 sps:$4 sm:$0xff]  }
 0x423   :  { %3111 = vmatmul.mubr.bf16.gmra.mrb[124].mxu1 %v8263_v35 }
 0x424   :  { %5199 = vmatprep.mubr.msk.bf16.mxu1 %vm2679_vm4, %v7991_v16  ;;  %3366 = vmatpush1.bf16.msra.mxu1 %v3332_v6  ;;  %v6449_v16 = vld [vmem:[%s8835_s3 + $0x2c8] ss:$8 sps:$4 sm:$0xff]   ;;  %v5235_v6 = vld [vmem:[%s8835_s3 + $0x398] sm:$0x77] }
 0x425   :  { %3666 = vmatprep.subr.bf16.mxu1 %v6448_v32  ;;  %v2409_v32 = vmax.f32 %v7924_v40, %v2319_v60  ;;  %v6528_v60 = vld [vmem:[%s8835_s3 + $0x464] ss:$8 sps:$4 sm:$0xff]  }
 0x42b   :  { %3370 = vmatmul.mubr.bf16.vlgmr.msra.gmra.mrb[96].mxu1 %v7997_v43  ;;  %v6457_v43 = vld [vmem:[%s8835_s3 + $0x2ec] ss:$8 sps:$4 sm:$0xff]  }
 0x42c   :  { %5200 = vmatprep.mubr.msk.bf16.mxu1 %vm2679_vm4, %v8058_v8  ;;  %3667 = vmatpush1.bf16.msra.mxu1 %v6446_v14  ;;  %v2459_v14 = vmax.f32 %v2411_v18, 0.0 }
 0x42d   :  { %3668 = vmatprep.subr.bf16.mxu1 %v6451_v56  ;;  %v5265_v56 = vcombine.high %v5235_v6, %v5235_v6 }
 0x430   :  { %3669 = vmatpush1.bf16.msra.mxu1 %v6449_v16  ;;  %v5264_v16 = vcombine.low %v5235_v6, %v5235_v6 }
 0x431   :  { %3670 = vmatprep.subr.bf16.mxu1 %v6454_v1  ;;  %v2457_v1 = vmax.f32 %v2409_v32, 0.0  ;;  %v6531_v32 = vld [vmem:[%s8835_s3 + $0x474] ss:$8 sps:$4 sm:$0xff]  }
 0x432   :  { %v3661_v40 = vsel %vm2704_vm2, %v5264_v16, 0 }
 0x433   :  { %3380 = vmatmul.mubr.bf16.gmra.mrb[100].mxu1 %v8064_v45 }
 0x434   :  { %5201 = vmatprep.mubr.msk.bf16.mxu1 %vm2679_vm4, %v8102_v19  ;;  %3671 = vmatpush1.bf16.msra.mxu1 %v6452_v21  ;;  %v8386_v21 = vpack.c.bf16 %v2459_v14, %v2457_v1  ;;  %v5303_v14 = vld [vmem:[%s8835_s3 + $0x480] sm:$0x77] }
 0x435   :  { %3672 = vmatprep.subr.bf16.mxu1 %v6457_v43  ;;  %v6492_v43 = vld [vmem:[%s8835_s3 + $0x3a4] ss:$8 sps:$4 sm:$0xff]   ;;  %v5333_v1 = vcombine.high %v5303_v14, %v5303_v14 }
 0x438   :  { %3673 = vmatpush1.bf16.msra.mxu1 %v6455_v26  ;;  %v6490_v26 = vld [vmem:[%s8835_s3 + $0x3a0] ss:$8 sps:$4 sm:$0xff]  }
 0x439   :  { %3674 = vmatprep.subr.bf16.mxu1 %v6460_v59  ;;  %v6495_v59 = vld [vmem:[%s8835_s3 + $0x3b4] ss:$8 sps:$4 sm:$0xff]  }
 0x43b   :  { %3390 = vmatmul.mubr.bf16.gmra.mrb[104].mxu1 %v8104_v17 }
 0x43c   :  { %5202 = vmatprep.mubr.msk.bf16.mxu1 %vm2679_vm4, %v8115_v53  ;;  %3675 = vmatpush1.bf16.msra.mxu1 %v6458_v62  ;;  %v6498_v62 = vld [vmem:[%s8835_s3 + $0x3c4] ss:$8 sps:$4 sm:$0xff]  }
 0x43d   :  { %3676 = vmatprep.subr.bf16.mxu1 %v6463_v13  ;;  %v6496_v13 = vld [vmem:[%s8835_s3 + $0x3c0] ss:$8 sps:$4 sm:$0xff]  }
 0x440   :  { %3677 = vmatpush1.bf16.msra.mxu1 %v6461_v29  ;;  %v6499_v29 = vld [vmem:[%s8835_s3 + $0x3d0] ss:$8 sps:$4 sm:$0xff]  }
 0x441   :  { %3678 = vmatprep.subr.bf16.mxu1 %v6466_v24  ;;  %v6504_v24 = vld [vmem:[%s8835_s3 + $0x3e4] ss:$8 sps:$4 sm:$0xff]  }
 0x443   :  { %3400 = vmatmul.mubr.bf16.gmra.mrb[108].mxu1 %v8117_v58 }
 0x444   :  { %5203 = vmatprep.mubr.msk.bf16.mxu1 %vm2679_vm4, %v8128_v37  ;;  %3679 = vmatpush1.bf16.msra.mxu1 %v6464_v23  ;;  %v6502_v23 = vld [vmem:[%s8835_s3 + $0x3e0] ss:$8 sps:$4 sm:$0xff]  }
 0x445   :  { %3680 = vmatprep.subr.bf16.mxu1 %v6469_v33  ;;  %v6507_v33 = vld [vmem:[%s8835_s3 + $0x3f4] ss:$8 sps:$4 sm:$0xff]  }
 0x448   :  { %3681 = vmatpush1.bf16.msra.mxu1 %v6467_v3  ;;  %v6505_v3 = vld [vmem:[%s8835_s3 + $0x3f0] ss:$8 sps:$4 sm:$0xff]  }
 0x449   :  { %3682 = vmatprep.subr.bf16.mxu1 %v6472_v15  ;;  %v6510_v15 = vld [vmem:[%s8835_s3 + $0x404] ss:$8 sps:$4 sm:$0xff]  }
 0x44b   :  { %3410 = vmatmul.mubr.bf16.gmra.mrb[112].mxu1 %v8130_v4 }
 0x44c   :  { %5204 = vmatprep.mubr.msk.bf16.mxu1 %vm2679_vm4, %v8141_v51  ;;  %3683 = vmatpush1.bf16.msra.mxu1 %v6470_v25  ;;  %v6508_v25 = vld [vmem:[%s8835_s3 + $0x400] ss:$8 sps:$4 sm:$0xff]  }
 0x44d   :  { %3684 = vmatprep.subr.bf16.mxu1 %v6475_v5  ;;  %v6513_v5 = vld [vmem:[%s8835_s3 + $0x414] ss:$8 sps:$4 sm:$0xff]  }
 0x450   :  { %3685 = vmatpush1.bf16.msra.mxu1 %v6473_v0  ;;  %v6516_v0 = vld [vmem:[%s8835_s3 + $0x424] ss:$8 sps:$4 sm:$0xff]  }
 0x451   :  { %3686 = vmatprep.subr.bf16.mxu1 %v6478_v47  ;;  %v6519_v47 = vld [vmem:[%s8835_s3 + $0x434] ss:$8 sps:$4 sm:$0xff]  }
 0x453   :  { %3420 = vmatmul.mubr.bf16.gmra.mrb[116].mxu1 %v8143_v55 }
 0x454   :  { %5205 = vmatprep.mubr.msk.bf16.mxu1 %vm2679_vm4, %v8251_v27  ;;  %3687 = vmatpush1.bf16.msra.mxu1 %v6476_v28  ;;  %v6226_v28 = vpop.permute.xlu0 %6225 }
 0x455   :  { %3688 = vmatprep.subr.bf16.mxu1 %v6481_v11  ;;  %v6522_v11 = vld [vmem:[%s8835_s3 + $0x444] ss:$8 sps:$4 sm:$0xff]   ;;  %v6228_v10 = vunpack.i.h.bf16 %v6226_v28  ;;  %v6227_v57 = vunpack.i.l.bf16 %v6226_v28 }
 0x457   :  { %v2414_v36 = vmax.f32 %v7995_v9, %v6228_v10  ;;  %v2321_v9 = vsel %vm2300_vm3, %v6227_v57, %v6228_v10 }
 0x458   :  { %3689 = vmatpush1.bf16.msra.mxu1 %v6479_v34  ;;  %v2416_v34 = vmax.f32 %v8006_v44, %v6233_v31 }
 0x459   :  { %3690 = vmatprep.subr.bf16.mxu1 %v6484_v49  ;;  %v6232_v49 = vunpack.i.l.bf16 %v6231_v50  ;;  %v2462_v18 = vmax.f32 %v2414_v36, 0.0 }
 0x45a   :  { %v2464_v44 = vmax.f32 %v2416_v34, 0.0 }
 0x45b   :  { %3430 = vmatmul.mubr.bf16.gmra.mrb[120].mxu1 %v8263_v35 }
 0x45c   :  { %5206 = vmatprep.mubr.msk.bf16.mxu1 %vm2679_vm4, %v8374_v30  ;;  %3691 = vmatpush1.bf16.msra.mxu1 %v6482_v52  ;;  %v2322_v52 = vsel %vm2300_vm3, %v6232_v49, %v6233_v31  ;;  %v6542_v31 = vld [vmem:[%s8837_s5 + $0x40] sm:$0x3f]  }
 0x45d   :  { %3692 = vmatprep.subr.bf16.mxu1 %v6487_v38  ;;  %v6526_v38 = vld [vmem:[%s8835_s3 + $0x460] ss:$8 sps:$4 sm:$0xff]   ;;  %v2415_v6 = vmax.f32 %v7999_v20, %v2322_v52  ;;  %v6529_v20 = vld [vmem:[%s8835_s3 + $0x470] ss:$8 sps:$4 sm:$0xff]   ;;  %v4352_v49 = vsel %vm224_vm0, %v6542_v31, 0 }
 0x45f   :  { %v2463_v16 = vmax.f32 %v2415_v6, 0.0 }
 0x460   :  { %3693 = vmatpush1.bf16.msra.mxu1 %v6485_v12  ;;  %v2490_v12 = vpack.c.bf16 %v2464_v44, %v2462_v18 }
 0x461   :  { %5266 = vmatprep.subr.msk.bf16.mxu1 %vm2704_vm2, %v5265_v56  ;;  %v2413_v56 = vmax.f32 %v7993_v41, %v2321_v9  ;;  %v8948_v41 = vmov 0  }
 0x463   :  { %3440 = vmatmul.mubr.bf16.gmra.mrb[124].mxu1 %v8386_v21 }
 0x464   :  { %5267 = vmatprep.mubr.msk.bf16.mxu1 %vm2679_vm4, %v8058_v8  ;;  %3695 = vmatpush1.bf16.msra.mxu1 %v3661_v40  ;;  %v6493_v8 = vld [vmem:[%s8835_s3 + $0x3b0] ss:$8 sps:$4 sm:$0xff]   ;;  %v5332_v40 = vcombine.low %v5303_v14, %v5303_v14 }
 0x465   :  { %3995 = vmatprep.subr.bf16.mxu1 %v6492_v43  ;;  %v2461_v43 = vmax.f32 %v2413_v56, 0.0 }
 0x46b   :  { %3699 = vmatmul.mubr.bf16.vlgmr.msra.gmra.mrb[96].mxu1 %v8064_v45  ;;  %v6501_v45 = vld [vmem:[%s8835_s3 + $0x3d4] ss:$8 sps:$4 sm:$0xff]  }
 0x46c   :  { %5268 = vmatprep.mubr.msk.bf16.mxu1 %vm2679_vm4, %v8102_v19  ;;  %3996 = vmatpush1.bf16.msra.mxu1 %v6490_v26  ;;  %v2489_v26 = vpack.c.bf16 %v2463_v16, %v2461_v43 }
 0x46d   :  { %3997 = vmatprep.subr.bf16.mxu1 %v6495_v59  ;;  %v3990_v59 = vsel %vm2704_vm2, %v5332_v40, 0 }
 0x470   :  { %3998 = vmatpush1.bf16.msra.mxu1 %v6493_v8 }
 0x471   :  { %3999 = vmatprep.subr.bf16.mxu1 %v6498_v62 }
 0x473   :  { %3709 = vmatmul.mubr.bf16.gmra.mrb[100].mxu1 %v8104_v17 }
 0x474   :  { %5269 = vmatprep.mubr.msk.bf16.mxu1 %vm2679_vm4, %v8115_v53  ;;  %4000 = vmatpush1.bf16.msra.mxu1 %v6496_v13 }
 0x475   :  { %4001 = vmatprep.subr.bf16.mxu1 %v6501_v45 }
 0x478   :  { %4002 = vmatpush1.bf16.msra.mxu1 %v6499_v29  ;;  %v6534_v29 = vld [vmem:[%s8837_s5] sm:$0xff]  }
 0x479   :  { %4003 = vmatprep.subr.bf16.mxu1 %v6504_v24  ;;  %v6535_v24 = vld [vmem:[%s8837_s5 + $0x8] sm:$0xff]  }
 0x47b   :  { %3719 = vmatmul.mubr.bf16.gmra.mrb[104].mxu1 %v8117_v58 }
 0x47c   :  { %5270 = vmatprep.mubr.msk.bf16.mxu1 %vm2679_vm4, %v8128_v37  ;;  %4004 = vmatpush1.bf16.msra.mxu1 %v6502_v23  ;;  %v6538_v23 = vld [vmem:[%s8837_s5 + $0x20] sm:$0xff]  }
 0x47d   :  { %4005 = vmatprep.subr.bf16.mxu1 %v6507_v33  ;;  %v6539_v33 = vld [vmem:[%s8837_s5 + $0x28] sm:$0xff]  }
 0x480   :  { %4006 = vmatpush1.bf16.msra.mxu1 %v6505_v3  ;;  %v6540_v3 = vld [vmem:[%s8837_s5 + $0x30] sm:$0xff]  }
 0x481   :  { %4007 = vmatprep.subr.bf16.mxu1 %v6510_v15  ;;  %v6541_v15 = vld [vmem:[%s8837_s5 + $0x38] sm:$0xff]  }
 0x483   :  { %3729 = vmatmul.mubr.bf16.gmra.mrb[108].mxu1 %v8130_v4 }
 0x484   :  { %5271 = vmatprep.mubr.msk.bf16.mxu1 %vm2679_vm4, %v8141_v51  ;;  %4008 = vmatpush1.bf16.msra.mxu1 %v6508_v25 }
 0x485   :  { %4009 = vmatprep.subr.bf16.mxu1 %v6513_v5 }
 0x488   :  { %4010 = vmatpush1.bf16.msra.mxu1 %v6511_v48  ;;  %v2522_v48 = vld [vmem:[%s8838_s4] sm:$0x3]  ;;  %s6584_s4 = smov 108  }
 0x489   :  { %4011 = vmatprep.subr.bf16.mxu1 %v6516_v0 }
 0x48b   :  { %3739 = vmatmul.mubr.bf16.gmra.mrb[112].mxu1 %v8143_v55 }
 0x48c   :  { %5272 = vmatprep.mubr.msk.bf16.mxu1 %vm2679_vm4, %v8251_v27  ;;  %4012 = vmatpush1.bf16.msra.mxu1 %v6514_v63 }
 0x48d   :  { %4013 = vmatprep.subr.bf16.mxu1 %v6519_v47  ;;  %v8949_v47 = vld [vmem:[#allocation19_spill] sm:$0xff] }
 0x48e   :  { %v8950_v50 = vsub.s32 0, %v8949_v47  ;;  %v8951_v28 = vsub.s32 1, %v8949_v47 }
 0x490   :  { %4014 = vmatpush1.bf16.msra.mxu1 %v6517_v22  ;;  %v8572_v22 = vrot.slane %v2522_v48, %v8950_v50 }
 0x491   :  { %4015 = vmatprep.subr.bf16.mxu1 %v6522_v11  ;;  %v8576_v11 = vrot.slane %v2522_v48, %v8951_v28 }
 0x493   :  { %3749 = vmatmul.mubr.bf16.gmra.mrb[116].mxu1 %v8263_v35 }
 0x494   :  { %5273 = vmatprep.mubr.msk.bf16.mxu1 %vm2679_vm4, %v8374_v30  ;;  %4016 = vmatpush1.bf16.msra.mxu1 %v6520_v42 }
 0x495   :  { %4017 = vmatprep.subr.bf16.mxu1 %v6525_v54 }
 0x498   :  { %4018 = vmatpush1.bf16.msra.mxu1 %v6523_v61 }
 0x499   :  { %4019 = vmatprep.subr.bf16.mxu1 %v6528_v60 }
 0x49b   :  { %3759 = vmatmul.mubr.bf16.gmra.mrb[120].mxu1 %v8386_v21 }
 0x49c   :  { %5274 = vmatprep.mubr.msk.bf16.mxu1 %vm2679_vm4, %v2490_v12  ;;  %4020 = vmatpush1.bf16.msra.mxu1 %v6526_v38 }
 0x49d   :  { %4021 = vmatprep.subr.bf16.mxu1 %v6531_v32 }
 0x4a0   :  { %4022 = vmatpush1.bf16.msra.mxu1 %v6529_v20 }
 0x4a1   :  { %5334 = vmatprep.subr.msk.bf16.mxu1 %vm2704_vm2, %v5333_v1 }
 0x4a3   :  { %3769 = vmatmul.mubr.bf16.gmra.mrb[124].mxu1 %v2489_v26 }
 0x4a4   :  { %5335 = vmatprep.mubr.msk.bf16.mxu1 %vm2679_vm4, %v8102_v19  ;;  %4024 = vmatpush1.bf16.msra.mxu1 %v3990_v59  ;;  %v6241_v19 = vpop.permute.xlu1 %6240 }
 0x4a5   :  { %4354 = vmatprep.subr.bf16.mxu1 %v8948_v41 }
 0x4ab   :  { %4028 = vmatmul.mubr.bf16.vlgmr.msra.gmra.mrb[96].mxu1 %v8104_v17  ;;  %v6236_v17 = vpop.permute.xlu0 %6235 }
 0x4ac   :  { %5336 = vmatprep.mubr.msk.bf16.mxu1 %vm2679_vm4, %v8115_v53  ;;  %v6243_v53 = vunpack.i.h.bf16 %v6241_v19  ;;  %4355 = vmatpush1.bf16.msra.mxu1 %v6534_v29 }
 0x4ad   :  { %4356 = vmatprep.subr.bf16.mxu1 %v8948_v41 }
 0x4b0   :  { %4357 = vmatpush1.bf16.msra.mxu1 %v6535_v24 }
 0x4b1   :  { %4358 = vmatprep.subr.bf16.mxu1 %v8948_v41 }
 0x4b3   :  { %4038 = vmatmul.mubr.bf16.gmra.mrb[100].mxu1 %v8117_v58  ;;  %v6238_v58 = vunpack.i.h.bf16 %v6236_v17 }
 0x4b4   :  { %5337 = vmatprep.mubr.msk.bf16.mxu1 %vm2679_vm4, %v8128_v37  ;;  %v2420_v37 = vmax.f32 %v8073_v46, %v6243_v53 }
 0x4bb   :  { %4048 = vmatmul.mubr.bf16.gmra.mrb[104].mxu1 %v8130_v4  ;;  %v6242_v4 = vunpack.i.l.bf16 %v6241_v19 }
 0x4bc   :  { %5338 = vmatprep.mubr.msk.bf16.mxu1 %vm2679_vm4, %v8141_v51  ;;  %v2418_v51 = vmax.f32 %v8062_v39, %v6238_v58 }
 0x4bd   :  { %v2324_v8 = vsel %vm2300_vm3, %v6242_v4, %v6243_v53 }
 0x4c3   :  { %4058 = vmatmul.mubr.bf16.gmra.mrb[108].mxu1 %v8143_v55  ;;  %v6237_v55 = vunpack.i.l.bf16 %v6236_v17 }
 0x4c4   :  { %5339 = vmatprep.mubr.msk.bf16.mxu1 %vm2679_vm4, %v8251_v27  ;;  %v2468_v27 = vmax.f32 %v2420_v37, 0.0 }
 0x4c5   :  { %v2323_v62 = vsel %vm2300_vm3, %v6237_v55, %v6238_v58 }
 0x4c6   :  { %v2417_v46 = vmax.f32 %v8060_v2, %v2323_v62  ;;  %v6536_v2 = vld [vmem:[%s8837_s5 + $0x10] sm:$0xff]  }
 0x4c7   :  { %4359 = vmatpush1.bf16.msra.mxu1 %v6536_v2 }
 0x4c8   :  { %v2465_v45 = vmax.f32 %v2417_v46, 0.0  ;;  %4360 = vmatprep.subr.bf16.mxu1 %v8948_v41 }
 0x4cb   :  { %4068 = vmatmul.mubr.bf16.gmra.mrb[112].mxu1 %v8263_v35  ;;  %v2466_v35 = vmax.f32 %v2418_v51, 0.0 }
 0x4cc   :  { %5340 = vmatprep.mubr.msk.bf16.mxu1 %vm2679_vm4, %v8374_v30  ;;  %v2419_v30 = vmax.f32 %v8066_v7, %v2324_v8  ;;  %v6537_v7 = vld [vmem:[%s8837_s5 + $0x18] sm:$0xff]  }
 0x4cd   :  { %v2492_v13 = vpack.c.bf16 %v2468_v27, %v2466_v35  ;;  %4361 = vmatpush1.bf16.msra.mxu1 %v6537_v7 }
 0x4ce   :  { %4362 = vmatprep.subr.bf16.mxu1 %v8948_v41 }
 0x4d1   :  { %4363 = vmatpush1.bf16.msra.mxu1 %v6538_v23 }
 0x4d2   :  { %4364 = vmatprep.subr.bf16.mxu1 %v8948_v41 }
 0x4d3   :  { %4078 = vmatmul.mubr.bf16.gmra.mrb[116].mxu1 %v8386_v21  ;;  %v2467_v21 = vmax.f32 %v2419_v30, 0.0 }
 0x4d4   :  { %5341 = vmatprep.mubr.msk.bf16.mxu1 %vm2679_vm4, %v2490_v12 }
 0x4d5   :  { %v2491_v39 = vpack.c.bf16 %v2467_v21, %v2465_v45  ;;  %4365 = vmatpush1.bf16.msra.mxu1 %v6539_v33 }
 0x4d6   :  { %4366 = vmatprep.subr.bf16.mxu1 %v8948_v41 }
 0x4d9   :  { %4367 = vmatpush1.bf16.msra.mxu1 %v6540_v3 }
 0x4da   :  { %4368 = vmatprep.subr.bf16.mxu1 %v8948_v41 }
 0x4db   :  { %4088 = vmatmul.mubr.bf16.gmra.mrb[120].mxu1 %v2489_v26 }
 0x4dc   :  { %5342 = vmatprep.mubr.msk.bf16.mxu1 %vm2679_vm4, %v2492_v13 }
 0x4dd   :  { %4369 = vmatpush1.bf16.msra.mxu1 %v6541_v15 }
 0x4de   :  { %4370 = vmatprep.subr.bf16.mxu1 %v8948_v41 }
 0x4e1   :  { %4371 = vmatpush1.bf16.msra.mxu1 %v4352_v49 }
 0x4e2   :  { %4473 = vmatprep.subr.bf16.mxu1 %v8948_v41 }
 0x4e3   :  { %4098 = vmatmul.mubr.bf16.gmra.mrb[124].mxu1 %v2491_v39 }
 0x57e   :  { %v4029_v25 = vpop.f32.mrb[96].mxu1 }
 0x57f   :  { %v4031_v5 = vpop.f32.mrb[97].mxu1  ;;  %v5657_v42 = vadd.f32 %v4029_v25, %v8572_v22 }
 0x580   :  { %v4033_v0 = vpop.f32.mrb[98].mxu1  ;;  %v5658_v36 = vadd.f32 %v4031_v5, %v8576_v11 }
 0x581   :  { %v4035_v63 = vpop.f32.mrb[99].mxu1  ;;  %v5659_v60 = vadd.f32 %v4033_v0, %v8572_v22 }
 0x582   :  { %v5660_v9 = vadd.f32 %v4035_v63, %v8576_v11 }
 0x586   :  { %v4039_v10 = vpop.f32.mrb[100].mxu1 }
 0x587   :  { %v5661_v54 = vadd.f32 %v4039_v10, %v8572_v22  ;;  %v4041_v34 = vpop.f32.mrb[101].mxu1 }
 0x588   :  { %v5662_v57 = vadd.f32 %v4041_v34, %v8576_v11  ;;  %v4043_v61 = vpop.f32.mrb[102].mxu1 }
 0x589   :  { %v8587_v44 = vmax.f32 %v5657_v42, %v5661_v54  ;;  %v5663_v52 = vadd.f32 %v4043_v61, %v8572_v22  ;;  %v4045_v18 = vpop.f32.mrb[103].mxu1 }
 0x58a   :  { %v8592_v38 = vmax.f32 %v5658_v36, %v5662_v57  ;;  %v5664_v6 = vadd.f32 %v4045_v18, %v8576_v11 }
 0x58b   :  { %v8595_v32 = vmax.f32 %v5659_v60, %v5663_v52 }
 0x58c   :  { %v8597_v12 = vmax.f32 %v5660_v9, %v5664_v6  ;;  %v6244_v14 = vpack.i.bf16 %v8592_v38, %v8587_v44 }
 0x58e   :  { %6245 = vrot.lane.b32.xlu0 %v6244_v14, %s6584_s4  ;;  %v4049_v56 = vpop.f32.mrb[104].mxu1  ;;  %v6249_v20 = vpack.i.bf16 %v8597_v12, %v8595_v32 }
 0x58f   :  { %v4051_v16 = vpop.f32.mrb[105].mxu1  ;;  %v5665_v26 = vadd.f32 %v4049_v56, %v8572_v22 }
 0x590   :  { %6250 = vrot.lane.b32.xlu1 %v6249_v20, %s6584_s4  ;;  %v4053_v1 = vpop.f32.mrb[106].mxu1  ;;  %v5666_v17 = vadd.f32 %v4051_v16, %v8576_v11 }
 0x591   :  { %v4055_v40 = vpop.f32.mrb[107].mxu1  ;;  %v5667_v37 = vadd.f32 %v4053_v1, %v8572_v22 }
 0x592   :  { %v5668_v27 = vadd.f32 %v4055_v40, %v8576_v11 }
 0x596   :  { %v4059_v43 = vpop.f32.mrb[108].mxu1 }
 0x597   :  { %v5669_v59 = vadd.f32 %v4059_v43, %v8572_v22  ;;  %v4061_v19 = vpop.f32.mrb[109].mxu1 }
 0x598   :  { %v5670_v53 = vadd.f32 %v4061_v19, %v8576_v11  ;;  %v4063_v58 = vpop.f32.mrb[110].mxu1 }
 0x599   :  { %v8610_v4 = vmax.f32 %v5665_v26, %v5669_v59  ;;  %v5671_v51 = vadd.f32 %v4063_v58, %v8572_v22  ;;  %v4065_v55 = vpop.f32.mrb[111].mxu1 }
 0x59a   :  { %v8614_v8 = vmax.f32 %v5666_v17, %v5670_v53  ;;  %v5672_v35 = vadd.f32 %v4065_v55, %v8576_v11 }
 0x59b   :  { %v8617_v62 = vmax.f32 %v5667_v37, %v5671_v51 }
 0x59c   :  { %v8619_v30 = vmax.f32 %v5668_v27, %v5672_v35  ;;  %v6254_v13 = vpack.i.bf16 %v8614_v8, %v8610_v4 }
 0x59e   :  { %6255 = vrot.lane.b32.xlu0 %v6254_v13, %s6584_s4  ;;  %v4069_v46 = vpop.f32.mrb[112].mxu1  ;;  %v6259_v21 = vpack.i.bf16 %v8619_v30, %v8617_v62 }
 0x59f   :  { %v4071_v45 = vpop.f32.mrb[113].mxu1  ;;  %v5673_v2 = vadd.f32 %v4069_v46, %v8572_v22 }
 0x5a0   :  { %6260 = vrot.lane.b32.xlu1 %v6259_v21, %s6584_s4  ;;  %v4073_v39 = vpop.f32.mrb[114].mxu1  ;;  %v5674_v33 = vadd.f32 %v4071_v45, %v8576_v11 }
 0x5a1   :  { %v4075_v29 = vpop.f32.mrb[115].mxu1  ;;  %v5675_v25 = vadd.f32 %v4073_v39, %v8572_v22 }
 0x5a2   :  { %v5676_v63 = vadd.f32 %v4075_v29, %v8576_v11 }
 0x5a6   :  { %v4079_v24 = vpop.f32.mrb[116].mxu1 }
 0x5a7   :  { %v5677_v7 = vadd.f32 %v4079_v24, %v8572_v22  ;;  %v4081_v23 = vpop.f32.mrb[117].mxu1 }
 0x5a8   :  { %v5678_v3 = vadd.f32 %v4081_v23, %v8576_v11  ;;  %v4083_v15 = vpop.f32.mrb[118].mxu1  ;;  %v6545_v23 = vld [vmem:[%s8837_s5 + $0x58] sm:$0xff]  }
 0x5a9   :  { %v8632_v5 = vmax.f32 %v5673_v2, %v5677_v7  ;;  %v5679_v48 = vadd.f32 %v4083_v15, %v8572_v22  ;;  %v4085_v0 = vpop.f32.mrb[119].mxu1 }
 0x5aa   :  { %v8636_v47 = vmax.f32 %v5674_v33, %v5678_v3  ;;  %v5680_v50 = vadd.f32 %v4085_v0, %v8576_v11 }
 0x5ab   :  { %v8639_v28 = vmax.f32 %v5675_v25, %v5679_v48  ;;  %v6546_v48 = vld [vmem:[%s8837_s5 + $0x60] sm:$0xff]  }
 0x5ac   :  { %v8641_v31 = vmax.f32 %v5676_v63, %v5680_v50  ;;  %v6264_v10 = vpack.i.bf16 %v8636_v47, %v8632_v5 }
 0x5ae   :  { %6265 = vrot.lane.b32.xlu0 %v6264_v10, %s6584_s4  ;;  %v4089_v42 = vpop.f32.mrb[120].mxu1  ;;  %v6269_v54 = vpack.i.bf16 %v8641_v31, %v8639_v28  ;;  %v6547_v10 = vld [vmem:[%s8837_s5 + $0x68] sm:$0xff]  }
 0x5af   :  { %v4091_v34 = vpop.f32.mrb[121].mxu1  ;;  %v5681_v61 = vadd.f32 %v4089_v42, %v8572_v22 }
 0x5b0   :  { %6270 = vrot.lane.b32.xlu1 %v6269_v54, %s6584_s4  ;;  %v4093_v49 = vpop.f32.mrb[122].mxu1  ;;  %v5682_v18 = vadd.f32 %v4091_v34, %v8576_v11  ;;  %v6549_v54 = vld [vmem:[%s8837_s5 + $0x78] sm:$0xff]  }
 0x5b1   :  { %v4095_v36 = vpop.f32.mrb[123].mxu1  ;;  %v5683_v14 = vadd.f32 %v4093_v49, %v8572_v22 }
 0x5b2   :  { %v5684_v1 = vadd.f32 %v4095_v36, %v8576_v11 }
 0x5b6   :  { %v4099_v57 = vpop.f32.mrb[124].mxu1 }
 0x5b7   :  { %v5685_v60 = vadd.f32 %v4099_v57, %v8572_v22  ;;  %v4101_v52 = vpop.f32.mrb[125].mxu1 }
 0x5b8   :  { %v5686_v9 = vadd.f32 %v4101_v52, %v8576_v11  ;;  %v4103_v6 = vpop.f32.mrb[126].mxu1  ;;  %v6550_v52 = vld [vmem:[%s8837_s5 + $0x80] sm:$0xff]  }
 0x5b9   :  { %v8654_v56 = vmax.f32 %v5681_v61, %v5685_v60  ;;  %v5687_v20 = vadd.f32 %v4103_v6, %v8572_v22  ;;  %v4105_v16 = vpop.f32.mrb[127].mxu1 }
 0x5ba   :  { %v8658_v40 = vmax.f32 %v5682_v18, %v5686_v9  ;;  %v5688_v43 = vadd.f32 %v4105_v16, %v8576_v11  ;;  %v6551_v9 = vld [vmem:[%s8837_s5 + $0x88] sm:$0x3f]  }
 0x5bb   :  { %v8661_v26 = vmax.f32 %v5683_v14, %v5687_v20 }
 0x5bc   :  { %v8663_v59 = vmax.f32 %v5684_v1, %v5688_v43  ;;  %v6274_v19 = vpack.i.bf16 %v8658_v40, %v8654_v56  ;;  %v4471_v1 = vsel %vm224_vm0, %v6551_v9, 0  ;;  %v5343_v9 = vld [vmem:[%s8840_s6] ss:$0 sm:$0xff] }
 0x5be   :  { %6275 = vrot.lane.b32.xlu0 %v6274_v19, %s6584_s4  ;;  %v6279_v17 = vpack.i.bf16 %v8663_v59, %v8661_v26 }
 0x5c0   :  { %6280 = vrot.lane.b32.xlu1 %v6279_v17, %s6584_s4  ;;  %v6552_v17 = vld [vmem:[%s8837_s5 + $0x90] sm:$0xff]  }
 0x600   :  { %v6246_v22 = vpop.permute.xlu0 %6245 }
 0x601   :  { %v6248_v53 = vunpack.i.h.bf16 %v6246_v22  ;;  %v6247_v58 = vunpack.i.l.bf16 %v6246_v22 }
 0x602   :  { %v6251_v37 = vpop.permute.xlu1 %6250 }
 0x603   :  { %v4230_v11 = vmax.f32 %v8592_v38, %v6248_v53  ;;  %v4205_v51 = vsel %vm4204_vm5, %v6247_v58, %v6248_v53  ;;  %v6253_v55 = vunpack.i.h.bf16 %v6251_v37  ;;  %v6252_v27 = vunpack.i.l.bf16 %v6251_v37  ;;  %v6543_v38 = vld [vmem:[%s8837_s5 + $0x48] sm:$0xff]   ;;  %v6556_v58 = vld [vmem:[%s8837_s5 + $0xb0] sm:$0xff]   ;;  %v6557_v37 = vld [vmem:[%s8837_s5 + $0xb8] sm:$0xff]  }
 0x604   :  { %v4229_v35 = vmax.f32 %v8587_v44, %v4205_v51  ;;  %v6544_v44 = vld [vmem:[%s8837_s5 + $0x50] sm:$0xff]   ;;  %v6555_v53 = vld [vmem:[%s8837_s5 + $0xa8] sm:$0xff]  }
 0x605   :  { %v4232_v13 = vmax.f32 %v8597_v12, %v6253_v55  ;;  %v4206_v46 = vsel %vm4204_vm5, %v6252_v27, %v6253_v55  ;;  %v4246_v45 = vmax.f32 %v4230_v11, 0.0  ;;  %v6558_v27 = vld [vmem:[%s8837_s5 + $0xc0] sm:$0xff]  }
 0x606   :  { %v4231_v21 = vmax.f32 %v8595_v32, %v4206_v46  ;;  %v4245_v29 = vmax.f32 %v4229_v35, 0.0 }
 0x607   :  { %v4248_v39 = vmax.f32 %v4232_v13, 0.0 }
 0x608   :  { %v4247_v24 = vmax.f32 %v4231_v21, 0.0 }
 0x609   :  { %v4262_v2 = vpack.c.bf16 %v4248_v39, %v4246_v45  ;;  %v6559_v39 = vld [vmem:[%s8837_s5 + $0xc8] sm:$0xff]  }
 0x60a   :  { %v4261_v7 = vpack.c.bf16 %v4247_v24, %v4245_v29  ;;  %v6560_v24 = vld [vmem:[%s8837_s5 + $0xd0] sm:$0x3f]  }
 0x60b   :  { %5353 = vmatprep.mubr.msk.bf16.mxu1 %vm4347_vm6, %v4262_v2 }
 0x60c   :  { %4387 = vmatmul.mubr.bf16.vlgmr.msra.gmra.mrb[128].mxu1 %v4261_v7 }
 0x60d   :  { %4474 = vmatpush1.bf16.msra.mxu1 %v6543_v38 }
 0x60e   :  { %4475 = vmatprep.subr.bf16.mxu1 %v8948_v41 }
 0x610   :  { %v6256_v32 = vpop.permute.xlu0 %6255 }
 0x611   :  { %4476 = vmatpush1.bf16.msra.mxu1 %v6544_v44  ;;  %v6258_v12 = vunpack.i.h.bf16 %v6256_v32  ;;  %v6257_v42 = vunpack.i.l.bf16 %v6256_v32  ;;  %v4592_v32 = vsel %vm224_vm0, %v6560_v24, 0 }
 0x612   :  { %v6261_v33 = vpop.permute.xlu1 %6260  ;;  %4477 = vmatprep.subr.bf16.mxu1 %v8948_v41 }
 0x613   :  { %v4234_v3 = vmax.f32 %v8614_v8, %v6258_v12  ;;  %v6263_v15 = vunpack.i.h.bf16 %v6261_v33  ;;  %v6548_v8 = vld [vmem:[%s8837_s5 + $0x70] sm:$0xff]   ;;  %v4207_v61 = vsel %vm4204_vm5, %v6257_v42, %v6258_v12 }
 0x614   :  { %v4233_v14 = vmax.f32 %v8610_v4, %v4207_v61 }
 0x615   :  { %v4236_v25 = vmax.f32 %v8619_v30, %v6263_v15  ;;  %4478 = vmatpush1.bf16.msra.mxu1 %v6545_v23  ;;  %v4250_v0 = vmax.f32 %v4234_v3, 0.0  ;;  %v6262_v30 = vunpack.i.l.bf16 %v6261_v33  ;;  %v6561_v33 = vld [vmem:[%s8837_s5 + $0xd8] sm:$0xff]  }
 0x616   :  { %4479 = vmatprep.subr.bf16.mxu1 %v8948_v41 }
 0x617   :  { %v4252_v63 = vmax.f32 %v4236_v25, 0.0  ;;  %v4208_v36 = vsel %vm4204_vm5, %v6262_v30, %v6263_v15  ;;  %v6564_v15 = vld [vmem:[%s8837_s5 + $0xf0] sm:$0xff]   ;;  %v6565_v25 = vld [vmem:[%s8837_s5 + $0xf8] sm:$0xff]  }
 0x618   :  { %v4235_v18 = vmax.f32 %v8617_v62, %v4208_v36  ;;  %v4249_v62 = vmax.f32 %v4233_v14, 0.0  ;;  %v6568_v30 = vld [vmem:[%s8837_s5 + $0x110] sm:$0xff]  }
 0x619   :  { %v4264_v50 = vpack.c.bf16 %v4252_v63, %v4250_v0  ;;  %4480 = vmatpush1.bf16.msra.mxu1 %v6546_v48  ;;  %v6566_v48 = vld [vmem:[%s8837_s5 + $0x100] sm:$0xff]  }
 0x61a   :  { %4481 = vmatprep.subr.bf16.mxu1 %v8948_v41  ;;  %v4251_v16 = vmax.f32 %v4235_v18, 0.0 }
 0x61b   :  { %5381 = vmatprep.mubr.msk.bf16.mxu1 %vm4347_vm6, %v4264_v50  ;;  %v6567_v50 = vld [vmem:[%s8837_s5 + $0x108] sm:$0xff]  }
 0x61c   :  { %v4263_v22 = vpack.c.bf16 %v4251_v16, %v4249_v62 }
 0x61d   :  { %4482 = vmatpush1.bf16.msra.mxu1 %v6547_v10 }
 0x61e   :  { %4483 = vmatprep.subr.bf16.mxu1 %v8948_v41 }
 0x620   :  { %v6266_v34 = vpop.permute.xlu0 %6265 }
 0x621   :  { %4484 = vmatpush1.bf16.msra.mxu1 %v6548_v8  ;;  %v6268_v60 = vunpack.i.h.bf16 %v6266_v34  ;;  %v6267_v55 = vunpack.i.l.bf16 %v6266_v34 }
 0x622   :  { %v6271_v49 = vpop.permute.xlu1 %6270  ;;  %4485 = vmatprep.subr.bf16.mxu1 %v8948_v41 }
 0x623   :  { %v6273_v57 = vunpack.i.h.bf16 %v6271_v49  ;;  %v4238_v20 = vmax.f32 %v8636_v47, %v6268_v60  ;;  %v6553_v47 = vld [vmem:[%s8837_s5 + $0x98] sm:$0xff]   ;;  %v6272_v11 = vunpack.i.l.bf16 %v6271_v49  ;;  %v4209_v21 = vsel %vm4204_vm5, %v6267_v55, %v6268_v60 }
 0x624   :  { %v4237_v38 = vmax.f32 %v8632_v5, %v4209_v21  ;;  %v6585_v60 = vmov 0.0  }
 0x625   :  { %4486 = vmatpush1.bf16.msra.mxu1 %v6549_v54  ;;  %v4240_v6 = vmax.f32 %v8641_v31, %v6273_v57  ;;  %v4254_v19 = vmax.f32 %v4238_v20, 0.0  ;;  %v6554_v31 = vld [vmem:[%s8837_s5 + $0xa0] sm:$0xff]   ;;  %v4210_v13 = vsel %vm4204_vm5, %v6272_v11, %v6273_v57  ;;  %v6569_v54 = vld [vmem:[%s8837_s5 + $0x118] sm:$0x3f]  }
 0x626   :  { %4487 = vmatprep.subr.bf16.mxu1 %v8948_v41  ;;  %v4239_v29 = vmax.f32 %v8639_v28, %v4210_v13  ;;  %v4253_v28 = vmax.f32 %v4237_v38, 0.0  ;;  %v4713_v36 = vsel %vm224_vm0, %v6569_v54, 0 }
 0x627   :  { %v4256_v43 = vmax.f32 %v4240_v6, 0.0 }
 0x628   :  { %v4255_v44 = vmax.f32 %v4239_v29, 0.0 }
 0x629   :  { %4488 = vmatpush1.bf16.msra.mxu1 %v6550_v52  ;;  %v4266_v4 = vpack.c.bf16 %v4256_v43, %v4254_v19  ;;  %v6573_v52 = vld [vmem:[%s8839_s7 + $0x18] ss:$0 sps:$4 sm:$0x11]  }
 0x62a   :  { %4489 = vmatprep.subr.bf16.mxu1 %v8948_v41  ;;  %v4265_v3 = vpack.c.bf16 %v4255_v44, %v4253_v28  ;;  %v4802_v18 = vsel %vm4800_vm7, %v6573_v52, 0 }
 0x62d   :  { %4490 = vmatpush1.bf16.msra.mxu1 %v4471_v1 }
 0x62e   :  { %4594 = vmatprep.subr.bf16.mxu1 %v8948_v41 }
 0x630   :  { %4506 = vmatmul.mubr.bf16.vlgmr.msra.gmra.mrb[128].mxu1 %v4263_v22  ;;  %v6276_v35 = vpop.permute.xlu0 %6275  ;;  %v5438_v22 = vld [vmem:[%s8841_s8] ss:$0 sm:$0xff] }
 0x631   :  { %4595 = vmatpush1.bf16.msra.mxu1 %v6552_v17  ;;  %5409 = vmatprep.mubr.msk.bf16.mxu1 %vm4347_vm6, %v4266_v4  ;;  %v6278_v45 = vunpack.i.h.bf16 %v6276_v35  ;;  %v6277_v63 = vunpack.i.l.bf16 %v6276_v35 }
 0x632   :  { %4596 = vmatprep.subr.bf16.mxu1 %v8948_v41  ;;  %v6281_v51 = vpop.permute.xlu1 %6280 }
 0x633   :  { %v6283_v46 = vunpack.i.h.bf16 %v6281_v51  ;;  %v4242_v7 = vmax.f32 %v8658_v40, %v6278_v45  ;;  %v6562_v40 = vld [vmem:[%s8837_s5 + $0xe0] sm:$0xff]   ;;  %v6282_v0 = vunpack.i.l.bf16 %v6281_v51  ;;  %v4211_v8 = vsel %vm4204_vm5, %v6277_v63, %v6278_v45 }
 0x634   :  { %v4241_v34 = vmax.f32 %v8654_v56, %v4211_v8  ;;  %v6571_v56 = vld [vmem:[%s8839_s7 + $0x8] sm:$0xff]  }
 0x635   :  { %4597 = vmatpush1.bf16.msra.mxu1 %v6553_v47  ;;  %v4244_v2 = vmax.f32 %v8663_v59, %v6283_v46  ;;  %v4258_v23 = vmax.f32 %v4242_v7, 0.0  ;;  %v6563_v59 = vld [vmem:[%s8837_s5 + $0xe8] sm:$0xff]   ;;  %v4212_v10 = vsel %vm4204_vm5, %v6282_v0, %v6283_v46 }
 0x636   :  { %4598 = vmatprep.subr.bf16.mxu1 %v8948_v41  ;;  %v4243_v42 = vmax.f32 %v8661_v26, %v4212_v10  ;;  %v4257_v57 = vmax.f32 %v4241_v34, 0.0  ;;  %v6570_v26 = vld [vmem:[%s8839_s7] sm:$0xff]  }
 0x637   :  { %v4260_v12 = vmax.f32 %v4244_v2, 0.0 }
 0x638   :  { %v4259_v49 = vmax.f32 %v4243_v42, 0.0 }
 0x639   :  { %4599 = vmatpush1.bf16.msra.mxu1 %v6554_v31  ;;  %v4268_v5 = vpack.c.bf16 %v4260_v12, %v4258_v23 }
 0x63a   :  { %4600 = vmatprep.subr.bf16.mxu1 %v8948_v41  ;;  %v4267_v61 = vpack.c.bf16 %v4259_v49, %v4257_v57 }
 0x63d   :  { %4601 = vmatpush1.bf16.msra.mxu1 %v6555_v53 }
 0x63e   :  { %4602 = vmatprep.subr.bf16.mxu1 %v8948_v41 }
 0x641   :  { %4603 = vmatpush1.bf16.msra.mxu1 %v6556_v58 }
 0x642   :  { %4604 = vmatprep.subr.bf16.mxu1 %v8948_v41 }
 0x645   :  { %4605 = vmatpush1.bf16.msra.mxu1 %v6557_v37 }
 0x646   :  { %4606 = vmatprep.subr.bf16.mxu1 %v8948_v41 }
 0x649   :  { %4607 = vmatpush1.bf16.msra.mxu1 %v6558_v27 }
 0x64a   :  { %4608 = vmatprep.subr.bf16.mxu1 %v8948_v41 }
 0x64d   :  { %4609 = vmatpush1.bf16.msra.mxu1 %v6559_v39 }
 0x64e   :  { %4610 = vmatprep.subr.bf16.mxu1 %v8948_v41 }
 0x651   :  { %4611 = vmatpush1.bf16.msra.mxu1 %v4592_v32 }
 0x652   :  { %4715 = vmatprep.subr.bf16.mxu1 %v8948_v41 }
 0x654   :  { %4627 = vmatmul.mubr.bf16.vlgmr.msra.gmra.mrb[128].mxu1 %v4265_v3 }
 0x655   :  { %4716 = vmatpush1.bf16.msra.mxu1 %v6561_v33  ;;  %5437 = vmatprep.mubr.msk.bf16.mxu1 %vm4347_vm6, %v4268_v5 }
 0x656   :  { %4717 = vmatprep.subr.bf16.mxu1 %v8948_v41 }
 0x659   :  { %4718 = vmatpush1.bf16.msra.mxu1 %v6562_v40 }
 0x65a   :  { %4719 = vmatprep.subr.bf16.mxu1 %v8948_v41 }
 0x65d   :  { %4720 = vmatpush1.bf16.msra.mxu1 %v6563_v59 }
 0x65e   :  { %4721 = vmatprep.subr.bf16.mxu1 %v8948_v41 }
 0x661   :  { %4722 = vmatpush1.bf16.msra.mxu1 %v6564_v15 }
 0x662   :  { %4723 = vmatprep.subr.bf16.mxu1 %v8948_v41 }
 0x665   :  { %4724 = vmatpush1.bf16.msra.mxu1 %v6565_v25 }
 0x666   :  { %4725 = vmatprep.subr.bf16.mxu1 %v8948_v41 }
 0x669   :  { %4726 = vmatpush1.bf16.msra.mxu1 %v6566_v48 }
 0x66a   :  { %4727 = vmatprep.subr.bf16.mxu1 %v8948_v41 }
 0x66d   :  { %4728 = vmatpush1.bf16.msra.mxu1 %v6567_v50 }
 0x66e   :  { %4729 = vmatprep.subr.bf16.mxu1 %v8948_v41 }
 0x671   :  { %4730 = vmatpush1.bf16.msra.mxu1 %v6568_v30 }
 0x672   :  { %4731 = vmatprep.subr.bf16.mxu1 %v8948_v41  ;;  %v6572_v41 = vld [vmem:[%s8839_s7 + $0x10] sm:$0xff]  }
 0x675   :  { %4732 = vmatpush1.bf16.msra.mxu1 %v4713_v36 }
 0x676   :  { %5449 = vmatprep.subr.bf16.mxu1 %v6585_v60 }
 0x678   :  { %4748 = vmatmul.mubr.bf16.vlgmr.msra.gmra.mrb[128].mxu1 %v4267_v61 }
 0x679   :  { %5450 = vmatpush3.bf16.msra.mxu1 %v6570_v26  ;;  %5457 = vmatprep.mubr.msk.bf16.mxu1 %vm6586_vm8, %v6585_v60 }
 0x67a   :  { %5451 = vmatprep.subr.bf16.mxu1 %v6585_v60 }
 0x67d   :  { %5452 = vmatpush3.bf16.msra.mxu1 %v6571_v56 }
 0x67e   :  { %5453 = vmatprep.subr.bf16.mxu1 %v6585_v60 }
 0x681   :  { %5454 = vmatpush3.bf16.msra.mxu1 %v6572_v41 }
 0x682   :  { %5455 = vmatprep.subr.bf16.mxu1 %v6585_v60 }
 0x685   :  { %5456 = vmatpush3.bf16.msra.mxu1 %v4802_v18 }
 0x74b   :  { %v4749_v6 = vpop.f32.mrb[128].mxu1 }
 0x74c   :  { %v5689_v14 = vadd.f32 %v5343_v9, %v4749_v6  ;;  %v4751_v20 = vpop.f32.mrb[129].mxu1 }
 0x74d   :  { %v4752_v16 = vpop.f32.mrb[130].mxu1 }
 0x74e   :  { %v5690_v1 = vadd.f32 %v5343_v9, %v4752_v16  ;;  %v4754_v43 = vpop.f32.mrb[131].mxu1  ;;  %v4758_v62 = vmax.f32 %v5689_v14, 0.0 }
 0x750   :  { %v4759_v19 = vmax.f32 %v5690_v1, 0.0 }
 0x752   :  { %v4760_v17 = vpack.c.bf16 %v4759_v19, %v4758_v62 }
 0x754   :  { %5458 = vmatmul.mubr.msk.bf16.vlgmr.msra.gmra.mrb[132].mxu1 %vm4796_vm9, %v4760_v17 }
 0x827   :  { %v4838_v4 = vpop.f32.mrb[132].mxu1 }
 0x828   :  { %v4839_v47 = vadd.f32 %v5438_v22, %v4838_v4  ;;  %v5459_v31 = vpop.f32.mrb[133].mxu1 }
 0x829   :  { %v4841_v53 = vpop.f32.mrb[134].mxu1 }
 0x82a   :  { %v4842_v58 = vadd.f32 %v5438_v22, %v4841_v53  ;;  %4845 = vmax.xlane.f32.xlu0 %v4839_v47  ;;  %v5460_v37 = vpop.f32.mrb[135].mxu1 }
 0x82c   :  { %4847 = vmax.xlane.f32.xlu1 %v4842_v58 }
 0x8b7   :  { %v4846_v11 = vpop.xlane.xlu0 %4845 }
 0x8b8   :  { %v4849_v51 = vsub.f32 %v4839_v47, %v4846_v11 }
 0x8b9   :  { %v4848_v55 = vpop.xlane.xlu1 %4847 }
 0x8ba   :  { %v4851_v27 = vmul.f32 1.442695, %v4849_v51  ;;  %v4850_v35 = vsub.f32 %v4842_v58, %v4848_v55 }
 0x8bc   :  { %6574 = vpow2.f32 %v4851_v27  ;;  %v4853_v13 = vmul.f32 1.442695, %v4850_v35 }
 0x8be   :  { %6576 = vpow2.f32 %v4853_v13 }
 0x8c6   :  { %v6575_v46 = vpop.eup %6574 }
 0x8c7   :  { %4855 = vadd.xlane.f32.xlu0 %v6575_v46 }
 0x8c8   :  { %v6577_v21 = vpop.eup %6576 }
 0x8cb   :  { %4857 = vadd.xlane.f32.xlu0 %v6577_v21 }
 0x954   :  { %v4856_v45 = vpop.xlane.xlu0 %4855 }
 0x955   :  { %6578 = vlog2.f32 %v4856_v45 }
 0x958   :  { %v4858_v39 = vpop.xlane.xlu0 %4857 }
 0x959   :  { %6580 = vlog2.f32 %v4858_v39 }
 0x95f   :  { %v6579_v29 = vpop.eup %6578 }
 0x960   :  { %v4860_v24 = vmul.f32 0.6931472, %v6579_v29 }
 0x962   :  { %v4863_v2 = vsub.f32 %v4849_v51, %v4860_v24 }
 0x963   :  { %v6581_v38 = vpop.eup %6580 }
 0x964   :  { %4865 = vst [vmem:[%s8842_s9] sm:$0xff] %v4863_v2  ;;  %v4862_v7 = vmul.f32 0.6931472, %v6581_v38 }
 0x966   :  { %v4864_v44 = vsub.f32 %v4850_v35, %v4862_v7 }
 0x968   :  { %4866 = vst [vmem:[%s8842_s9 + $0x8] sm:$0xff] %v4864_v44 }

</bundles_post_ra>
